<compile_context>
chip_gen: v7x
topology: tpu7x:2x2x1
jax: 0.10.0
libtpu: 0.0.40
codegen_flags: <defaults>
</compile_context>

<pallas_src>
import functools
import math

import jax
import jax.numpy as jnp
from jax.experimental import pallas as pl
from jax.experimental.pallas import tpu as pltpu


def gcn_kernel(eye_n_ref, eye_bt_ref, x_ref, a_ref, mask_ref,
               w0_ref, b0_ref, w1_ref, b1_ref, w2_ref, b2_ref,
               wfc_ref, bfc_ref, out_ref, *, matmul_dtype):
    """One grid step == one tile of bt batch elements."""
    a_hat = a_ref[...] + eye_n_ref[...]                   # A + I  -> [bt, N, N]
    bt, n, _ = a_hat.shape

    # D_hat = (sum(A_hat, torch dim=1) + 1e-5) ** -0.5  (faithful to the module)
    d = jax.lax.rsqrt(jnp.sum(a_hat, axis=1) + 1e-5)      # [bt, N]
    # d[:, :, None] is one small lane->sublane relayout; cheap at these N and
    # required by the torch dim=1 definition (same vector scales rows and cols).
    L = d[:, :, None] * a_hat * d[:, None, :]             # f32 [bt, N, N]

    # Block-diagonal expansion: each layer's mixing becomes one full-M
    # [bt*N, bt*N] @ [bt*N, F] MXU matmul (off-diagonal blocks are exact zeros,
    # so batches stay independent). Built once, reused by all three layers.
    eye_bt = eye_bt_ref[...]                               # f32 [bt, bt]
    L_bd = (eye_bt[:, None, :, None] * L[:, :, None, :]
            ).reshape(bt * n, bt * n).astype(matmul_dtype)

    m = mask_ref[...].reshape(bt * n, 1)                   # [bt*N, 1] node mask

    def gconv(h_flat, w_ref, b_ref):
        # Linear first (matmul associativity): (L @ h) @ W == L @ (h @ W).
        # Weights arrive already in matmul_dtype (cast once in the wrapper).
        hw = jnp.dot(h_flat.astype(matmul_dtype), w_ref[...],
                     preferred_element_type=jnp.float32)   # [bt*N, F']
        y = jnp.dot(L_bd, hw.astype(matmul_dtype),
                    preferred_element_type=jnp.float32)    # graph mixing
        y = (y + b_ref[...]) * m                           # bias, then node mask
        return jnp.maximum(y, 0.0)                         # ReLU

    h = x_ref[...].reshape(bt * n, -1)                     # [bt*N, F0]
    h = gconv(h, w0_ref, b0_ref)
    h = gconv(h, w1_ref, b1_ref)
    h = gconv(h, w2_ref, b2_ref)

    # Global max pooling over nodes (torch.max(x, dim=1)[0]).
    pooled = jnp.max(h.reshape(bt, n, -1), axis=1)         # [bt, F_last]

    # TODO(synk): Dropout(p=0.2) implemented as inference-mode identity.
    out = jnp.dot(pooled.astype(matmul_dtype), wfc_ref[...],
                  preferred_element_type=jnp.float32) + bfc_ref[...]
    out_ref[0] = out.astype(out_ref.dtype)                 # [bt, O]


def _vmem_limits():
    """Generation-aware caps: (picker working-set budget, Mosaic vmem_limit_bytes)."""
    cap = 64 * 1024 * 1024          # conservative fallback == v7x per-TC VMEM
    try:
        cap = int(getattr(pltpu.get_tpu_info(), "vmem_capacity_bytes", cap)) or cap
    except Exception:
        pass
    limit = max(32 * 1024 * 1024, min(cap * 3 // 4, 100 * 1024 * 1024))
    return limit // 2, limit


def _pick_batch_tile(B, N, f0, f_max, *, mm_itemsize, vmem_budget_bytes,
                     num_cores=1):
    """Choose the batch tile bt.

    Preference: fits VMEM budget; on multi-core chips keep a multiple of
    num_cores grid steps (>= num_cores); bt*N a multiple of 128 (full MXU M,
    free (bt,N)->(bt*N) reshape); then fewest steps, least padding, largest bt.
    Single-TC chips (v5e/v6e) therefore collapse to grid=(1,) when it fits.
    N should be a multiple of 8 (16 for bf16 operands) to keep reshapes free.
    """
    def est(bt):
        blk = bt * (N * N + N * f0 + N) * 4                 # x / A / mask blocks
        l_f32 = bt * N * N * 4                               # L
        l_bd = (bt * N) ** 2 * (4 + mm_itemsize)             # expand + L_bd
        acts = 4 * bt * N * f_max * 4                        # layer temporaries
        return 2 * blk + l_f32 + l_bd + acts                 # inputs double-buffered

    lane_bt = 128 // math.gcd(128, N)      # smallest bt with (bt*N) % 128 == 0
    cands = set(range(1, B + 1)) | {lane_bt * k for k in range(1, B // lane_bt + 2)}
    cands = {bt for bt in cands if 1 <= bt <= max(B, lane_bt)}
    fitting = [bt for bt in sorted(cands) if est(bt) <= vmem_budget_bytes] or [1]
    if num_cores > 1:
        multi = [bt for bt in fitting
                 if (-(-B // bt)) >= num_cores and (-(-B // bt)) % num_cores == 0]
        if multi:
            fitting = multi
    aligned = [bt for bt in fitting if (bt * N) % 128 == 0]
    pool = aligned or fitting
    # fewest grid steps, then least padded work, then largest tile.
    return min(pool, key=lambda bt: (-(-B // bt), (-(-B // bt)) * bt, -bt))


def gcn_forward(x, A, mask, params, *, matmul_dtype=jnp.float32,
                batch_tile=None, num_cores=1):
    """x:[B,N,F0] f32, A:[B,N,N] f32, mask:[B,N] or [B,N,1] f32.

    num_cores: leave at 1 on single-TC chips (v5e/v6e) so the grid collapses to
    one step; set to 2 on v7x to keep >= 2 batch tiles and shard them across
    both TensorCores via CORE_PARALLEL.
    """
    if mask.ndim == 2:
        mask = mask[:, :, None]
    B, N, F0 = x.shape
    W0, b0, W1, b1, W2, b2, Wfc, bfc = params
    F1, F2, F3 = W0.shape[1], W1.shape[1], W2.shape[1]
    O = Wfc.shape[1]

    vmem_budget, vmem_limit = _vmem_limits()
    mm_itemsize = jnp.finfo(matmul_dtype).bits // 8
    if batch_tile is None:
        batch_tile = _pick_batch_tile(B, N, F0, max(F1, F2, F3),
                                      mm_itemsize=mm_itemsize,
                                      vmem_budget_bytes=vmem_budget,
                                      num_cores=num_cores)
    bt = batch_tile
    num_tiles = -(-B // bt)

    # Pad awkward / prime B up to the tile (padded graphs: empty adjacency and
    # zero mask; block-diagonal mixing keeps batches independent; rows sliced off).
    B_pad = num_tiles * bt
    if B_pad != B:
        pad = B_pad - B
        x = jnp.pad(x, ((0, pad), (0, 0), (0, 0)))
        A = jnp.pad(A, ((0, pad), (0, 0), (0, 0)))
        mask = jnp.pad(mask, ((0, pad), (0, 0), (0, 0)))

    eye_n = jnp.eye(N, dtype=x.dtype)                      # shared, built once
    eye_bt = jnp.eye(bt, dtype=x.dtype)                    # block-diag selector

    # Cast weights once here; biases stay f32 (added to f32 accumulators).
    W0, W1, W2, Wfc = (w.astype(matmul_dtype) for w in (W0, W1, W2, Wfc))

    def tiled(shape):   # block the leading (batch) axis only
        nd = len(shape)
        return pl.BlockSpec((bt,) + tuple(shape[1:]),
                            lambda t, _nd=nd: (t,) + (0,) * (_nd - 1))

    def shared(shape):  # whole array resident every step
        nd = len(shape)
        return pl.BlockSpec(tuple(shape), lambda t, _nd=nd: (0,) * _nd)

    grid_spec = pltpu.PrefetchScalarGridSpec(
        num_scalar_prefetch=0,
        grid=(num_tiles,),
        in_specs=[
            shared((N, N)),                                # eye_n
            shared((bt, bt)),                              # eye_bt
            tiled((B_pad, N, F0)),                         # x
            tiled((B_pad, N, N)),                          # A
            tiled((B_pad, N, 1)),                          # mask
            shared((F0, F1)), shared((1, F1)),             # layer 0
            shared((F1, F2)), shared((1, F2)),             # layer 1
            shared((F2, F3)), shared((1, F3)),             # layer 2
            shared((F3, O)), shared((1, O)),               # final fc
        ],
        # 3-D output so the block's last two dims equal the array's last two.
        out_specs=pl.BlockSpec((1, bt, O), lambda t: (t, 0, 0)),
    )

    if num_tiles == 1:
        dims = ("arbitrary",)
    elif num_cores >= 2:
        dims = (pltpu.CORE_PARALLEL,)   # actually shards batch tiles over v7x TCs
    else:
        dims = ("parallel",)

    out = pl.pallas_call(
        functools.partial(gcn_kernel, matmul_dtype=matmul_dtype),
        out_shape=jax.ShapeDtypeStruct((num_tiles, bt, O), jnp.float32),
        grid_spec=grid_spec,
        compiler_params=pltpu.CompilerParams(
            dimension_semantics=dims,
            vmem_limit_bytes=vmem_limit,
        ),
    )(eye_n, eye_bt, x, A, mask, W0, b0, W1, b1, W2, b2, Wfc, bfc)
    return out.reshape(B_pad, O)[:B]


def gcn_reference(x, A, mask, params):
    """Plain-JAX reference mirroring the PyTorch forward (eval mode)."""
    if mask.ndim == 2:
        mask = mask[:, :, None]
    W0, b0, W1, b1, W2, b2, Wfc, bfc = params
    B, N, _ = x.shape
    A_hat = A + jnp.eye(N, dtype=A.dtype)[None]
    d = (jnp.sum(A_hat, axis=1) + 1e-5) ** -0.5            # == torch.sum(A_hat, 1)
    L = d[:, :, None] * A_hat * d[:, None, :]
    h = x
    for W, b in ((W0, b0), (W1, b1), (W2, b2)):
        h = jnp.einsum('bij,bjf->bif', L, h)
        h = h @ W + b
        h = jnp.maximum(h * mask, 0.0)
    pooled = jnp.max(h, axis=1)
    return pooled @ Wfc + bfc


if __name__ == "__main__":
    B, N = 8, 16
    in_features, out_features = 8, 4
    filters = [32, 32, 32]

    key = jax.random.PRNGKey(0)
    keys = jax.random.split(key, 12)

    # Deterministic synthetic parameters (PyTorch Linear, pre-transposed).
    W0 = jax.random.normal(keys[0], (in_features, filters[0]), jnp.float32) * 0.1
    b0 = jax.random.normal(keys[1], (1, filters[0]), jnp.float32) * 0.1
    W1 = jax.random.normal(keys[2], (filters[0], filters[1]), jnp.float32) * 0.1
    b1 = jax.random.normal(keys[3], (1, filters[1]), jnp.float32) * 0.1
    W2 = jax.random.normal(keys[4], (filters[1], filters[2]), jnp.float32) * 0.1
    b2 = jax.random.normal(keys[5], (1, filters[2]), jnp.float32) * 0.1
    Wfc = jax.random.normal(keys[6], (filters[2], out_features), jnp.float32) * 0.1
    bfc = jax.random.normal(keys[7], (1, out_features), jnp.float32) * 0.1
    params = (W0, b0, W1, b1, W2, b2, Wfc, bfc)

    # Deterministic inputs: node features, symmetric 0/1 adjacency, node mask.
    x = jax.random.normal(keys[8], (B, N, in_features), jnp.float32)
    a_rand = jax.random.uniform(keys[9], (B, N, N))
    A = (a_rand < 0.3).astype(jnp.float32)
    A = jnp.maximum(A, jnp.swapaxes(A, 1, 2))              # symmetrize
    mask = (jax.random.uniform(keys[10], (B, N)) < 0.85).astype(jnp.float32)

    ref = gcn_reference(x, A, mask, params)

    # f32 path (exact check): bt=8 -> single grid step, one 128x128 L_bd.
    out = jax.block_until_ready(gcn_forward(x, A, mask, params))
    assert out.shape == (B, out_features)
    assert jnp.allclose(out, ref, atol=1e-4, rtol=1e-4), (out, ref)

    # bf16 MXU operands (f32 accumulation) — loose check (documented re-rounding).
    out_bf16 = jax.block_until_ready(
        gcn_forward(x, A, mask, params, matmul_dtype=jnp.bfloat16))
    assert jnp.allclose(out_bf16, ref, atol=1e-1, rtol=1e-1), (out_bf16, ref)

    print("KERNEL_OK")
</pallas_src>

<mosaic_0001>
module attributes {stable_mosaic.version = 11 : i64} {
  func.func @gcn_kernel(%arg0: i32, %arg1: memref<16x16xf32, #tpu.memory_space<vmem>>, %arg2: memref<8x8xf32, #tpu.memory_space<vmem>>, %arg3: memref<8x16x8xf32, #tpu.memory_space<vmem>>, %arg4: memref<8x16x16xf32, #tpu.memory_space<vmem>>, %arg5: memref<8x16x1xf32, #tpu.memory_space<vmem>>, %arg6: memref<8x32xf32, #tpu.memory_space<vmem>>, %arg7: memref<1x32xf32, #tpu.memory_space<vmem>>, %arg8: memref<32x32xf32, #tpu.memory_space<vmem>>, %arg9: memref<1x32xf32, #tpu.memory_space<vmem>>, %arg10: memref<32x32xf32, #tpu.memory_space<vmem>>, %arg11: memref<1x32xf32, #tpu.memory_space<vmem>>, %arg12: memref<32x4xf32, #tpu.memory_space<vmem>>, %arg13: memref<1x4xf32, #tpu.memory_space<vmem>>, %arg14: memref<1x8x4xf32, #tpu.memory_space<vmem>>) attributes {dimension_semantics = [#tpu.dimension_semantics<arbitrary>], iteration_bounds = array<i64: 1>, scalar_prefetch = 0 : i64, scratch_operands = 0 : i64, tpu.core_type = #tpu.core_type<tc>, window_params = [{pipeline_mode = #tpu.pipeline_mode<synchronous>, transform_indices = @transform_0, window_bounds = array<i64: 16, 16>}, {pipeline_mode = #tpu.pipeline_mode<synchronous>, transform_indices = @transform_1, window_bounds = array<i64: 8, 8>}, {transform_indices = @transform_2, window_bounds = array<i64: 8, 16, 8>}, {transform_indices = @transform_3, window_bounds = array<i64: 8, 16, 16>}, {transform_indices = @transform_4, window_bounds = array<i64: 8, 16, 1>}, {pipeline_mode = #tpu.pipeline_mode<synchronous>, transform_indices = @transform_5, window_bounds = array<i64: 8, 32>}, {pipeline_mode = #tpu.pipeline_mode<synchronous>, transform_indices = @transform_6, window_bounds = array<i64: 1, 32>}, {pipeline_mode = #tpu.pipeline_mode<synchronous>, transform_indices = @transform_7, window_bounds = array<i64: 32, 32>}, {pipeline_mode = #tpu.pipeline_mode<synchronous>, transform_indices = @transform_8, window_bounds = array<i64: 1, 32>}, {pipeline_mode = #tpu.pipeline_mode<synchronous>, transform_indices = @transform_9, window_bounds = array<i64: 32, 32>}, {pipeline_mode = #tpu.pipeline_mode<synchronous>, transform_indices = @transform_10, window_bounds = array<i64: 1, 32>}, {pipeline_mode = #tpu.pipeline_mode<synchronous>, transform_indices = @transform_11, window_bounds = array<i64: 32, 4>}, {pipeline_mode = #tpu.pipeline_mode<synchronous>, transform_indices = @transform_12, window_bounds = array<i64: 1, 4>}, {transform_indices = @transform_13, window_bounds = array<i64: 1, 8, 4>}]} {
    %c0 = arith.constant 0 : index
    %c0_0 = arith.constant 0 : index
    %c0_1 = arith.constant 0 : index
    %0 = vector.load %arg4[%c0, %c0_0, %c0_1] : memref<8x16x16xf32, #tpu.memory_space<vmem>>, vector<8x16x16xf32>
    %c0_2 = arith.constant 0 : index
    %c0_3 = arith.constant 0 : index
    %1 = vector.load %arg1[%c0_2, %c0_3] : memref<16x16xf32, #tpu.memory_space<vmem>>, vector<16x16xf32>
    %2 = vector.shape_cast %1 : vector<16x16xf32> to vector<1x16x16xf32>
    %3 = vector.broadcast %2 : vector<1x16x16xf32> to vector<8x16x16xf32>
    %4 = arith.addf %0, %3 : vector<8x16x16xf32>
    %cst = arith.constant dense<0.000000e+00> : vector<8x16xf32>
    %5 = vector.multi_reduction <add>, %4, %cst [1] : vector<8x16x16xf32> to vector<8x16xf32>
    %cst_4 = arith.constant 9.99999974E-6 : f32
    %6 = vector.broadcast %cst_4 : f32 to vector<8x16xf32>
    %7 = arith.addf %5, %6 : vector<8x16xf32>
    %8 = math.rsqrt %7 : vector<8x16xf32>
    %9 = vector.shape_cast %8 : vector<8x16xf32> to vector<8x16x1xf32>
    %10 = vector.broadcast %9 : vector<8x16x1xf32> to vector<8x16x16xf32>
    %11 = arith.mulf %10, %4 : vector<8x16x16xf32>
    %12 = vector.shape_cast %8 : vector<8x16xf32> to vector<8x1x16xf32>
    %13 = vector.broadcast %12 : vector<8x1x16xf32> to vector<8x16x16xf32>
    %14 = arith.mulf %11, %13 : vector<8x16x16xf32>
    %c0_5 = arith.constant 0 : index
    %c0_6 = arith.constant 0 : index
    %15 = vector.load %arg2[%c0_5, %c0_6] : memref<8x8xf32, #tpu.memory_space<vmem>>, vector<8x8xf32>
    %16 = vector.shape_cast %15 : vector<8x8xf32> to vector<8x1x8x1xf32>
    %17 = vector.shape_cast %14 : vector<8x16x16xf32> to vector<8x16x1x16xf32>
    %18 = vector.broadcast %16 : vector<8x1x8x1xf32> to vector<8x16x8x16xf32>
    %19 = vector.broadcast %17 : vector<8x16x1x16xf32> to vector<8x16x8x16xf32>
    %20 = arith.mulf %18, %19 : vector<8x16x8x16xf32>
    %21 = vector.shape_cast %20 : vector<8x16x8x16xf32> to vector<128x128xf32>
    %c0_7 = arith.constant 0 : index
    %c0_8 = arith.constant 0 : index
    %c0_9 = arith.constant 0 : index
    %22 = vector.load %arg5[%c0_7, %c0_8, %c0_9] : memref<8x16x1xf32, #tpu.memory_space<vmem>>, vector<8x16x1xf32>
    %23 = vector.shape_cast %22 : vector<8x16x1xf32> to vector<128x1xf32>
    %c0_10 = arith.constant 0 : index
    %c0_11 = arith.constant 0 : index
    %c0_12 = arith.constant 0 : index
    %24 = vector.load %arg3[%c0_10, %c0_11, %c0_12] : memref<8x16x8xf32, #tpu.memory_space<vmem>>, vector<8x16x8xf32>
    %25 = vector.shape_cast %24 : vector<8x16x8xf32> to vector<128x8xf32>
    %c0_13 = arith.constant 0 : index
    %c0_14 = arith.constant 0 : index
    %26 = vector.load %arg6[%c0_13, %c0_14] : memref<8x32xf32, #tpu.memory_space<vmem>>, vector<8x32xf32>
    %cst_15 = arith.constant dense<0.000000e+00> : vector<128x32xf32>
    %27 = tpu.matmul %25, %26, %cst_15 {dimension_numbers = #tpu.dot_dimension_numbers<[1], [0], [0], [1], [0, 0, 1, 1], [], []>} : vector<128x8xf32>, vector<8x32xf32>, vector<128x32xf32> -> vector<128x32xf32>
    %cst_16 = arith.constant dense<0.000000e+00> : vector<128x32xf32>
    %28 = tpu.matmul %21, %27, %cst_16 {dimension_numbers = #tpu.dot_dimension_numbers<[1], [0], [0], [1], [0, 0, 1, 1], [], []>} : vector<128x128xf32>, vector<128x32xf32>, vector<128x32xf32> -> vector<128x32xf32>
    %c0_17 = arith.constant 0 : index
    %c0_18 = arith.constant 0 : index
    %29 = vector.load %arg7[%c0_17, %c0_18] : memref<1x32xf32, #tpu.memory_space<vmem>>, vector<1x32xf32>
    %30 = vector.broadcast %29 : vector<1x32xf32> to vector<128x32xf32>
    %31 = arith.addf %28, %30 : vector<128x32xf32>
    %32 = vector.broadcast %23 : vector<128x1xf32> to vector<128x32xf32>
    %33 = arith.mulf %31, %32 : vector<128x32xf32>
    %cst_19 = arith.constant 0.000000e+00 : f32
    %34 = vector.broadcast %cst_19 : f32 to vector<128x32xf32>
    %35 = arith.maximumf %33, %34 : vector<128x32xf32>
    %c0_20 = arith.constant 0 : index
    %c0_21 = arith.constant 0 : index
    %36 = vector.load %arg8[%c0_20, %c0_21] : memref<32x32xf32, #tpu.memory_space<vmem>>, vector<32x32xf32>
    %cst_22 = arith.constant dense<0.000000e+00> : vector<128x32xf32>
    %37 = tpu.matmul %35, %36, %cst_22 {dimension_numbers = #tpu.dot_dimension_numbers<[1], [0], [0], [1], [0, 0, 1, 1], [], []>} : vector<128x32xf32>, vector<32x32xf32>, vector<128x32xf32> -> vector<128x32xf32>
    %cst_23 = arith.constant dense<0.000000e+00> : vector<128x32xf32>
    %38 = tpu.matmul %21, %37, %cst_23 {dimension_numbers = #tpu.dot_dimension_numbers<[1], [0], [0], [1], [0, 0, 1, 1], [], []>} : vector<128x128xf32>, vector<128x32xf32>, vector<128x32xf32> -> vector<128x32xf32>
    %c0_24 = arith.constant 0 : index
    %c0_25 = arith.constant 0 : index
    %39 = vector.load %arg9[%c0_24, %c0_25] : memref<1x32xf32, #tpu.memory_space<vmem>>, vector<1x32xf32>
    %40 = vector.broadcast %39 : vector<1x32xf32> to vector<128x32xf32>
    %41 = arith.addf %38, %40 : vector<128x32xf32>
    %42 = vector.broadcast %23 : vector<128x1xf32> to vector<128x32xf32>
    %43 = arith.mulf %41, %42 : vector<128x32xf32>
    %cst_26 = arith.constant 0.000000e+00 : f32
    %44 = vector.broadcast %cst_26 : f32 to vector<128x32xf32>
    %45 = arith.maximumf %43, %44 : vector<128x32xf32>
    %c0_27 = arith.constant 0 : index
    %c0_28 = arith.constant 0 : index
    %46 = vector.load %arg10[%c0_27, %c0_28] : memref<32x32xf32, #tpu.memory_space<vmem>>, vector<32x32xf32>
    %cst_29 = arith.constant dense<0.000000e+00> : vector<128x32xf32>
    %47 = tpu.matmul %45, %46, %cst_29 {dimension_numbers = #tpu.dot_dimension_numbers<[1], [0], [0], [1], [0, 0, 1, 1], [], []>} : vector<128x32xf32>, vector<32x32xf32>, vector<128x32xf32> -> vector<128x32xf32>
    %cst_30 = arith.constant dense<0.000000e+00> : vector<128x32xf32>
    %48 = tpu.matmul %21, %47, %cst_30 {dimension_numbers = #tpu.dot_dimension_numbers<[1], [0], [0], [1], [0, 0, 1, 1], [], []>} : vector<128x128xf32>, vector<128x32xf32>, vector<128x32xf32> -> vector<128x32xf32>
    %c0_31 = arith.constant 0 : index
    %c0_32 = arith.constant 0 : index
    %49 = vector.load %arg11[%c0_31, %c0_32] : memref<1x32xf32, #tpu.memory_space<vmem>>, vector<1x32xf32>
    %50 = vector.broadcast %49 : vector<1x32xf32> to vector<128x32xf32>
    %51 = arith.addf %48, %50 : vector<128x32xf32>
    %52 = vector.broadcast %23 : vector<128x1xf32> to vector<128x32xf32>
    %53 = arith.mulf %51, %52 : vector<128x32xf32>
    %cst_33 = arith.constant 0.000000e+00 : f32
    %54 = vector.broadcast %cst_33 : f32 to vector<128x32xf32>
    %55 = arith.maximumf %53, %54 : vector<128x32xf32>
    %56 = vector.shape_cast %55 : vector<128x32xf32> to vector<8x16x32xf32>
    %cst_34 = arith.constant dense<0xFF800000> : vector<8x32xf32>
    %57 = vector.multi_reduction <maximumf>, %56, %cst_34 [1] : vector<8x16x32xf32> to vector<8x32xf32>
    %c0_35 = arith.constant 0 : index
    %c0_36 = arith.constant 0 : index
    %58 = vector.load %arg12[%c0_35, %c0_36] : memref<32x4xf32, #tpu.memory_space<vmem>>, vector<32x4xf32>
    %cst_37 = arith.constant dense<0.000000e+00> : vector<8x4xf32>
    %59 = tpu.matmul %57, %58, %cst_37 {dimension_numbers = #tpu.dot_dimension_numbers<[1], [0], [0], [1], [0, 0, 1, 1], [], []>} : vector<8x32xf32>, vector<32x4xf32>, vector<8x4xf32> -> vector<8x4xf32>
    %c0_38 = arith.constant 0 : index
    %c0_39 = arith.constant 0 : index
    %60 = vector.load %arg13[%c0_38, %c0_39] : memref<1x4xf32, #tpu.memory_space<vmem>>, vector<1x4xf32>
    %61 = vector.broadcast %60 : vector<1x4xf32> to vector<8x4xf32>
    %62 = arith.addf %59, %61 : vector<8x4xf32>
    %c0_40 = arith.constant 0 : index
    %c0_41 = arith.constant 0 : index
    %c0_42 = arith.constant 0 : index
    %63 = vector.load %arg14[%c0_40, %c0_41, %c0_42] : memref<1x8x4xf32, #tpu.memory_space<vmem>>, vector<1x8x4xf32>
    %64 = vector.shape_cast %63 : vector<1x8x4xf32> to vector<8x4xf32>
    %65 = vector.shape_cast %62 : vector<8x4xf32> to vector<1x8x4xf32>
    tpu.vector_store %arg14[%c0_40, %c0_41, %c0_42], %65 {strides = array<i32>} : memref<1x8x4xf32, #tpu.memory_space<vmem>>, vector<1x8x4xf32>,
    return
  }
  func.func @transform_0(%arg0: i32) -> (i32, i32) {
    %c0_i32 = arith.constant 0 : i32
    %c0_i32_0 = arith.constant 0 : i32
    %c0_i32_1 = arith.constant 0 : i32
    return %c0_i32, %c0_i32_0 : i32, i32
  }
  func.func @transform_1(%arg0: i32) -> (i32, i32) {
    %c0_i32 = arith.constant 0 : i32
    %c0_i32_0 = arith.constant 0 : i32
    %c0_i32_1 = arith.constant 0 : i32
    return %c0_i32, %c0_i32_0 : i32, i32
  }
  func.func @transform_2(%arg0: i32) -> (i32, i32, i32) {
    %c0_i32 = arith.constant 0 : i32
    %c0_i32_0 = arith.constant 0 : i32
    %c0_i32_1 = arith.constant 0 : i32
    return %arg0, %c0_i32, %c0_i32_0 : i32, i32, i32
  }
  func.func @transform_3(%arg0: i32) -> (i32, i32, i32) {
    %c0_i32 = arith.constant 0 : i32
    %c0_i32_0 = arith.constant 0 : i32
    %c0_i32_1 = arith.constant 0 : i32
    return %arg0, %c0_i32, %c0_i32_0 : i32, i32, i32
  }
  func.func @transform_4(%arg0: i32) -> (i32, i32, i32) {
    %c0_i32 = arith.constant 0 : i32
    %c0_i32_0 = arith.constant 0 : i32
    %c0_i32_1 = arith.constant 0 : i32
    return %arg0, %c0_i32, %c0_i32_0 : i32, i32, i32
  }
  func.func @transform_5(%arg0: i32) -> (i32, i32) {
    %c0_i32 = arith.constant 0 : i32
    %c0_i32_0 = arith.constant 0 : i32
    %c0_i32_1 = arith.constant 0 : i32
    return %c0_i32, %c0_i32_0 : i32, i32
  }
  func.func @transform_6(%arg0: i32) -> (i32, i32) {
    %c0_i32 = arith.constant 0 : i32
    %c0_i32_0 = arith.constant 0 : i32
    %c0_i32_1 = arith.constant 0 : i32
    return %c0_i32, %c0_i32_0 : i32, i32
  }
  func.func @transform_7(%arg0: i32) -> (i32, i32) {
    %c0_i32 = arith.constant 0 : i32
    %c0_i32_0 = arith.constant 0 : i32
    %c0_i32_1 = arith.constant 0 : i32
    return %c0_i32, %c0_i32_0 : i32, i32
  }
  func.func @transform_8(%arg0: i32) -> (i32, i32) {
    %c0_i32 = arith.constant 0 : i32
    %c0_i32_0 = arith.constant 0 : i32
    %c0_i32_1 = arith.constant 0 : i32
    return %c0_i32, %c0_i32_0 : i32, i32
  }
  func.func @transform_9(%arg0: i32) -> (i32, i32) {
    %c0_i32 = arith.constant 0 : i32
    %c0_i32_0 = arith.constant 0 : i32
    %c0_i32_1 = arith.constant 0 : i32
    return %c0_i32, %c0_i32_0 : i32, i32
  }
  func.func @transform_10(%arg0: i32) -> (i32, i32) {
    %c0_i32 = arith.constant 0 : i32
    %c0_i32_0 = arith.constant 0 : i32
    %c0_i32_1 = arith.constant 0 : i32
    return %c0_i32, %c0_i32_0 : i32, i32
  }
  func.func @transform_11(%arg0: i32) -> (i32, i32) {
    %c0_i32 = arith.constant 0 : i32
    %c0_i32_0 = arith.constant 0 : i32
    %c0_i32_1 = arith.constant 0 : i32
    return %c0_i32, %c0_i32_0 : i32, i32
  }
  func.func @transform_12(%arg0: i32) -> (i32, i32) {
    %c0_i32 = arith.constant 0 : i32
    %c0_i32_0 = arith.constant 0 : i32
    %c0_i32_1 = arith.constant 0 : i32
    return %c0_i32, %c0_i32_0 : i32, i32
  }
  func.func @transform_13(%arg0: i32) -> (i32, i32, i32) {
    %c0_i32 = arith.constant 0 : i32
    %c0_i32_0 = arith.constant 0 : i32
    %c0_i32_1 = arith.constant 0 : i32
    return %arg0, %c0_i32, %c0_i32_0 : i32, i32, i32
  }
}

</mosaic_0001>

<bundles_post_ra>
// kernel: tpu_custom_call.1
= control target key start
LH: loop header
LB: loop body
LE: loop exit
PB: predicated region body
PF: predicated region fallthrough
CT: control target
= control target key end

     0   :  { %v256_v0 = vlaneseq  ;;  %vm78_vm0 = vcmask 130048   ;;  %vm4655_vm1 = vcmask 64512   ;;  %s6988_s20 = smov 16   ;;  %s6990_s21 = smov 64   ;;  %vm4520_vm2 = vcmask 261120   ;;  %s10056_s1 = inlined_call_operand.vmem [shape: f32[8,8], index: 1, kind: input, shape index: {}]   ;;  %s10057_s0 = inlined_call_operand.vmem [shape: f32[16,16], index: 0, kind: input, shape index: {}]   ;;  %s10058_s3 = inlined_call_operand.vmem [shape: f32[8,16,16], index: 3, kind: input, shape index: {}]   ;;  %s10059_s5 = inlined_call_operand.vmem [shape: f32[8,32], index: 5, kind: input, shape index: {}]   ;;  %s10060_s2 = inlined_call_operand.vmem [shape: f32[8,16,8], index: 2, kind: input, shape index: {}]   ;;  %s10061_s4 = inlined_call_operand.vmem [shape: f32[8,16,1], index: 4, kind: input, shape index: {}]   ;;  %s10062_s7 = inlined_call_operand.vmem [shape: f32[32,32], index: 7, kind: input, shape index: {}]   ;;  %s10063_s6 = inlined_call_operand.vmem [shape: f32[1,32], index: 6, kind: input, shape index: {}]   ;;  %s10064_s9 = inlined_call_operand.vmem [shape: f32[32,32], index: 9, kind: input, shape index: {}]   ;;  %s10065_s8 = inlined_call_operand.vmem [shape: f32[1,32], index: 8, kind: input, shape index: {}]   ;;  %s10066_s11 = inlined_call_operand.vmem [shape: f32[32,4], index: 11, kind: input, shape index: {}]   ;;  %s10067_s10 = inlined_call_operand.vmem [shape: f32[1,32], index: 10, kind: input, shape index: {}]   ;;  %s10068_s12 = inlined_call_operand.vmem [shape: f32[1,4], index: 12, kind: input, shape index: {}]   ;;  %s10069_s13 = inlined_call_operand.vmem [shape: f32[1,8,4], index: 13, kind: output, shape index: {}]  }
   0x1   :  { %v46_v1 = vld [vmem:[%s10058_s3 + $0x10] sm:$0xff]  ;;  %v47_v2 = vld [vmem:[%s10058_s3 + $0x18] sm:$0xff]  ;;  %v7079_v4 = vld [vmem:[%s10057_s0] sm:$0xff]  ;;  %s6992_s22 = smov 96   ;;  %vm4537_vm3 = vcmask 392192   ;;  %vm4554_vm4 = vcmask 523264  }
   0x2   :  { %v7074_v3 = vshrl.u32 %v256_v0, 7  ;;  %v7084_v5 = vld [vmem:[%s10057_s0 + $0x8] sm:$0xff]  ;;  %v44_v6 = vld [vmem:[%s10058_s3] sm:$0xff]  ;;  %v7095_v8 = vadd.f32 %v7079_v4, %v46_v1  ;;  %v50_v18 = vld [vmem:[%s10058_s3 + $0x30] sm:$0xff]  ;;  %s6991_s0 = smov 80   ;;  %vm4571_vm5 = vcmask 654336  }
   0x3   :  { %v7092_v7 = vld [vmem:[%s10056_s1] sm:$0xff]  ;;  %v7098_v9 = vadd.f32 %v7084_v5, %v47_v2  ;;  %v45_v10 = vld [vmem:[%s10058_s3 + $0x8] sm:$0xff]  ;;  %v7104_v11 = vadd.f32 %v7079_v4, %v44_v6  ;;  %v51_v19 = vld [vmem:[%s10058_s3 + $0x38] sm:$0xff]  ;;  %v7165_v37 = vadd.f32 %v7079_v4, %v50_v18  ;;  %s6993_s1 = smov 112   ;;  %vm4588_vm6 = vcmask 785408  }
   0x4   :  { %v48_v12 = vld [vmem:[%s10058_s3 + $0x20] sm:$0xff]  ;;  %v7110_v13 = vsub.s32 0, %v7074_v3  ;;  %v265_v14 = vsub.s32 1, %v7074_v3  ;;  %v272_v15 = vsub.s32 2, %v7074_v3  ;;  %v7115_v16 = vadd.f32 %v7084_v5, %v45_v10  ;;  %v49_v17 = vld [vmem:[%s10058_s3 + $0x28] sm:$0xff]  ;;  %v4640_v38 = vld [vmem:[%s10060_s2 + $0x10] sm:$0xff] }
   0x5   :  { %v88_v20 = vsel %vm78_vm0, %v7095_v8, 0.0  ;;  %v89_v21 = vsel %vm78_vm0, %v7098_v9, 0.0  ;;  %v79_v22 = vsel %vm78_vm0, %v7104_v11, 0.0  ;;  %v7133_v23 = vadd.f32 %v7079_v4, %v48_v12  ;;  %v52_v24 = vld [vmem:[%s10058_s3 + $0x40] sm:$0xff]  ;;  %v53_v31 = vld [vmem:[%s10058_s3 + $0x48] sm:$0xff]  ;;  %v4641_v52 = vld [vmem:[%s10060_s2 + $0x18] sm:$0xff] }
   0x6   :  { %v4654_v25 = vld [vmem:[%s10059_s5] sm:$0xff]  ;;  %v259_v27 = vrot.slane %v7092_v7, %v7110_v13  ;;  %v266_v28 = vrot.slane %v7092_v7, %v265_v14  ;;  %v273_v29 = vrot.slane %v7092_v7, %v272_v15  ;;  %v90_v30 = vadd.f32 %v89_v21, %v88_v20  ;;  %v4639_v32 = vld [vmem:[%s10060_s2 + $0x8] sm:$0xff]  ;;  %v54_v14 = vld [vmem:[%s10058_s3 + $0x50] sm:$0xff]  ;;  %s6989_s5 = smov 48  }
   0x7   :  { %v4638_v26 = vld [vmem:[%s10060_s2] sm:$0xff]  ;;  %6269 = vmatprep.subr.mxu0 %v4654_v25  ;;  %v80_v34 = vsel %vm78_vm0, %v7115_v16, 0.0  ;;  %v7160_v35 = vadd.f32 %v7084_v5, %v49_v17  ;;  %v97_v36 = vsel %vm78_vm0, %v7133_v23, 0.0  ;;  %v7172_v41 = vadd.f32 %v7084_v5, %v51_v19  ;;  %v57_v43 = vld [vmem:[%s10058_s3 + $0x68] sm:$0xff]  ;;  %v4644_v18 = vld [vmem:[%s10060_s2 + $0x30] sm:$0xff] }
   0x8   :  { %v56_v33 = vld [vmem:[%s10058_s3 + $0x60] sm:$0xff]  ;;  %6270 = vmatpush3.msra.mxu0 %v4654_v25  ;;  %6271 = vmatprep.mubr.msk.f32.mxu0 %vm4655_vm1, %v4638_v26  ;;  %v91_v39 = vrot.slane %v90_v30, 4  ;;  %v81_v40 = vadd.f32 %v80_v34, %v79_v22  ;;  %v7175_v42 = vadd.f32 %v7079_v4, %v52_v24  ;;  %v106_v45 = vsel %vm78_vm0, %v7165_v37, 0.0  ;;  %v4643_v12 = vld [vmem:[%s10060_s2 + $0x28] sm:$0xff]  ;;  %v55_v24 = vld [vmem:[%s10058_s3 + $0x58] sm:$0xff] }
   0x9   :  { %261 = vbcast.lane.b32.xlu1 %v259_v27, 256  ;;  %268 = vbcast.lane.b32.xlu0 %v266_v28, 256  ;;  %v98_v44 = vsel %vm78_vm0, %v7160_v35, 0.0  ;;  %v7185_v46 = vadd.f32 %v7084_v5, %v53_v31  ;;  %v7189_v47 = vadd.f32 %v7079_v4, %v56_v33  ;;  %v107_v51 = vsel %vm78_vm0, %v7172_v41, 0.0  ;;  %v4642_v57 = vld [vmem:[%s10060_s2 + $0x20] sm:$0xff] }
   0xa   :  { %6272 = vmatmul.mubr.msk.f32.vlgmr.msra.gmra.mrb[0].mxu0 %vm4655_vm1, %v4639_v32  ;;  %v92_v48 = vadd.f32 %v91_v39, %v90_v30  ;;  %v82_v49 = vrot.slane %v81_v40, 4  ;;  %v99_v50 = vadd.f32 %v98_v44, %v97_v36  ;;  %v108_v53 = vadd.f32 %v107_v51, %v106_v45  ;;  %v4645_v32 = vld [vmem:[%s10060_s2 + $0x38] sm:$0xff]  ;;  %v4646_v34 = vld [vmem:[%s10060_s2 + $0x40] sm:$0xff] }
   0xb   :  { %6274 = vmatprep.mubr.msk.f32.mxu0 %vm4655_vm1, %v4640_v38  ;;  %v115_v54 = vsel %vm78_vm0, %v7175_v42, 0.0  ;;  %v116_v55 = vsel %vm78_vm0, %v7185_v46, 0.0  ;;  %v7202_v56 = vadd.f32 %v7084_v5, %v57_v43  ;;  %v133_v63 = vsel %vm78_vm0, %v7189_v47, 0.0 }
   0xc   :  { %v93_v58 = vrot.slane %v92_v48, 2  ;;  %v83_v59 = vadd.f32 %v82_v49, %v81_v40  ;;  %v100_v60 = vrot.slane %v99_v50, 4  ;;  %v117_v61 = vadd.f32 %v116_v55, %v115_v54  ;;  %v58_v49 = vld [vmem:[%s10058_s3 + $0x70] sm:$0xff]  ;;  %v59_v54 = vld [vmem:[%s10058_s3 + $0x78] sm:$0xff] }
   0xd   :  { %275 = vbcast.lane.b32.xlu1 %v273_v29, 256  ;;  %v109_v62 = vrot.slane %v108_v53, 4  ;;  %v134_v0 = vsel %vm78_vm0, %v7202_v56, 0.0  ;;  %v7227_v27 = vadd.f32 %v7079_v4, %v54_v14  ;;  %v7237_v36 = vadd.f32 %v7084_v5, %v55_v24 }
   0xe   :  { %6275 = vmatmul.mubr.msk.f32.gmra.mrb[2].mxu0 %vm4655_vm1, %v4641_v52  ;;  %v94_v1 = vadd.f32 %v93_v58, %v92_v48  ;;  %v84_v2 = vrot.slane %v83_v59, 2  ;;  %v101_v6 = vadd.f32 %v100_v60, %v99_v50  ;;  %v118_v10 = vrot.slane %v117_v61, 4 }
   0xf   :  { %6277 = vmatprep.mubr.msk.f32.mxu0 %vm4655_vm1, %v4642_v57  ;;  %v110_v15 = vadd.f32 %v109_v62, %v108_v53  ;;  %v135_v17 = vadd.f32 %v134_v0, %v133_v63  ;;  %10152 = vst [vmem:[#allocation2_spill] sm:$0xff] %v7227_v27  ;;  %10153 = vst [vmem:[#allocation3_spill] sm:$0xff] %v7237_v36  ;;  %v124_v43 = vsel %vm78_vm0, %v7227_v27, 0.0  ;;  %v125_v48 = vsel %vm78_vm0, %v7237_v36, 0.0  ;;  %v4647_v53 = vld [vmem:[%s10060_s2 + $0x48] sm:$0xff]  ;;  %v4648_v57 = vld [vmem:[%s10060_s2 + $0x50] sm:$0xff] }
  0x10   :  { %v95_v19 = vrot.slane %v94_v1, 1  ;;  %v85_v20 = vadd.f32 %v84_v2, %v83_v59  ;;  %v102_v21 = vrot.slane %v101_v6, 2  ;;  %v119_v22 = vadd.f32 %v118_v10, %v117_v61 }
  0x11   :  { %v111_v25 = vrot.slane %v110_v15, 2  ;;  %v136_v26 = vrot.slane %v135_v17, 4  ;;  %v126_v55 = vadd.f32 %v125_v48, %v124_v43  ;;  %v7258_v59 = vadd.f32 %v7079_v4, %v58_v49 }
  0x12   :  { %6278 = vmatmul.mubr.msk.f32.gmra.mrb[4].mxu0 %vm4655_vm1, %v4643_v12  ;;  %v96_v28 = vadd.f32 %v95_v19, %v94_v1  ;;  %v86_v29 = vrot.slane %v85_v20, 1  ;;  %v103_v30 = vadd.f32 %v102_v21, %v101_v6  ;;  %v120_v31 = vrot.slane %v119_v22, 2  ;;  %v4649_v1 = vld [vmem:[%s10060_s2 + $0x58] sm:$0xff]  ;;  %v4650_v6 = vld [vmem:[%s10060_s2 + $0x60] sm:$0xff]  ;;  %v4652_v21 = vld [vmem:[%s10060_s2 + $0x70] sm:$0xff] }
  0x13   :  { %6280 = vmatprep.mubr.msk.f32.mxu0 %vm4655_vm1, %v4644_v18  ;;  %v112_v33 = vadd.f32 %v111_v25, %v110_v15  ;;  %v137_v45 = vadd.f32 %v136_v26, %v135_v17  ;;  %10154 = vst [vmem:[#allocation4_spill] sm:$0xff] %v7258_v59  ;;  %v127_v60 = vrot.slane %v126_v55, 4  ;;  %v7262_v61 = vadd.f32 %v7084_v5, %v59_v54  ;;  %v4651_v18 = vld [vmem:[%s10060_s2 + $0x68] sm:$0xff] }
  0x14   :  { %v152_v38 = vadd.f32 1e-05, %v96_v28  ;;  %v87_v39 = vadd.f32 %v86_v29, %v85_v20  ;;  %v104_v40 = vrot.slane %v103_v30, 1  ;;  %v121_v44 = vadd.f32 %v120_v31, %v119_v22 }
  0x15   :  { %v113_v52 = vrot.slane %v112_v33, 1  ;;  %10155 = vst [vmem:[#allocation5_spill] sm:$0xff] %v7262_v61  ;;  %v138_v0 = vrot.slane %v137_v45, 2  ;;  %v142_v2 = vsel %vm78_vm0, %v7258_v59, 0.0  ;;  %v128_v4 = vadd.f32 %v127_v60, %v126_v55 }
  0x16   :  { %6281 = vmatmul.mubr.msk.f32.gmra.mrb[6].mxu0 %vm4655_vm1, %v4645_v32  ;;  %6968 = vrsqrt.f32 %v152_v38  ;;  %v151_v50 = vadd.f32 1e-05, %v87_v39  ;;  %v105_v51 = vadd.f32 %v104_v40, %v103_v30  ;;  %v122_v63 = vrot.slane %v121_v44, 1  ;;  %v4653_v30 = vld [vmem:[%s10060_s2 + $0x78] sm:$0xff]  ;;  %s6987_s2 = smov 32  }
  0x17   :  { %6283 = vmatprep.mubr.msk.f32.mxu0 %vm4655_vm1, %v4646_v34  ;;  %v114_v62 = vadd.f32 %v113_v52, %v112_v33  ;;  %v143_v5 = vsel %vm78_vm0, %v7262_v61, 0.0  ;;  %v129_v12 = vrot.slane %v128_v4, 2  ;;  %v139_v17 = vadd.f32 %v138_v0, %v137_v45 }
  0x18   :  { %6970 = vrsqrt.f32 %v151_v50  ;;  %v153_v58 = vadd.f32 1e-05, %v105_v51  ;;  %v144_v10 = vadd.f32 %v143_v5, %v142_v2  ;;  %v123_v15 = vadd.f32 %v122_v63, %v121_v44 }
  0x19   :  { %v154_v14 = vadd.f32 1e-05, %v114_v62  ;;  %v130_v20 = vadd.f32 %v129_v12, %v128_v4  ;;  %v140_v29 = vrot.slane %v139_v17, 1  ;;  %v279_v54 = vsub.s32 3, %v7074_v3 }
  0x1a   :  { %6284 = vmatmul.mubr.msk.f32.gmra.mrb[8].mxu0 %vm4655_vm1, %v4647_v53  ;;  %6972 = vrsqrt.f32 %v153_v58  ;;  %v145_v19 = vrot.slane %v144_v10, 4  ;;  %v155_v28 = vadd.f32 1e-05, %v123_v15  ;;  %v293_v53 = vsub.s32 5, %v7074_v3 }
  0x1b   :  { %6286 = vmatprep.mubr.msk.f32.mxu0 %vm4655_vm1, %v4648_v57  ;;  %v131_v25 = vrot.slane %v130_v20, 1  ;;  %6974 = vrsqrt.f32 %v154_v14  ;;  %v141_v39 = vadd.f32 %v140_v29, %v139_v17  ;;  %v307_v57 = vsub.s32 7, %v7074_v3 }
  0x1c   :  { %v146_v24 = vadd.f32 %v145_v19, %v144_v10  ;;  %6976 = vrsqrt.f32 %v155_v28  ;;  %v294_v55 = vrot.slane %v7092_v7, %v293_v53  ;;  %v280_v58 = vrot.slane %v7092_v7, %v279_v54 }
  0x1d   :  { %v132_v32 = vadd.f32 %v131_v25, %v130_v20  ;;  %v157_v44 = vadd.f32 1e-05, %v141_v39  ;;  %v286_v60 = vsub.s32 4, %v7074_v3  ;;  %v308_v62 = vrot.slane %v7092_v7, %v307_v57 }
  0x1e   :  { %6287 = vmatmul.mubr.msk.f32.gmra.mrb[10].mxu0 %vm4655_vm1, %v4649_v1  ;;  %v147_v31 = vrot.slane %v146_v24, 2  ;;  %v300_v0 = vsub.s32 6, %v7074_v3  ;;  %v6984_v4 = vmov 1966171168   ;;  %v6985_v14 = vmov 1983009808  }
  0x1f   :  { %6289 = vmatprep.mubr.msk.f32.mxu0 %vm4655_vm1, %v4650_v6  ;;  %v156_v34 = vadd.f32 1e-05, %v132_v32  ;;  %v287_v63 = vrot.slane %v7092_v7, %v286_v60  ;;  %v330_v6 = vunpack.c.l.s4 %v6984_v4  ;;  %v1883_v15 = vunpack.c.l.s4 %v6985_v14 }
  0x20   :  { %v7283_v22 = vpop.eup %6968  ;;  %v148_v33 = vadd.f32 %v147_v31, %v146_v24  ;;  %v301_v1 = vrot.slane %v7092_v7, %v300_v0  ;;  %vm4605_vm7 = vcmask 916480   ;;  %vm6996_vm8 = vmmov 0  }
  0x21   :  { %175 = vbcast.lane.b32.xlu1 %v7283_v22, 256  ;;  %6978 = vrsqrt.f32 %v156_v34  ;;  %v331_v12 = vunpack.c.0.s8 %v330_v6  ;;  %v1884_v24 = vunpack.c.0.s8 %v1883_v15  ;;  %vm5966_vm9 = vcmask 1041409  }
  0x22   :  { %6290 = vmatmul.mubr.msk.f32.gmra.mrb[12].mxu0 %vm4655_vm1, %v4651_v18  ;;  %v7287_v26 = vpop.eup %6970  ;;  %v149_v40 = vrot.slane %v148_v33, 1  ;;  %v6986_v18 = vmov 1934713408   ;;  %vm5968_vm10 = vcmask 1042434   ;;  %vm5970_vm11 = vcmask 1043459  }
  0x23   :  { %6292 = vmatprep.mubr.msk.f32.mxu0 %vm4655_vm1, %v4652_v21  ;;  %168 = vbcast.lane.b32.xlu0 %v7287_v26, 256  ;;  %v1947_v19 = vunpack.c.l.s4 %v6986_v18  ;;  %v7338_v20 = vsub.s32 %v331_v12, %v7074_v3  ;;  %vm5972_vm12 = vcmask 1044484   ;;  %vm5974_vm13 = vcmask 1045509  }
  0x24   :  { %v7296_v38 = vpop.eup %6972  ;;  %v150_v43 = vadd.f32 %v149_v40, %v148_v33  ;;  %v7347_v40 = vsub.s32 %v1884_v24, %v7074_v3  ;;  %vm5976_vm14 = vcmask 1046534   ;;  %vm5978_vm15 = vcmask 1047559  }
  0x25   :  { %179 = vbcast.lane.b32.xlu1 %v7283_v22, 264  ;;  %v7301_v48 = vpop.eup %6974 }
  0x26   :  { %6293 = vmatmul.mubr.msk.f32.gmra.mrb[14].mxu0 %vm4655_vm1, %v4653_v30  ;;  %v158_v45 = vadd.f32 1e-05, %v150_v43  ;;  %v7305_v49 = vpop.eup %6976  ;;  %v1948_v30 = vunpack.c.0.s8 %v1947_v19 }
  0x27   :  { %172 = vbcast.lane.b32.xlu0 %v7287_v26, 264 }
  0x28   :  { %6980 = vrsqrt.f32 %v158_v45 }
  0x29   :  { %186 = vbcast.lane.b32.xlu1 %v7296_v38, 264  ;;  %6982 = vrsqrt.f32 %v157_v44 }
  0x2b   :  { %182 = vbcast.lane.b32.xlu0 %v7296_v38, 256  ;;  %v7307_v50 = vpop.eup %6978 }
  0x2c   :  { %10156 = vst [vmem:[#allocation6_spill] sm:$0xff] %v7307_v50 }
  0x2d   :  { %193 = vbcast.lane.b32.xlu1 %v7301_v48, 264 }
  0x2f   :  { %189 = vbcast.lane.b32.xlu0 %v7301_v48, 256 }
  0x31   :  { %203 = vbcast.lane.b32.xlu1 %v7307_v50, 256 }
  0x32   :  { %v7312_v51 = vpop.eup %6980 }
  0x33   :  { %196 = vbcast.lane.b32.xlu0 %v7305_v49, 256  ;;  %10157 = vst [vmem:[#allocation7_spill] sm:$0xff] %v7312_v51  ;;  %v7315_v52 = vpop.eup %6982 }
  0x35   :  { %207 = vbcast.lane.b32.xlu1 %v7307_v50, 264 }
  0x37   :  { %200 = vbcast.lane.b32.xlu0 %v7305_v49, 264 }
  0x39   :  { %217 = vbcast.lane.b32.xlu1 %v7312_v51, 256 }
  0x3b   :  { %210 = vbcast.lane.b32.xlu0 %v7315_v52, 256 }
  0x3d   :  { %221 = vbcast.lane.b32.xlu1 %v7312_v51, 264 }
  0x3f   :  { %214 = vbcast.lane.b32.xlu0 %v7315_v52, 264 }
  0x41   :  { %296 = vbcast.lane.b32.xlu1 %v294_v55, 256  ;;  %v7357_v55 = vsub.s32 %v1948_v30, %v7074_v3 }
  0x43   :  { %282 = vbcast.lane.b32.xlu0 %v280_v58, 256 }
  0x45   :  { %310 = vbcast.lane.b32.xlu1 %v308_v62, 256 }
  0x47   :  { %289 = vbcast.lane.b32.xlu0 %v287_v63, 256 }
  0x4b   :  { %303 = vbcast.lane.b32.xlu0 %v301_v1, 256 }
  0x7b   :  { %v7331_v2 = vpop.permute.xlu1 %261  ;;  %v7335_v10 = vpop.permute.xlu0 %268 }
  0x7f   :  { %v7333_v5 = vpop.permute.xlu1 %275 }
  0x93   :  { %v176_v17 = vpop.permute.xlu1 %175 }
  0x94   :  { %v225_v7 = vmul.f32 %v176_v17, %v7095_v8 }
  0x95   :  { %v169_v21 = vpop.permute.xlu0 %168 }
  0x96   :  { %v241_v25 = vmul.f32 %v7283_v22, %v225_v7  ;;  %v223_v28 = vmul.f32 %v169_v21, %v7104_v11 }
  0x97   :  { %v180_v29 = vpop.permute.xlu1 %179 }
  0x98   :  { %v426_v31 = vcombine.high %v241_v25, %v241_v25  ;;  %v433_v32 = vrot.slane %v241_v25, %v7338_v20  ;;  %v239_v33 = vmul.f32 %v7287_v26, %v223_v28  ;;  %v226_v34 = vmul.f32 %v180_v29, %v7098_v9 }
  0x99   :  { %v173_v39 = vpop.permute.xlu0 %172 }
  0x9a   :  { %v440_v8 = vrot.slane %v426_v31, %v7338_v20  ;;  %v441_v43 = vcombine.high %v433_v32, %v433_v32  ;;  %v449_v44 = vrot.slane %v433_v32, %v7338_v20  ;;  %v328_v45 = vcombine.high %v239_v33, %v239_v33 }
  0x9b   :  { %v335_v11 = vrot.slane %v239_v33, %v7338_v20  ;;  %v7353_v53 = vmul.f32 %v7283_v22, %v226_v34  ;;  %v224_v54 = vmul.f32 %v173_v39, %v7115_v16 }
  0x9c   :  { %v442_v9 = vcombine.high %v440_v8, %v440_v8  ;;  %v456_v57 = vrot.slane %v440_v8, %v7338_v20  ;;  %v463_v58 = vrot.slane %v441_v43, %v7338_v20  ;;  %v471_v60 = vcombine.high %v449_v44, %v449_v44 }
  0x9d   :  { %v1179_v62 = vrot.slane %v449_v44, %v7110_v13  ;;  %v342_v63 = vrot.slane %v328_v45, %v7338_v20  ;;  %v343_v0 = vcombine.high %v335_v11, %v335_v11  ;;  %v351_v1 = vrot.slane %v335_v11, %v7338_v20 }
  0x9e   :  { %v470_v22 = vrot.slane %v442_v9, %v7338_v20  ;;  %v472_v4 = vcombine.high %v456_v57, %v456_v57  ;;  %v473_v16 = vcombine.high %v463_v58, %v463_v58  ;;  %v1183_v3 = vrot.slane %v463_v58, %v7110_v13 }
  0x9f   :  { %v1187_v6 = vrot.slane %v471_v60, %v7110_v13  ;;  %v1195_v12 = vrot.slane %v456_v57, %v7110_v13  ;;  %v7369_v14 = vmul.f32 %v1179_v62, %v7335_v10  ;;  %v344_v15 = vcombine.high %v342_v63, %v342_v63 }
  0xa0   :  { %v474_v17 = vcombine.high %v470_v22, %v470_v22  ;;  %v1191_v18 = vrot.slane %v473_v16, %v7110_v13  ;;  %v1199_v19 = vrot.slane %v470_v22, %v7110_v13  ;;  %v1203_v7 = vrot.slane %v472_v4, %v7110_v13  ;;  %v187_v4 = vpop.permute.xlu1 %186 }
  0xa1   :  { %v7375_v21 = vmul.f32 %v1183_v3, %v7335_v10  ;;  %v7378_v24 = vmul.f32 %v1187_v6, %v7335_v10  ;;  %v7381_v25 = vmul.f32 %v1195_v12, %v7335_v10  ;;  %v358_v28 = vrot.slane %v342_v63, %v7338_v20 }
  0xa2   :  { %v7385_v29 = vrot.slane %v474_v17, %v7110_v13  ;;  %v7388_v30 = vmul.f32 %v1191_v18, %v7335_v10  ;;  %v7391_v31 = vmul.f32 %v1199_v19, %v7335_v10  ;;  %v7394_v32 = vmul.f32 %v1203_v7, %v7335_v10 }
  0xa3   :  { %v365_v39 = vrot.slane %v343_v0, %v7338_v20  ;;  %v372_v8 = vrot.slane %v344_v15, %v7338_v20  ;;  %v373_v43 = vcombine.high %v351_v1, %v351_v1  ;;  %v374_v44 = vcombine.high %v358_v28, %v358_v28 }
  0xa4   :  { %v1115_v45 = vrot.slane %v351_v1, %v7110_v13  ;;  %v1131_v11 = vrot.slane %v358_v28, %v7110_v13  ;;  %v183_v1 = vpop.permute.xlu0 %182  ;;  %v475_v18 = vcombine.high %v7353_v53, %v7353_v53  ;;  %v482_v19 = vrot.slane %v7353_v53, %v7338_v20 }
  0xa5   :  { %v375_v9 = vcombine.high %v365_v39, %v365_v39  ;;  %v376_v57 = vcombine.high %v372_v8, %v372_v8  ;;  %v1119_v58 = vrot.slane %v365_v39, %v7110_v13  ;;  %v1135_v60 = vrot.slane %v372_v8, %v7110_v13 }
  0xa6   :  { %v1123_v62 = vrot.slane %v373_v43, %v7110_v13  ;;  %v1139_v63 = vrot.slane %v374_v44, %v7110_v13  ;;  %v7409_v0 = vmul.f32 %v1115_v45, %v7331_v2  ;;  %v7412_v22 = vmul.f32 %v1131_v11, %v7331_v2 }
  0xa7   :  { %v1127_v16 = vrot.slane %v375_v9, %v7110_v13  ;;  %v7416_v3 = vrot.slane %v376_v57, %v7110_v13  ;;  %v7419_v6 = vmul.f32 %v1119_v58, %v7331_v2  ;;  %v7422_v12 = vmul.f32 %v1135_v60, %v7331_v2 }
  0xa8   :  { %v7425_v15 = vmul.f32 %v1123_v62, %v7331_v2  ;;  %v7428_v17 = vmul.f32 %v1139_v63, %v7331_v2  ;;  %v240_v28 = vmul.f32 %v7287_v26, %v224_v54  ;;  %v228_v39 = vmul.f32 %v187_v4, %v7160_v35  ;;  %v190_v36 = vpop.permute.xlu0 %189 }
  0xa9   :  { %v7435_v7 = vmul.f32 %v1127_v16, %v7331_v2  ;;  %v227_v8 = vmul.f32 %v183_v1, %v7133_v23  ;;  %v489_v45 = vrot.slane %v475_v18, %v7338_v20  ;;  %v490_v11 = vcombine.high %v482_v19, %v482_v19 }
  0xaa   :  { %v498_v53 = vrot.slane %v482_v19, %v7338_v20  ;;  %v377_v9 = vcombine.high %v240_v28, %v240_v28  ;;  %v384_v57 = vrot.slane %v240_v28, %v7338_v20  ;;  %v244_v26 = vmul.f32 %v7296_v38, %v228_v39 }
  0xab   :  { %v491_v54 = vcombine.high %v489_v45, %v489_v45  ;;  %v505_v35 = vrot.slane %v489_v45, %v7338_v20  ;;  %v512_v23 = vrot.slane %v490_v11, %v7338_v20  ;;  %v243_v58 = vmul.f32 %v7296_v38, %v227_v8 }
  0xac   :  { %v520_v60 = vcombine.high %v498_v53, %v498_v53  ;;  %v1211_v62 = vrot.slane %v498_v53, %v7110_v13  ;;  %v391_v63 = vrot.slane %v377_v9, %v7338_v20  ;;  %v392_v4 = vcombine.high %v384_v57, %v384_v57 }
  0xad   :  { %v519_v1 = vrot.slane %v491_v54, %v7338_v20  ;;  %v521_v16 = vcombine.high %v505_v35, %v505_v35  ;;  %v522_v18 = vcombine.high %v512_v23, %v512_v23  ;;  %v1215_v19 = vrot.slane %v512_v23, %v7110_v13 }
  0xae   :  { %v1219_v28 = vrot.slane %v520_v60, %v7110_v13  ;;  %v1227_v39 = vrot.slane %v505_v35, %v7110_v13  ;;  %v7458_v45 = vmul.f32 %v1211_v62, %v7335_v10  ;;  %v393_v38 = vcombine.high %v391_v63, %v391_v63 }
  0xaf   :  { %v523_v8 = vcombine.high %v519_v1, %v519_v1  ;;  %v1223_v11 = vrot.slane %v522_v18, %v7110_v13  ;;  %v1231_v53 = vrot.slane %v519_v1, %v7110_v13  ;;  %v1235_v9 = vrot.slane %v521_v16, %v7110_v13 }
  0xb0   :  { %v7464_v54 = vmul.f32 %v1215_v19, %v7335_v10  ;;  %v7467_v23 = vmul.f32 %v1219_v28, %v7335_v10  ;;  %v7470_v60 = vmul.f32 %v1227_v39, %v7335_v10  ;;  %v400_v35 = vrot.slane %v384_v57, %v7338_v20 }
  0xb1   :  { %v7474_v62 = vrot.slane %v523_v8, %v7110_v13  ;;  %v7477_v18 = vmul.f32 %v1223_v11, %v7335_v10  ;;  %v7480_v1 = vmul.f32 %v1231_v53, %v7335_v10  ;;  %v7483_v16 = vmul.f32 %v1235_v9, %v7335_v10 }
  0xb2   :  { %10158 = vst [vmem:[#allocation8_spill] sm:$0xff] %v7464_v54  ;;  %10159 = vst [vmem:[#allocation9_spill] sm:$0xff] %v7470_v60  ;;  %v407_v57 = vrot.slane %v391_v63, %v7338_v20  ;;  %v414_v39 = vrot.slane %v392_v4, %v7338_v20  ;;  %v421_v8 = vrot.slane %v393_v38, %v7338_v20 }
  0xb3   :  { %10160 = vst [vmem:[#allocation10_spill] sm:$0xff] %v7480_v1  ;;  %10161 = vst [vmem:[#allocation11_spill] sm:$0xff] %v7483_v16  ;;  %v422_v11 = vcombine.high %v400_v35, %v400_v35  ;;  %v1147_v34 = vrot.slane %v400_v35, %v7110_v13  ;;  %v573_v53 = vcombine.high %v244_v26, %v244_v26 }
  0xb4   :  { %v423_v33 = vcombine.high %v407_v57, %v407_v57  ;;  %v424_v44 = vcombine.high %v414_v39, %v414_v39  ;;  %v1151_v9 = vrot.slane %v414_v39, %v7110_v13  ;;  %v1163_v43 = vrot.slane %v407_v57, %v7110_v13 }
  0xb5   :  { %v425_v19 = vcombine.high %v421_v8, %v421_v8  ;;  %v1155_v61 = vrot.slane %v422_v11, %v7110_v13  ;;  %v1167_v28 = vrot.slane %v421_v8, %v7110_v13  ;;  %v7498_v63 = vmul.f32 %v1147_v34, %v7331_v2 }
  0xb6   :  { %v1159_v4 = vrot.slane %v424_v44, %v7110_v13  ;;  %v1171_v38 = vrot.slane %v423_v33, %v7110_v13  ;;  %v7503_v35 = vmul.f32 %v1151_v9, %v7331_v2  ;;  %v7506_v51 = vmul.f32 %v1163_v43, %v7331_v2 }
  0xb7   :  { %v7509_v57 = vrot.slane %v425_v19, %v7110_v13  ;;  %v7512_v39 = vmul.f32 %v1155_v61, %v7331_v2  ;;  %v7515_v8 = vmul.f32 %v1167_v28, %v7331_v2  ;;  %v580_v34 = vrot.slane %v244_v26, %v7338_v20 }
  0xb8   :  { %v7519_v44 = vmul.f32 %v1159_v4, %v7331_v2  ;;  %v7522_v33 = vmul.f32 %v1171_v38, %v7331_v2  ;;  %v587_v43 = vrot.slane %v573_v53, %v7338_v20  ;;  %v524_v11 = vcombine.high %v243_v58, %v243_v58 }
  0xb9   :  { %v588_v9 = vcombine.high %v580_v34, %v580_v34  ;;  %v596_v28 = vrot.slane %v580_v34, %v7338_v20  ;;  %v531_v4 = vrot.slane %v243_v58, %v7338_v20  ;;  %v229_v19 = vmul.f32 %v190_v36, %v7165_v37 }
  0xba   :  { %v589_v59 = vcombine.high %v587_v43, %v587_v43  ;;  %v603_v26 = vrot.slane %v587_v43, %v7338_v20  ;;  %v538_v38 = vrot.slane %v524_v11, %v7338_v20 }
  0xbb   :  { %v610_v53 = vrot.slane %v588_v9, %v7338_v20  ;;  %v618_v50 = vcombine.high %v596_v28, %v596_v28  ;;  %v1275_v27 = vrot.slane %v596_v28, %v7110_v13  ;;  %v539_v60 = vcombine.high %v531_v4, %v531_v4 }
  0xbc   :  { %v617_v61 = vrot.slane %v589_v59, %v7338_v20  ;;  %v619_v1 = vcombine.high %v603_v26, %v603_v26  ;;  %v1291_v34 = vrot.slane %v603_v26, %v7110_v13 }
  0xbd   :  { %v620_v16 = vcombine.high %v610_v53, %v610_v53  ;;  %v1279_v43 = vrot.slane %v610_v53, %v7110_v13  ;;  %v1283_v58 = vrot.slane %v618_v50, %v7110_v13  ;;  %v7541_v11 = vmul.f32 %v1275_v27, %v7333_v5 }
  0xbe   :  { %v621_v9 = vcombine.high %v617_v61, %v617_v61  ;;  %v1295_v54 = vrot.slane %v617_v61, %v7110_v13  ;;  %v1299_v28 = vrot.slane %v619_v1, %v7110_v13  ;;  %v7546_v37 = vmul.f32 %v1291_v34, %v7333_v5  ;;  %v194_v34 = vpop.permute.xlu1 %193 }
  0xbf   :  { %10162 = vst [vmem:[#allocation12_spill] sm:$0xff] %v7541_v11  ;;  %v1287_v36 = vrot.slane %v620_v16, %v7110_v13  ;;  %v7550_v59 = vmul.f32 %v1279_v43, %v7333_v5  ;;  %v7553_v26 = vmul.f32 %v1283_v58, %v7333_v5  ;;  %v540_v50 = vcombine.high %v538_v38, %v538_v38 }
  0xc0   :  { %10163 = vst [vmem:[#allocation13_spill] sm:$0xff] %v7546_v37  ;;  %v7556_v27 = vrot.slane %v621_v9, %v7110_v13  ;;  %v7559_v53 = vmul.f32 %v1295_v54, %v7333_v5  ;;  %v7562_v1 = vmul.f32 %v1299_v28, %v7333_v5  ;;  %v547_v61 = vrot.slane %v531_v4, %v7338_v20  ;;  %v197_v37 = vpop.permute.xlu0 %196 }
  0xc1   :  { %10164 = vst [vmem:[#allocation14_spill] sm:$0xff] %v7550_v59  ;;  %10165 = vst [vmem:[#allocation15_spill] sm:$0xff] %v7553_v26  ;;  %v7566_v16 = vmul.f32 %v1287_v36, %v7333_v5  ;;  %v554_v9 = vrot.slane %v538_v38, %v7338_v20  ;;  %v561_v54 = vrot.slane %v539_v60, %v7338_v20 }
  0xc2   :  { %10166 = vst [vmem:[#allocation16_spill] sm:$0xff] %v7556_v27  ;;  %10167 = vst [vmem:[#allocation17_spill] sm:$0xff] %v7559_v53  ;;  %v568_v28 = vrot.slane %v540_v50, %v7338_v20  ;;  %v569_v53 = vcombine.high %v547_v61, %v547_v61  ;;  %v1243_v4 = vrot.slane %v547_v61, %v7110_v13 }
  0xc3   :  { %10168 = vst [vmem:[#allocation18_spill] sm:$0xff] %v7562_v1  ;;  %10169 = vst [vmem:[#allocation19_spill] sm:$0xff] %v7566_v16  ;;  %v570_v1 = vcombine.high %v554_v9, %v554_v9  ;;  %v1259_v36 = vrot.slane %v554_v9, %v7110_v13  ;;  %v245_v59 = vmul.f32 %v7301_v48, %v229_v19 }
  0xc4   :  { %v230_v43 = vmul.f32 %v194_v34, %v7172_v41  ;;  %v571_v16 = vcombine.high %v561_v54, %v561_v54  ;;  %v572_v27 = vcombine.high %v568_v28, %v568_v28  ;;  %v1247_v58 = vrot.slane %v561_v54, %v7110_v13 }
  0xc5   :  { %v1251_v38 = vrot.slane %v569_v53, %v7110_v13  ;;  %v1263_v60 = vrot.slane %v568_v28, %v7110_v13  ;;  %v1267_v50 = vrot.slane %v570_v1, %v7110_v13  ;;  %v7584_v26 = vmul.f32 %v1243_v4, %v7333_v5  ;;  %v201_v4 = vpop.permute.xlu0 %200 }
  0xc6   :  { %v7587_v61 = vmul.f32 %v1259_v36, %v7333_v5  ;;  %v1255_v19 = vrot.slane %v571_v16, %v7110_v13  ;;  %v7591_v41 = vrot.slane %v572_v27, %v7110_v13  ;;  %v7594_v34 = vmul.f32 %v1247_v58, %v7333_v5 }
  0xc7   :  { %v7597_v53 = vmul.f32 %v1251_v38, %v7333_v5  ;;  %v7600_v9 = vmul.f32 %v1263_v60, %v7333_v5  ;;  %v7603_v1 = vmul.f32 %v1267_v50, %v7333_v5  ;;  %v622_v54 = vcombine.high %v245_v59, %v245_v59 }
  0xc8   :  { %10170 = vst [vmem:[#allocation20_spill] sm:$0xff] %v7587_v61  ;;  %v629_v28 = vrot.slane %v245_v59, %v7338_v20  ;;  %v7607_v16 = vmul.f32 %v1255_v19, %v7333_v5  ;;  %v246_v36 = vmul.f32 %v7301_v48, %v230_v43  ;;  %v231_v59 = vmul.f32 %v197_v37, %v7175_v42 }
  0xc9   :  { %10171 = vst [vmem:[#allocation21_spill] sm:$0xff] %v7600_v9  ;;  %v636_v38 = vrot.slane %v622_v54, %v7338_v20  ;;  %v232_v9 = vmul.f32 %v201_v4, %v7185_v46  ;;  %v7623_v27 = vmul.f32 %v7416_v3, %v7331_v2 }
  0xca   :  { %v637_v60 = vcombine.high %v629_v28, %v629_v28  ;;  %v7616_v50 = vrot.slane %v629_v28, %v7338_v20  ;;  %v671_v11 = vcombine.high %v246_v36, %v246_v36  ;;  %v678_v19 = vrot.slane %v246_v36, %v7338_v20 }
  0xcb   :  { %v638_v58 = vcombine.high %v636_v38, %v636_v38  ;;  %v7626_v48 = vrot.slane %v636_v38, %v7338_v20 }
  0xcc   :  { %10172 = vst [vmem:[#allocation22_spill] sm:$0xff] %v7616_v50  ;;  %v7629_v43 = vrot.slane %v637_v60, %v7338_v20  ;;  %v667_v54 = vcombine.high %v7616_v50, %v7616_v50  ;;  %v685_v37 = vrot.slane %v671_v11, %v7338_v20  ;;  %v686_v46 = vcombine.high %v678_v19, %v678_v19 }
  0xcd   :  { %10173 = vst [vmem:[#allocation23_spill] sm:$0xff] %v7626_v48  ;;  %v7637_v28 = vrot.slane %v678_v19, %v7338_v20  ;;  %v7640_v3 = vrot.slane %v638_v58, %v7338_v20  ;;  %v668_v4 = vcombine.high %v7626_v48, %v7626_v48 }
  0xce   :  { %v669_v36 = vcombine.high %v7629_v43, %v7629_v43  ;;  %v7649_v60 = vrot.slane %v667_v54, %v7110_v13  ;;  %v687_v19 = vcombine.high %v685_v37, %v685_v37  ;;  %v7654_v42 = vrot.slane %v685_v37, %v7338_v20 }
  0xcf   :  { %10174 = vst [vmem:[#allocation24_spill] sm:$0xff] %v7637_v28  ;;  %10175 = vst [vmem:[#allocation25_spill] sm:$0xff] %v7640_v3  ;;  %v670_v58 = vcombine.high %v7640_v3, %v7640_v3  ;;  %v7664_v38 = vrot.slane %v668_v4, %v7110_v13  ;;  %v7667_v54 = vrot.slane %v686_v46, %v7338_v20 }
  0xd0   :  { %10176 = vst [vmem:[#allocation26_spill] sm:$0xff] %v7649_v60  ;;  %10177 = vst [vmem:[#allocation27_spill] sm:$0xff] %v7654_v42  ;;  %v7659_v50 = vrot.slane %v669_v36, %v7110_v13  ;;  %v7670_v11 = vrot.slane %v687_v19, %v7338_v20  ;;  %v716_v37 = vcombine.high %v7637_v28, %v7637_v28 }
  0xd1   :  { %10179 = vst [vmem:[#allocation29_spill] sm:$0xff] %v7664_v38  ;;  %10180 = vst [vmem:[#allocation30_spill] sm:$0xff] %v7667_v54  ;;  %v717_v48 = vcombine.high %v7654_v42, %v7654_v42  ;;  %v7677_v36 = vrot.slane %v670_v58, %v7110_v13  ;;  %v247_v46 = vmul.f32 %v7305_v49, %v231_v59 }
  0xd2   :  { %10178 = vst [vmem:[#allocation28_spill] sm:$0xff] %v7659_v50  ;;  %10181 = vst [vmem:[#allocation31_spill] sm:$0xff] %v7670_v11  ;;  %v718_v19 = vcombine.high %v7667_v54, %v7667_v54  ;;  %v719_v38 = vcombine.high %v7670_v11, %v7670_v11  ;;  %v7691_v58 = vrot.slane %v716_v37, %v7110_v13 }
  0xd3   :  { %10182 = vst [vmem:[#allocation32_spill] sm:$0xff] %v7677_v36  ;;  %v7696_v28 = vrot.slane %v717_v48, %v7110_v13  ;;  %v720_v4 = vcombine.high %v247_v46, %v247_v46  ;;  %v727_v59 = vrot.slane %v247_v46, %v7338_v20  ;;  %v248_v3 = vmul.f32 %v7305_v49, %v232_v9 }
  0xd4   :  { %10183 = vst [vmem:[#allocation33_spill] sm:$0xff] %v7691_v58  ;;  %v7700_v42 = vrot.slane %v718_v19, %v7110_v13  ;;  %v7703_v36 = vrot.slane %v719_v38, %v7110_v13  ;;  %v7708_v37 = vmul.f32 %v7509_v57, %v7331_v2  ;;  %v10188_v46 = vcombine.low %v7409_v0, %v7425_v15 }
  0xd5   :  { %10184 = vst [vmem:[#allocation34_spill] sm:$0xff] %v7696_v28  ;;  %v734_v61 = vrot.slane %v720_v4, %v7338_v20  ;;  %v735_v11 = vcombine.high %v727_v59, %v727_v59  ;;  %v7712_v48 = vrot.slane %v727_v59, %v7338_v20  ;;  %v769_v28 = vcombine.high %v248_v3, %v248_v3 }
  0xd6   :  { %10185 = vst [vmem:[#allocation35_spill] sm:$0xff] %v7700_v42  ;;  %10186 = vst [vmem:[#allocation36_spill] sm:$0xff] %v7703_v36  ;;  %v1888_v19 = vrot.slane %v10188_v46, %v7347_v40  ;;  %v776_v38 = vrot.slane %v248_v3, %v7338_v20  ;;  %v1896_v49 = vcombine.low %v7419_v6, %v7435_v7 }
  0xd7   :  { %10187 = vst [vmem:[#allocation37_spill] sm:$0xff] %v7712_v48  ;;  %v1912_v2 = vcombine.low %v7412_v22, %v7428_v17  ;;  %v736_v57 = vcombine.high %v734_v61, %v734_v61  ;;  %v7724_v9 = vrot.slane %v734_v61, %v7338_v20  ;;  %v7727_v4 = vrot.slane %v735_v11, %v7338_v20 }
  0xd8   :  { %v765_v59 = vcombine.high %v7712_v48, %v7712_v48  ;;  %v783_v3 = vrot.slane %v769_v28, %v7338_v20  ;;  %v784_v36 = vcombine.high %v776_v38, %v776_v38  ;;  %v7735_v42 = vrot.slane %v776_v38, %v7338_v20 }
  0xd9   :  { %10189 = vst [vmem:[#allocation38_spill] sm:$0xff] %v7724_v9  ;;  %10190 = vst [vmem:[#allocation39_spill] sm:$0xff] %v7727_v4  ;;  %v7738_v58 = vrot.slane %v736_v57, %v7338_v20  ;;  %v766_v61 = vcombine.high %v7724_v9, %v7724_v9  ;;  %v767_v11 = vcombine.high %v7727_v4, %v7727_v4 }
  0xda   :  { %10191 = vst [vmem:[#allocation40_spill] sm:$0xff] %v7735_v42  ;;  %v7747_v46 = vrot.slane %v765_v59, %v7110_v13  ;;  %v785_v38 = vcombine.high %v783_v3, %v783_v3  ;;  %v7752_v48 = vrot.slane %v783_v3, %v7338_v20  ;;  %v7765_v59 = vrot.slane %v784_v36, %v7338_v20 }
  0xdb   :  { %10192 = vst [vmem:[#allocation41_spill] sm:$0xff] %v7738_v58  ;;  %v768_v57 = vcombine.high %v7738_v58, %v7738_v58  ;;  %v7757_v50 = vrot.slane %v767_v11, %v7110_v13  ;;  %v7762_v54 = vrot.slane %v766_v61, %v7110_v13  ;;  %v814_v3 = vcombine.high %v7735_v42, %v7735_v42 }
  0xdc   :  { %10193 = vst [vmem:[#allocation42_spill] sm:$0xff] %v7747_v46  ;;  %10194 = vst [vmem:[#allocation43_spill] sm:$0xff] %v7752_v48  ;;  %v7768_v28 = vrot.slane %v785_v38, %v7338_v20  ;;  %v815_v9 = vcombine.high %v7752_v48, %v7752_v48  ;;  %v1904_v36 = vrot.slane %v1896_v49, %v7347_v40 }
  0xdd   :  { %10195 = vst [vmem:[#allocation44_spill] sm:$0xff] %v7757_v50  ;;  %10196 = vst [vmem:[#allocation45_spill] sm:$0xff] %v7762_v54  ;;  %v7775_v11 = vrot.slane %v768_v57, %v7110_v13  ;;  %v816_v38 = vcombine.high %v7765_v59, %v7765_v59  ;;  %v7789_v57 = vrot.slane %v814_v3, %v7110_v13 }
  0xde   :  { %10197 = vst [vmem:[#allocation46_spill] sm:$0xff] %v7765_v59  ;;  %10198 = vst [vmem:[#allocation47_spill] sm:$0xff] %v7768_v28  ;;  %v817_v54 = vcombine.high %v7768_v28, %v7768_v28  ;;  %v7794_v42 = vrot.slane %v815_v9, %v7110_v13  ;;  %v1920_v49 = vrot.slane %v1912_v2, %v7347_v40  ;;  %v211_v28 = vpop.permute.xlu0 %210 }
  0xdf   :  { %10199 = vst [vmem:[#allocation48_spill] sm:$0xff] %v7775_v11  ;;  %10200 = vst [vmem:[#allocation49_spill] sm:$0xff] %v7789_v57  ;;  %v1928_v61 = vcombine.low %v7422_v12, %v7623_v27  ;;  %v7800_v48 = vrot.slane %v816_v38, %v7110_v13  ;;  %v1945_v58 = vcombine.high %v1888_v19, %v1904_v36 }
  0xe0   :  { %10201 = vst [vmem:[#allocation50_spill] sm:$0xff] %v7794_v42  ;;  %v7803_v11 = vrot.slane %v817_v54, %v7110_v13  ;;  %v10204_v3 = vcombine.low %v7498_v63, %v7512_v39  ;;  %v2032_v2 = vcombine.low %v7503_v35, %v7519_v44  ;;  %v2048_v42 = vcombine.low %v7506_v51, %v7522_v33 }
  0xe1   :  { %10202 = vst [vmem:[#allocation51_spill] sm:$0xff] %v7800_v48  ;;  %v1936_v9 = vrot.slane %v1928_v61, %v7347_v40  ;;  %v2064_v38 = vcombine.low %v7515_v8, %v7708_v37  ;;  %v7817_v54 = vrot.slane %v1945_v58, %v7357_v55  ;;  %v235_v48 = vmul.f32 %v211_v28, %v7189_v47 }
  0xe2   :  { %10203 = vst [vmem:[#allocation52_spill] sm:$0xff] %v7803_v11  ;;  %v2024_v60 = vrot.slane %v10204_v3, %v7347_v40  ;;  %v1944_v11 = vcombine.low %v1888_v19, %v1904_v36  ;;  %v10205_v61 = vcombine.high %v7409_v0, %v7425_v15  ;;  %v2040_v59 = vrot.slane %v2032_v2, %v7347_v40 }
  0xe3   :  { %v1977_v57 = vcombine.high %v1920_v49, %v1936_v9  ;;  %v2056_v50 = vrot.slane %v2048_v42, %v7347_v40  ;;  %v2072_v46 = vrot.slane %v2064_v38, %v7347_v40  ;;  %v1976_v58 = vcombine.low %v1920_v49, %v1936_v9 }
  0xe4   :  { %v7824_v3 = vrot.slane %v10205_v61, %v7347_v40  ;;  %v7830_v4 = vrot.slane %v1944_v11, %v7357_v55  ;;  %v251_v19 = vmul.f32 %v7315_v52, %v235_v48  ;;  %v1897_v47 = vcombine.high %v7419_v6, %v7435_v7 }
  0xe5   :  { %v7836_v0 = vrot.slane %v1977_v57, %v7357_v55  ;;  %v2081_v15 = vcombine.high %v2024_v60, %v2040_v59  ;;  %v2113_v28 = vcombine.high %v2056_v50, %v2072_v46  ;;  %v2080_v36 = vcombine.low %v2024_v60, %v2040_v59 }
  0xe6   :  { %10206 = vst [vmem:[#allocation53_spill] sm:$0xff] %v7830_v4  ;;  %v7839_v2 = vrot.slane %v1976_v58, %v7357_v55  ;;  %v2112_v42 = vcombine.low %v2056_v50, %v2072_v46  ;;  %v916_v38 = vcombine.high %v251_v19, %v251_v19  ;;  %v923_v11 = vrot.slane %v251_v19, %v7338_v20 }
  0xe7   :  { %v2010_v49 = vcombine.low %v7817_v54, %v7836_v0  ;;  %v2095_v48 = vrot.slane %v2081_v15, %v7357_v55  ;;  %v2127_v6 = vrot.slane %v2113_v28, %v7357_v55  ;;  %v7847_v7 = vrot.slane %v2080_v36, %v7357_v55 }
  0xe8   :  { %10207 = vst [vmem:[#allocation54_spill] sm:$0xff] %v7839_v2  ;;  %v2009_v59 = vcombine.high %v7830_v4, %v7839_v2  ;;  %v7854_v50 = vrot.slane %v2112_v42, %v7357_v55  ;;  %v930_v46 = vrot.slane %v916_v38, %v7338_v20  ;;  %v931_v9 = vcombine.high %v923_v11, %v923_v11 }
  0xe9   :  { %10208 = vst [vmem:[#allocation55_spill] sm:$0xff] %v7847_v7  ;;  %v2146_v57 = vcombine.low %v2095_v48, %v2127_v6  ;;  %v7858_v61 = vrot.slane %v923_v11, %v7338_v20  ;;  %v7861_v58 = vrot.slane %v1897_v47, %v7347_v40 }
  0xea   :  { %10209 = vst [vmem:[#allocation56_spill] sm:$0xff] %v7854_v50  ;;  %v2145_v19 = vcombine.high %v7847_v7, %v7854_v50  ;;  %v932_v28 = vcombine.high %v930_v46, %v930_v46  ;;  %v7868_v36 = vrot.slane %v930_v46, %v7338_v20  ;;  %v7871_v38 = vrot.slane %v931_v9, %v7338_v20  ;;  %v10231_v7 = vld [vmem:[#allocation11_spill] sm:$0xff] }
  0xeb   :  { %10210 = vst [vmem:[#allocation57_spill] sm:$0xff] %v7858_v61  ;;  %v6691_v42 = vpack.i.bf16 %v2146_v57, %v2010_v49  ;;  %v961_v11 = vcombine.high %v7858_v61, %v7858_v61  ;;  %v1913_v9 = vcombine.high %v7412_v22, %v7428_v17  ;;  %v1929_v46 = vcombine.high %v7422_v12, %v7623_v27 }
  0xec   :  { %10211 = vst [vmem:[#allocation58_spill] sm:$0xff] %v7868_v36  ;;  %10212 = vst [vmem:[#allocation59_spill] sm:$0xff] %v7871_v38  ;;  %v6686_v60 = vpack.i.bf16 %v2145_v19, %v2009_v59  ;;  %v7878_v2 = vrot.slane %v932_v28, %v7338_v20  ;;  %v962_v15 = vcombine.high %v7868_v36, %v7868_v36 }
  0xed   :  { %6692 = vrot.lane.b32.xlu1 %v6691_v42, %s6987_s2  ;;  %v963_v49 = vcombine.high %v7871_v38, %v7871_v38  ;;  %v7890_v59 = vrot.slane %v961_v11, %v7110_v13  ;;  %v7908_v22 = vrot.slane %v1913_v9, %v7347_v40  ;;  %v1960_v17 = vcombine.low %v7824_v3, %v7861_v58 }
  0xee   :  { %10213 = vst [vmem:[#allocation60_spill] sm:$0xff] %v7878_v2  ;;  %6687 = vrot.lane.b32.xlu0 %v6686_v60, %s6988_s20  ;;  %v964_v19 = vcombine.high %v7878_v2, %v7878_v2  ;;  %v7900_v42 = vrot.slane %v962_v15, %v7110_v13  ;;  %v10217_v60 = vcombine.high %v7498_v63, %v7512_v39  ;;  %v215_v15 = vpop.permute.xlu0 %214 }
  0xef   :  { %10214 = vst [vmem:[#allocation61_spill] sm:$0xff] %v7890_v59  ;;  %v7905_v11 = vrot.slane %v963_v49, %v7110_v13  ;;  %v7922_v12 = vrot.slane %v1929_v46, %v7347_v40  ;;  %v2033_v27 = vcombine.high %v7503_v35, %v7519_v44  ;;  %v2049_v49 = vcombine.high %v7506_v51, %v7522_v33 }
  0xf0   :  { %10215 = vst [vmem:[#allocation62_spill] sm:$0xff] %v7900_v42  ;;  %v7916_v28 = vrot.slane %v10217_v60, %v7347_v40  ;;  %v7919_v57 = vrot.slane %v964_v19, %v7110_v13  ;;  %v1968_v9 = vrot.slane %v1960_v17, %v7357_v55  ;;  %v2065_v63 = vcombine.high %v7515_v8, %v7708_v37  ;;  %v10255_v42 = vld [vmem:[#allocation3_spill] sm:$0xff] }
  0xf1   :  { %10216 = vst [vmem:[#allocation63_spill] sm:$0xff] %v7905_v11  ;;  %v2011_v39 = vcombine.high %v7817_v54, %v7836_v0  ;;  %v2147_v60 = vcombine.high %v2095_v48, %v2127_v6  ;;  %v1992_v19 = vcombine.low %v7908_v22, %v7922_v12  ;;  %v7936_v46 = vrot.slane %v2033_v27, %v7347_v40 }
  0xf2   :  { %10218 = vst [vmem:[#allocation64_spill] sm:$0xff] %v7919_v57  ;;  %v7939_v35 = vrot.slane %v2049_v49, %v7347_v40  ;;  %v236_v51 = vmul.f32 %v215_v15, %v7202_v56  ;;  %v7943_v44 = vrot.slane %v2065_v63, %v7347_v40  ;;  %v7947_v8 = vmul.f32 %v7385_v29, %v7335_v10 }
  0xf3   :  { %v6696_v33 = vpack.i.bf16 %v2147_v60, %v2011_v39  ;;  %v7951_v37 = vmul.f32 %v7474_v62, %v7335_v10  ;;  %v2000_v54 = vrot.slane %v1992_v19, %v7357_v55  ;;  %v2096_v0 = vcombine.low %v7916_v28, %v7936_v46 }
  0xf4   :  { %v252_v48 = vmul.f32 %v7315_v52, %v236_v51  ;;  %v10219_v56 = vcombine.low %v7369_v14, %v7378_v24  ;;  %v2128_v29 = vcombine.low %v7939_v35, %v7943_v44  ;;  %v2168_v10 = vcombine.low %v7375_v21, %v7388_v30 }
  0xf5   :  { %6697 = vrot.lane.b32.xlu0 %v6696_v33, %s6989_s5  ;;  %v2184_v62 = vcombine.low %v7381_v25, %v7394_v32  ;;  %v2200_v52 = vcombine.low %v7391_v31, %v7947_v8  ;;  %v2012_v17 = vcombine.low %v1968_v9, %v2000_v54  ;;  %v2104_v15 = vrot.slane %v2096_v0, %v7357_v55 }
  0xf6   :  { %v7961_v6 = vrot.slane %v10219_v56, %v7347_v40  ;;  %v965_v27 = vcombine.high %v252_v48, %v252_v48  ;;  %v972_v49 = vrot.slane %v252_v48, %v7338_v20  ;;  %v2136_v63 = vrot.slane %v2128_v29, %v7357_v55 }
  0xf7   :  { %v2013_v39 = vcombine.high %v1968_v9, %v2000_v54  ;;  %v2176_v60 = vrot.slane %v2168_v10, %v7347_v40  ;;  %v2192_v19 = vrot.slane %v2184_v62, %v7347_v40  ;;  %v2208_v47 = vrot.slane %v2200_v52, %v7347_v40 }
  0xf8   :  { %v979_v51 = vrot.slane %v965_v27, %v7338_v20  ;;  %v980_v33 = vcombine.high %v972_v49, %v972_v49  ;;  %v7979_v56 = vrot.slane %v972_v49, %v7338_v20  ;;  %v2148_v4 = vcombine.low %v2104_v15, %v2136_v63 }
  0xf9   :  { %v2149_v0 = vcombine.high %v2104_v15, %v2136_v63  ;;  %v2216_v50 = vcombine.low %v7961_v6, %v2176_v60  ;;  %v10221_v9 = vcombine.low %v7458_v45, %v7467_v23 }
  0xfa   :  { %10220 = vst [vmem:[#allocation65_spill] sm:$0xff] %v7979_v56  ;;  %v981_v48 = vcombine.high %v979_v51, %v979_v51  ;;  %v7988_v29 = vrot.slane %v979_v51, %v7338_v20  ;;  %v7991_v10 = vrot.slane %v980_v33, %v7338_v20  ;;  %v1010_v62 = vcombine.high %v7979_v56, %v7979_v56 }
  0xfb   :  { %v2296_v54 = vrot.slane %v10221_v9, %v7347_v40  ;;  %v6701_v52 = vpack.i.bf16 %v2148_v4, %v2012_v17  ;;  %v6711_v27 = vpack.i.bf16 %v2149_v0, %v2013_v39  ;;  %v7998_v49 = vrot.slane %v2216_v50, %v7357_v55  ;;  %v10227_v39 = vld [vmem:[#allocation8_spill] sm:$0xff] }
  0xfc   :  { %10222 = vst [vmem:[#allocation66_spill] sm:$0xff] %v7988_v29  ;;  %10223 = vst [vmem:[#allocation67_spill] sm:$0xff] %v7991_v10  ;;  %v8001_v63 = vrot.slane %v981_v48, %v7338_v20  ;;  %v1011_v51 = vcombine.high %v7988_v29, %v7988_v29  ;;  %v1012_v33 = vcombine.high %v7991_v10, %v7991_v10  ;;  %v10232_v29 = vld [vmem:[#allocation9_spill] sm:$0xff]  ;;  %v10233_v10 = vld [vmem:[#allocation10_spill] sm:$0xff] }
  0xfd   :  { %10224 = vst [vmem:[#allocation68_spill] sm:$0xff] %v7998_v49  ;;  %6702 = vrot.lane.b32.xlu1 %v6701_v52, %s6990_s21  ;;  %v8011_v4 = vrot.slane %v1010_v62, %v7110_v13  ;;  %v2248_v17 = vcombine.low %v2192_v19, %v2208_v47  ;;  %v2304_v0 = vcombine.low %v10227_v39, %v7477_v18 }
  0xfe   :  { %10225 = vst [vmem:[#allocation69_spill] sm:$0xff] %v8001_v63  ;;  %v1013_v48 = vcombine.high %v8001_v63, %v8001_v63  ;;  %v8020_v15 = vrot.slane %v1012_v33, %v7110_v13  ;;  %v8025_v52 = vrot.slane %v1011_v51, %v7110_v13  ;;  %v2336_v56 = vcombine.low %v10233_v10, %v7951_v37 }
  0xff   :  { %10226 = vst [vmem:[#allocation70_spill] sm:$0xff] %v8011_v4  ;;  %v8028_v62 = vrot.slane %v2248_v17, %v7357_v55  ;;  %v2312_v50 = vrot.slane %v2304_v0, %v7347_v40  ;;  %v2320_v4 = vcombine.low %v10232_v29, %v10231_v7  ;;  %v1961_v9 = vcombine.high %v7824_v3, %v7861_v58 }
 0x100   :  { %10228 = vst [vmem:[#allocation8_spill] sm:$0xff] %v8020_v15  ;;  %10229 = vst [vmem:[#allocation71_spill] sm:$0xff] %v8025_v52  ;;  %v8036_v33 = vrot.slane %v1013_v48, %v7110_v13  ;;  %v1993_v51 = vcombine.high %v7908_v22, %v7922_v12  ;;  %v2097_v17 = vcombine.high %v7916_v28, %v7936_v46  ;;  %v204_v15 = vpop.permute.xlu1 %203 }
 0x101   :  { %10230 = vst [vmem:[#allocation72_spill] sm:$0xff] %v8028_v62  ;;  %6712 = vrot.lane.b32.xlu1 %v6711_v27, %s6991_s0  ;;  %v2281_v52 = vcombine.high %v7998_v49, %v8028_v62  ;;  %v2328_v48 = vrot.slane %v2320_v4, %v7347_v40  ;;  %v2352_v3 = vcombine.low %v2296_v54, %v2312_v50 }
 0x102   :  { %10234 = vst [vmem:[#allocation11_spill] sm:$0xff] %v8036_v33  ;;  %v2344_v33 = vrot.slane %v2336_v56, %v7347_v40  ;;  %v1975_v58 = vrot.slane %v1961_v9, %v7357_v55  ;;  %v2007_v22 = vrot.slane %v1993_v51, %v7357_v55  ;;  %v2111_v28 = vrot.slane %v2097_v17, %v7357_v55 }
 0x103   :  { %v2129_v46 = vcombine.high %v7939_v35, %v7943_v44  ;;  %v2217_v27 = vcombine.high %v7961_v6, %v2176_v60  ;;  %v2249_v0 = vcombine.high %v2192_v19, %v2208_v47  ;;  %v8058_v62 = vrot.slane %v2352_v3, %v7357_v55  ;;  %v10237_v6 = vld [vmem:[#allocation2_spill] sm:$0xff] }
 0x104   :  { %v2384_v12 = vcombine.low %v2328_v48, %v2344_v33  ;;  %v2014_v4 = vcombine.low %v1975_v58, %v2007_v22  ;;  %v2353_v49 = vcombine.high %v2296_v54, %v2312_v50  ;;  %v2385_v56 = vcombine.high %v2328_v48, %v2344_v33 }
 0x105   :  { %10235 = vst [vmem:[#allocation9_spill] sm:$0xff] %v8058_v62  ;;  %v2143_v9 = vrot.slane %v2129_v46, %v7357_v55  ;;  %v2231_v51 = vrot.slane %v2217_v27, %v7357_v55  ;;  %v2263_v17 = vrot.slane %v2249_v0, %v7357_v55  ;;  %v2015_v44 = vcombine.high %v1975_v58, %v2007_v22 }
 0x106   :  { %v8061_v63 = vrot.slane %v2384_v12, %v7357_v55  ;;  %v2367_v35 = vrot.slane %v2353_v49, %v7357_v55  ;;  %v2399_v47 = vrot.slane %v2385_v56, %v7357_v55  ;;  %v233_v60 = vmul.f32 %v204_v15, %v10237_v6  ;;  %v10238_v49 = vld [vmem:[#allocation6_spill] sm:$0xff] }
 0x107   :  { %v2150_v50 = vcombine.low %v2111_v28, %v2143_v9  ;;  %v2282_v33 = vcombine.low %v2231_v51, %v2263_v17  ;;  %v2151_v3 = vcombine.high %v2111_v28, %v2143_v9  ;;  %v2283_v12 = vcombine.high %v2231_v51, %v2263_v17 }
 0x108   :  { %10236 = vst [vmem:[#allocation10_spill] sm:$0xff] %v8061_v63  ;;  %v2417_v19 = vcombine.high %v8058_v62, %v8061_v63  ;;  %v2418_v48 = vcombine.low %v2367_v35, %v2399_v47  ;;  %v2419_v0 = vcombine.high %v2367_v35, %v2399_v47  ;;  %v249_v57 = vmul.f32 %v10238_v49, %v233_v60 }
 0x109   :  { %v6721_v27 = vpack.i.bf16 %v2150_v50, %v2014_v4  ;;  %v10239_v15 = vcombine.high %v7369_v14, %v7378_v24  ;;  %v6731_v56 = vpack.i.bf16 %v2151_v3, %v2015_v44  ;;  %v2169_v54 = vcombine.high %v7375_v21, %v7388_v30 }
 0x10a   :  { %v6706_v46 = vpack.i.bf16 %v2417_v19, %v2281_v52  ;;  %v6716_v22 = vpack.i.bf16 %v2418_v48, %v2282_v33  ;;  %v6726_v6 = vpack.i.bf16 %v2419_v0, %v2283_v12  ;;  %v818_v52 = vcombine.high %v249_v57, %v249_v57 }
 0x10b   :  { %v8078_v58 = vrot.slane %v10239_v15, %v7347_v40  ;;  %6722 = vrot.lane.b32.xlu1 %v6721_v27, %s6992_s22  ;;  %v825_v28 = vrot.slane %v249_v57, %v7338_v20  ;;  %v2185_v4 = vcombine.high %v7381_v25, %v7394_v32  ;;  %v8088_v14 = vrot.slane %v2169_v54, %v7347_v40 }
 0x10c   :  { %6707 = vrot.lane.b32.xlu0 %v6706_v46, %s6988_s20  ;;  %v2201_v24 = vcombine.high %v7391_v31, %v7947_v8  ;;  %v10240_v21 = vcombine.high %v7458_v45, %v7467_v23  ;;  %v2305_v9 = vcombine.high %v10227_v39, %v7477_v18  ;;  %v832_v57 = vrot.slane %v818_v52, %v7338_v20 }
 0x10d   :  { %v833_v51 = vcombine.high %v825_v28, %v825_v28  ;;  %v8102_v25 = vrot.slane %v825_v28, %v7338_v20  ;;  %v8105_v32 = vrot.slane %v2185_v4, %v7347_v40  ;;  %v2232_v45 = vcombine.low %v8078_v58, %v8088_v14  ;;  %v10243_v28 = vld [vmem:[#allocation16_spill] sm:$0xff] }
 0x10e   :  { %v8096_v30 = vrot.slane %v10240_v21, %v7347_v40  ;;  %v8108_v31 = vrot.slane %v2201_v24, %v7347_v40  ;;  %v8113_v23 = vrot.slane %v2305_v9, %v7347_v40  ;;  %v2321_v18 = vcombine.high %v10232_v29, %v10231_v7  ;;  %v10245_v9 = vld [vmem:[#allocation20_spill] sm:$0xff] }
 0x10f   :  { %6732 = vrot.lane.b32.xlu1 %v6731_v56, %s6993_s1  ;;  %v834_v8 = vcombine.high %v832_v57, %v832_v57  ;;  %v8120_v39 = vrot.slane %v832_v57, %v7338_v20  ;;  %v8123_v17 = vrot.slane %v833_v51, %v7338_v20  ;;  %v863_v35 = vcombine.high %v8102_v25, %v8102_v25  ;;  %v10246_v51 = vld [vmem:[#allocation21_spill] sm:$0xff] }
 0x110   :  { %6717 = vrot.lane.b32.xlu0 %v6716_v22, %s6987_s2  ;;  %v8130_v7 = vrot.slane %v2232_v45, %v7357_v55  ;;  %v2264_v29 = vcombine.low %v8105_v32, %v8108_v31  ;;  %v8150_v3 = vrot.slane %v2321_v18, %v7347_v40  ;;  %v2337_v22 = vcombine.high %v10233_v10, %v7951_v37  ;;  %v208_v45 = vpop.permute.xlu1 %207 }
 0x111   :  { %v8135_v44 = vrot.slane %v834_v8, %v7338_v20  ;;  %v864_v60 = vcombine.high %v8120_v39, %v8120_v39  ;;  %v865_v19 = vcombine.high %v8123_v17, %v8123_v17  ;;  %v8144_v50 = vrot.slane %v863_v35, %v7110_v13  ;;  %v10247_v8 = vld [vmem:[#allocation12_spill] sm:$0xff]  ;;  %v10248_v35 = vld [vmem:[#allocation15_spill] sm:$0xff] }
 0x112   :  { %v2272_v48 = vrot.slane %v2264_v29, %v7357_v55  ;;  %v2368_v56 = vcombine.low %v8096_v30, %v8113_v23  ;;  %v8177_v4 = vmul.f32 %v10243_v28, %v7333_v5  ;;  %v10244_v24 = vcombine.low %v7584_v26, %v7597_v53  ;;  %v10252_v28 = vld [vmem:[#allocation18_spill] sm:$0xff] }
 0x113   :  { %v866_v12 = vcombine.high %v8135_v44, %v8135_v44  ;;  %v8156_v0 = vrot.slane %v865_v19, %v7110_v13  ;;  %v8161_v27 = vrot.slane %v864_v60, %v7110_v13  ;;  %v2440_v37 = vcombine.low %v7594_v34, %v7607_v16  ;;  %v10250_v19 = vld [vmem:[#allocation19_spill] sm:$0xff] }
 0x114   :  { %6727 = vrot.lane.b32.xlu0 %v6726_v6, %s6989_s5  ;;  %v2284_v15 = vcombine.low %v8130_v7, %v2272_v48  ;;  %v8170_v6 = vmul.f32 %v7591_v41, %v7333_v5  ;;  %v2432_v21 = vrot.slane %v10244_v24, %v7347_v40  ;;  %v8186_v10 = vrot.slane %v2337_v22, %v7347_v40  ;;  %v10253_v24 = vld [vmem:[#allocation13_spill] sm:$0xff] }
 0x115   :  { %10241 = vst [vmem:[#allocation2_spill] sm:$0xff] %v8161_v27  ;;  %v8173_v52 = vrot.slane %v866_v12, %v7110_v13  ;;  %v2376_v41 = vrot.slane %v2368_v56, %v7357_v55  ;;  %v2456_v57 = vcombine.low %v10245_v9, %v7603_v1  ;;  %v2448_v18 = vrot.slane %v2440_v37, %v7347_v40  ;;  %v10251_v12 = vld [vmem:[#allocation14_spill] sm:$0xff]  ;;  %v10254_v37 = vld [vmem:[#allocation17_spill] sm:$0xff] }
 0x116   :  { %v2472_v5 = vcombine.low %v10246_v51, %v8170_v6  ;;  %v10249_v29 = vcombine.low %v10247_v8, %v10248_v35  ;;  %v2576_v22 = vcombine.low %v10251_v12, %v10250_v19  ;;  %v2592_v56 = vcombine.low %v10253_v24, %v10252_v28 }
 0x117   :  { %10242 = vst [vmem:[#allocation6_spill] sm:$0xff] %v8173_v52  ;;  %v2400_v46 = vcombine.low %v8150_v3, %v8186_v10  ;;  %v2464_v33 = vrot.slane %v2456_v57, %v7347_v40  ;;  %v2608_v47 = vcombine.low %v10254_v37, %v8177_v4  ;;  %v2488_v63 = vcombine.low %v2432_v21, %v2448_v18 }
 0x118   :  { %v2568_v60 = vrot.slane %v10249_v29, %v7347_v40  ;;  %v2480_v54 = vrot.slane %v2472_v5, %v7347_v40  ;;  %v2584_v62 = vrot.slane %v2576_v22, %v7347_v40  ;;  %v2600_v29 = vrot.slane %v2592_v56, %v7347_v40 }
 0x119   :  { %v234_v2 = vmul.f32 %v208_v45, %v10255_v42  ;;  %v2408_v36 = vrot.slane %v2400_v46, %v7357_v55  ;;  %v2616_v59 = vrot.slane %v2608_v47, %v7347_v40  ;;  %v2285_v38 = vcombine.high %v8130_v7, %v2272_v48 }
 0x11a   :  { %v2520_v11 = vcombine.low %v2464_v33, %v2480_v54  ;;  %v8215_v57 = vrot.slane %v2488_v63, %v7357_v55  ;;  %v2624_v5 = vcombine.low %v2568_v60, %v2584_v62  ;;  %v2489_v52 = vcombine.high %v2432_v21, %v2448_v18 }
 0x11b   :  { %v250_v61 = vmul.f32 %v10238_v49, %v234_v2  ;;  %v2420_v27 = vcombine.low %v2376_v41, %v2408_v36  ;;  %v2656_v56 = vcombine.low %v2600_v29, %v2616_v59  ;;  %v2421_v42 = vcombine.high %v2376_v41, %v2408_v36 }
 0x11c   :  { %10256 = vst [vmem:[#allocation16_spill] sm:$0xff] %v8215_v57  ;;  %v8219_v22 = vrot.slane %v2520_v11, %v7357_v55  ;;  %v8222_v46 = vrot.slane %v2624_v5, %v7357_v55  ;;  %v2503_v7 = vrot.slane %v2489_v52, %v7357_v55  ;;  %v2625_v52 = vcombine.high %v2568_v60, %v2584_v62 }
 0x11d   :  { %v867_v45 = vcombine.high %v250_v61, %v250_v61  ;;  %v874_v47 = vrot.slane %v250_v61, %v7338_v20  ;;  %v6736_v63 = vpack.i.bf16 %v2420_v27, %v2284_v15  ;;  %v8229_v2 = vrot.slane %v2656_v56, %v7357_v55  ;;  %v218_v61 = vpop.permute.xlu1 %217 }
 0x11e   :  { %10257 = vst [vmem:[#allocation20_spill] sm:$0xff] %v8219_v22  ;;  %10258 = vst [vmem:[#allocation21_spill] sm:$0xff] %v8222_v46  ;;  %v2553_v48 = vcombine.high %v8215_v57, %v8219_v22  ;;  %v6746_v41 = vpack.i.bf16 %v2421_v42, %v2285_v38  ;;  %v2521_v15 = vcombine.high %v2464_v33, %v2480_v54  ;;  %v8471_v22 = vpop.f32.mrb[0].mxu0 }
 0x11f   :  { %10259 = vst [vmem:[#allocation12_spill] sm:$0xff] %v8229_v2  ;;  %v881_v36 = vrot.slane %v867_v45, %v7338_v20  ;;  %v882_v49 = vcombine.high %v874_v47, %v874_v47  ;;  %v8235_v21 = vrot.slane %v874_v47, %v7338_v20  ;;  %6737 = vrot.lane.b32.xlu0 %v6736_v63, %s6990_s21 }
 0x120   :  { %v2689_v27 = vcombine.high %v8222_v46, %v8229_v2  ;;  %v2535_v47 = vrot.slane %v2521_v15, %v7357_v55  ;;  %v2639_v63 = vrot.slane %v2625_v52, %v7357_v55  ;;  %v2369_v11 = vcombine.high %v8096_v30, %v8113_v23 }
 0x121   :  { %v883_v18 = vcombine.high %v881_v36, %v881_v36  ;;  %v8243_v5 = vrot.slane %v881_v36, %v7338_v20  ;;  %v8246_v56 = vrot.slane %v882_v49, %v7338_v20  ;;  %v912_v38 = vcombine.high %v8235_v21, %v8235_v21 }
 0x122   :  { %v6741_v42 = vpack.i.bf16 %v2689_v27, %v2553_v48  ;;  %v2554_v49 = vcombine.low %v2503_v7, %v2535_v47  ;;  %v2401_v52 = vcombine.high %v8150_v3, %v8186_v10  ;;  %v2555_v36 = vcombine.high %v2503_v7, %v2535_v47 }
 0x123   :  { %v8255_v62 = vrot.slane %v883_v18, %v7338_v20  ;;  %v913_v54 = vcombine.high %v8243_v5, %v8243_v5  ;;  %v914_v33 = vcombine.high %v8246_v56, %v8246_v56  ;;  %v8265_v48 = vrot.slane %v912_v38, %v7110_v13  ;;  %6747 = vrot.lane.b32.xlu0 %v6746_v41, %s6991_s0 }
 0x124   :  { %6742 = vrot.lane.b32.xlu1 %v6741_v42, %s6988_s20  ;;  %v2657_v38 = vcombine.high %v2600_v29, %v2616_v59  ;;  %v2233_v42 = vcombine.high %v8078_v58, %v8088_v14  ;;  %v2265_v41 = vcombine.high %v8105_v32, %v8108_v31  ;;  %v2383_v32 = vrot.slane %v2369_v11, %v7357_v55  ;;  %v10264_v31 = vld [vmem:[#allocation7_spill] sm:$0xff] }
 0x125   :  { %10260 = vst [vmem:[#allocation15_spill] sm:$0xff] %v8255_v62  ;;  %v915_v27 = vcombine.high %v8255_v62, %v8255_v62  ;;  %v8273_v15 = vrot.slane %v914_v33, %v7110_v13  ;;  %v8278_v18 = vrot.slane %v913_v54, %v7110_v13  ;;  %v10263_v54 = vld [vmem:[#allocation4_spill] sm:$0xff]  ;;  %v2415_v30 = vrot.slane %v2401_v52, %v7357_v55 }
 0x126   :  { %v237_v60 = vmul.f32 %v218_v61, %v10263_v54  ;;  %v2671_v59 = vrot.slane %v2657_v38, %v7357_v55  ;;  %v2247_v58 = vrot.slane %v2233_v42, %v7357_v55  ;;  %v2279_v14 = vrot.slane %v2265_v41, %v7357_v55 }
 0x127   :  { %10261 = vst [vmem:[#allocation19_spill] sm:$0xff] %v8278_v18  ;;  %v8287_v33 = vrot.slane %v915_v27, %v7110_v13  ;;  %v10265_v29 = vcombine.high %v7584_v26, %v7597_v53  ;;  %v2441_v10 = vcombine.high %v7594_v34, %v7607_v16  ;;  %v2422_v38 = vcombine.low %v2383_v32, %v2415_v30 }
 0x128   :  { %v253_v23 = vmul.f32 %v10264_v31, %v237_v60  ;;  %v2690_v7 = vcombine.low %v2639_v63, %v2671_v59  ;;  %v2286_v61 = vcombine.low %v2247_v58, %v2279_v14  ;;  %v2691_v47 = vcombine.high %v2639_v63, %v2671_v59 }
 0x129   :  { %10262 = vst [vmem:[#allocation14_spill] sm:$0xff] %v8287_v33  ;;  %v8302_v3 = vrot.slane %v10265_v29, %v7347_v40  ;;  %v2287_v27 = vcombine.high %v2247_v58, %v2279_v14  ;;  %v2423_v52 = vcombine.high %v2383_v32, %v2415_v30  ;;  %v8308_v54 = vrot.slane %v2441_v10, %v7347_v40 }
 0x12a   :  { %v1014_v42 = vcombine.high %v253_v23, %v253_v23  ;;  %v1021_v11 = vrot.slane %v253_v23, %v7338_v20  ;;  %v6751_v41 = vpack.i.bf16 %v2690_v7, %v2554_v49  ;;  %v6761_v60 = vpack.i.bf16 %v2691_v47, %v2555_v36 }
 0x12b   :  { %v2457_v26 = vcombine.high %v10245_v9, %v7603_v1  ;;  %v6756_v53 = vpack.i.bf16 %v2422_v38, %v2286_v61  ;;  %v6766_v59 = vpack.i.bf16 %v2423_v52, %v2287_v27  ;;  %v2473_v36 = vcombine.high %v10246_v51, %v8170_v6  ;;  %v8356_v27 = vpop.permute.xlu0 %282 }
 0x12c   :  { %v1028_v34 = vrot.slane %v1014_v42, %v7338_v20  ;;  %v1029_v16 = vcombine.high %v1021_v11, %v1021_v11  ;;  %v8314_v63 = vrot.slane %v1021_v11, %v7338_v20  ;;  %6752 = vrot.lane.b32.xlu1 %v6751_v41, %s6987_s2  ;;  %v2504_v49 = vcombine.low %v8302_v3, %v8308_v54  ;;  %v222_v11 = vpop.permute.xlu1 %221 }
 0x12d   :  { %v8318_v58 = vrot.slane %v2457_v26, %v7347_v40  ;;  %6757 = vrot.lane.b32.xlu0 %v6756_v53, %s6992_s22  ;;  %v8336_v6 = vrot.slane %v2473_v36, %v7347_v40  ;;  %v10269_v23 = vcombine.high %v10247_v8, %v10248_v35  ;;  %v2577_v42 = vcombine.high %v10251_v12, %v10250_v19  ;;  %v10275_v36 = vld [vmem:[#allocation5_spill] sm:$0xff] }
 0x12e   :  { %10266 = vst [vmem:[#allocation18_spill] sm:$0xff] %v8314_v63  ;;  %v1030_v1 = vcombine.high %v1028_v34, %v1028_v34  ;;  %v8326_v9 = vrot.slane %v1028_v34, %v7338_v20  ;;  %v8329_v14 = vrot.slane %v1029_v16, %v7338_v20  ;;  %v1059_v32 = vcombine.high %v8314_v63, %v8314_v63 }
 0x12f   :  { %v8339_v51 = vrot.slane %v2504_v49, %v7357_v55  ;;  %v8345_v29 = vrot.slane %v10269_v23, %v7347_v40  ;;  %v2536_v38 = vcombine.low %v8318_v58, %v8336_v6  ;;  %v8381_v34 = vrot.slane %v2577_v42, %v7347_v40  ;;  %v10279_v42 = vld [vmem:[#allocation26_spill] sm:$0xff] }
 0x130   :  { %10267 = vst [vmem:[#allocation13_spill] sm:$0xff] %v8326_v9  ;;  %10268 = vst [vmem:[#allocation17_spill] sm:$0xff] %v8329_v14  ;;  %v8348_v10 = vrot.slane %v1030_v1, %v7338_v20  ;;  %v1060_v7 = vcombine.high %v8326_v9, %v8326_v9  ;;  %v1061_v61 = vcombine.high %v8329_v14, %v8329_v14  ;;  %6762 = vrot.lane.b32.xlu1 %v6761_v60, %s6989_s5  ;;  %v10276_v1 = vld [vmem:[#allocation22_spill] sm:$0xff] }
 0x131   :  { %v8360_v8 = vrot.slane %v1059_v32, %v7110_v13  ;;  %6767 = vrot.lane.b32.xlu0 %v6766_v59, %s6993_s1  ;;  %v2544_v53 = vrot.slane %v2536_v38, %v7357_v55  ;;  %v2593_v19 = vcombine.high %v10253_v24, %v10252_v28  ;;  %v2609_v12 = vcombine.high %v10254_v37, %v8177_v4 }
 0x132   :  { %10270 = vst [vmem:[#allocation3_spill] sm:$0xff] %v8348_v10  ;;  %v1062_v52 = vcombine.high %v8348_v10, %v8348_v10  ;;  %v8371_v41 = vrot.slane %v1061_v61, %v7110_v13  ;;  %v8376_v26 = vrot.slane %v1060_v7, %v7110_v13  ;;  %v238_v49 = vmul.f32 %v222_v11, %v10275_v36  ;;  %v10280_v11 = vld [vmem:[#allocation28_spill] sm:$0xff]  ;;  %v10281_v36 = vld [vmem:[#allocation23_spill] sm:$0xff] }
 0x133   :  { %10271 = vst [vmem:[#allocation4_spill] sm:$0xff] %v8360_v8  ;;  %v10277_v59 = vrot.slane %v10276_v1, %v7110_v13  ;;  %v10278_v23 = vrot.slane %v7629_v43, %v7110_v13  ;;  %v2556_v28 = vcombine.low %v8339_v51, %v2544_v53  ;;  %v8405_v4 = vrot.slane %v2593_v19, %v7347_v40 }
 0x134   :  { %10272 = vst [vmem:[#allocation7_spill] sm:$0xff] %v8371_v41  ;;  %10273 = vst [vmem:[#allocation73_spill] sm:$0xff] %v8376_v26  ;;  %v8388_v16 = vrot.slane %v1062_v52, %v7110_v13  ;;  %v8408_v24 = vrot.slane %v2609_v12, %v7347_v40  ;;  %v2640_v37 = vcombine.low %v8345_v29, %v8381_v34 }
 0x135   :  { %v8395_v32 = vmul.f32 %v10277_v59, %v8356_v27  ;;  %v8401_v7 = vmul.f32 %v10278_v23, %v8356_v27  ;;  %v254_v61 = vmul.f32 %v10264_v31, %v238_v49  ;;  %v2557_v38 = vcombine.high %v8339_v51, %v2544_v53  ;;  %v10283_v51 = vld [vmem:[#allocation25_spill] sm:$0xff]  ;;  %10294 = vst [vmem:[#allocation22_spill] sm:$0xff] %v8471_v22 }
 0x136   :  { %10274 = vst [vmem:[#allocation74_spill] sm:$0xff] %v8388_v16  ;;  %v8416_v43 = vmul.f32 %v10279_v42, %v8356_v27  ;;  %v8420_v52 = vmul.f32 %v10280_v11, %v8356_v27  ;;  %v2648_v19 = vrot.slane %v2640_v37, %v7357_v55  ;;  %v2672_v12 = vcombine.low %v8405_v4, %v8408_v24  ;;  %v10285_v37 = vld [vmem:[#allocation29_spill] sm:$0xff]  ;;  %v10286_v11 = vld [vmem:[#allocation32_spill] sm:$0xff]  ;;  %v8485_v16 = vpop.f32.mrb[1].mxu0 }
 0x137   :  { %v10282_v1 = vrot.slane %v10281_v36, %v7110_v13  ;;  %v10284_v53 = vrot.slane %v10283_v51, %v7110_v13  ;;  %v1063_v59 = vcombine.high %v254_v61, %v254_v61  ;;  %v1070_v23 = vrot.slane %v254_v61, %v7338_v20  ;;  %10299 = vst [vmem:[#allocation26_spill] sm:$0xff] %v8485_v16 }
 0x138   :  { %v8440_v42 = vmul.f32 %v10285_v37, %v8356_v27  ;;  %v8444_v60 = vmul.f32 %v10286_v11, %v8356_v27  ;;  %v2680_v36 = vrot.slane %v2672_v12, %v7357_v55  ;;  %v10291_v37 = vld [vmem:[#allocation33_spill] sm:$0xff] }
 0x139   :  { %v8429_v31 = vmul.f32 %v10282_v1, %v8356_v27  ;;  %v8435_v49 = vmul.f32 %v10284_v53, %v8356_v27  ;;  %v10287_v1 = vld [vmem:[#allocation24_spill] sm:$0xff]  ;;  %v10289_v53 = vld [vmem:[#allocation30_spill] sm:$0xff]  ;;  %v8461_v30 = vmul.f32 %v10291_v37, %v8356_v27  ;;  %v1077_v11 = vrot.slane %v1063_v59, %v7338_v20  ;;  %v10297_v59 = vld [vmem:[#allocation31_spill] sm:$0xff] }
 0x13a   :  { %v10288_v35 = vrot.slane %v10287_v1, %v7110_v13  ;;  %v10290_v61 = vrot.slane %v10289_v53, %v7110_v13  ;;  %v1078_v45 = vcombine.high %v1070_v23, %v1070_v23  ;;  %v8465_v12 = vrot.slane %v1070_v23, %v7338_v20  ;;  %v10293_v1 = vld [vmem:[#allocation35_spill] sm:$0xff] }
 0x13b   :  { %v2692_v57 = vcombine.low %v2648_v19, %v2680_v36  ;;  %v2693_v53 = vcombine.high %v2648_v19, %v2680_v36  ;;  %v10298_v46 = vrot.slane %v10297_v59, %v7110_v13  ;;  %v8488_v26 = vrot.slane %v1077_v11, %v7338_v20 }
 0x13c   :  { %v8451_v51 = vmul.f32 %v10288_v35, %v8356_v27  ;;  %v8457_v47 = vmul.f32 %v10290_v61, %v8356_v27  ;;  %10292 = vst [vmem:[#allocation5_spill] sm:$0xff] %v8465_v12  ;;  %v8469_v35 = vmul.f32 %v10293_v1, %v8356_v27  ;;  %v10295_v61 = vld [vmem:[#allocation27_spill] sm:$0xff]  ;;  %v1079_v1 = vcombine.high %v1077_v11, %v1077_v11 }
 0x13d   :  { %v10296_v2 = vrot.slane %v10295_v61, %v7110_v13  ;;  %v8483_v23 = vmul.f32 %v10298_v46, %v8356_v27  ;;  %10300 = vst [vmem:[#allocation28_spill] sm:$0xff] %v8488_v26  ;;  %v8491_v19 = vrot.slane %v1078_v45, %v7338_v20  ;;  %v1108_v36 = vcombine.high %v8465_v12, %v8465_v12  ;;  %v10302_v46 = vld [vmem:[#allocation34_spill] sm:$0xff] }
 0x13e   :  { %v6781_v22 = vpack.i.bf16 %v2693_v53, %v2557_v38  ;;  %v8499_v59 = vmul.f32 %v10302_v46, %v8356_v27  ;;  %v8502_v16 = vrot.slane %v1079_v1, %v7338_v20  ;;  %v1109_v11 = vcombine.high %v8488_v26, %v8488_v26  ;;  %v10306_v53 = vld [vmem:[#allocation36_spill] sm:$0xff] }
 0x13f   :  { %v8477_v37 = vmul.f32 %v10296_v2, %v8356_v27  ;;  %10301 = vst [vmem:[#allocation23_spill] sm:$0xff] %v8491_v19  ;;  %v6771_v2 = vpack.i.bf16 %v2692_v57, %v2556_v28  ;;  %v1110_v45 = vcombine.high %v8491_v19, %v8491_v19  ;;  %v8510_v28 = vpop.f32.mrb[2].mxu0  ;;  %v8514_v38 = vrot.slane %v1108_v36, %v7110_v13 }
 0x140   :  { %10303 = vst [vmem:[#allocation25_spill] sm:$0xff] %v8502_v16  ;;  %10304 = vst [vmem:[#allocation29_spill] sm:$0xff] %v8510_v28  ;;  %v8520_v1 = vmul.f32 %v10306_v53, %v8356_v27  ;;  %v2696_v46 = vcombine.low %v8395_v32, %v8416_v43  ;;  %v8524_v61 = vpop.f32.mrb[3].mxu0  ;;  %v1111_v57 = vcombine.high %v8502_v16, %v8502_v16 }
 0x141   :  { %6772 = vrot.lane.b32.xlu1 %v6771_v2, %s6990_s21  ;;  %10305 = vst [vmem:[#allocation32_spill] sm:$0xff] %v8514_v38  ;;  %10307 = vst [vmem:[#allocation24_spill] sm:$0xff] %v8524_v61  ;;  %v8529_v2 = vrot.slane %v1110_v45, %v7110_v13  ;;  %v8534_v20 = vrot.slane %v1109_v11, %v7110_v13  ;;  %v2712_v53 = vcombine.low %v8401_v7, %v8420_v52 }
 0x142   :  { %v2704_v27 = vrot.slane %v2696_v46, %v7347_v40  ;;  %v2728_v28 = vcombine.low %v8429_v31, %v8440_v42  ;;  %v2744_v61 = vcombine.low %v8435_v49, %v8444_v60  ;;  %v8544_v45 = vrot.slane %v1111_v57, %v7110_v13 }
 0x143   :  { %10308 = vst [vmem:[#allocation30_spill] sm:$0xff] %v8529_v2  ;;  %10309 = vst [vmem:[#allocation33_spill] sm:$0xff] %v8534_v20  ;;  %v2832_v36 = vcombine.low %v8451_v51, %v8461_v30  ;;  %v2848_v11 = vcombine.low %v8457_v47, %v8469_v35  ;;  %v2864_v46 = vcombine.low %v8477_v37, %v8499_v59 }
 0x144   :  { %10310 = vst [vmem:[#allocation35_spill] sm:$0xff] %v8544_v45  ;;  %v2720_v20 = vrot.slane %v2712_v53, %v7347_v40  ;;  %v2736_v16 = vrot.slane %v2728_v28, %v7347_v40  ;;  %v2752_v26 = vrot.slane %v2744_v61, %v7347_v40  ;;  %v2880_v57 = vcombine.low %v8483_v23, %v8520_v1  ;;  %v8566_v61 = vpop.f32.mrb[4].mxu0 }
 0x145   :  { %6782 = vrot.lane.b32.xlu1 %v6781_v22, %s6991_s0  ;;  %v2840_v45 = vrot.slane %v2832_v36, %v7347_v40  ;;  %v2856_v2 = vrot.slane %v2848_v11, %v7347_v40  ;;  %v2872_v38 = vrot.slane %v2864_v46, %v7347_v40  ;;  %v2505_v19 = vcombine.high %v8302_v3, %v8308_v54  ;;  %v8573_v46 = vpop.f32.mrb[5].mxu0 }
 0x146   :  { %v2760_v12 = vcombine.low %v2704_v27, %v2720_v20  ;;  %v2792_v22 = vcombine.low %v2736_v16, %v2752_v26  ;;  %v2888_v53 = vrot.slane %v2880_v57, %v7347_v40  ;;  %v2537_v28 = vcombine.high %v8318_v58, %v8336_v6  ;;  %10311 = vst [vmem:[#allocation27_spill] sm:$0xff] %v8566_v61  ;;  %v8594_v61 = vpop.f32.mrb[6].mxu0 }
 0x147   :  { %v2896_v10 = vcombine.low %v2840_v45, %v2856_v2  ;;  %v2519_v9 = vrot.slane %v2505_v19, %v7357_v55  ;;  %v2641_v36 = vcombine.high %v8345_v29, %v8381_v34  ;;  %v2673_v11 = vcombine.high %v8405_v4, %v8408_v24  ;;  %10312 = vst [vmem:[#allocation31_spill] sm:$0xff] %v8573_v46  ;;  %v8597_v41 = vpop.f32.mrb[7].mxu0 }
 0x148   :  { %v8576_v3 = vrot.slane %v2760_v12, %v7357_v55  ;;  %v8579_v54 = vrot.slane %v2792_v22, %v7357_v55  ;;  %v2928_v58 = vcombine.low %v2872_v38, %v2888_v53  ;;  %v2551_v6 = vrot.slane %v2537_v28, %v7357_v55  ;;  %10317 = vst [vmem:[#allocation77_spill] sm:$0xff] %v8594_v61  ;;  %v8603_v8 = vpop.f32.mrb[8].mxu0 }
 0x149   :  { %v8583_v57 = vrot.slane %v2896_v10, %v7357_v55  ;;  %v2655_v19 = vrot.slane %v2641_v36, %v7357_v55  ;;  %v2687_v29 = vrot.slane %v2673_v11, %v7357_v55  ;;  %v2761_v34 = vcombine.high %v2704_v27, %v2720_v20  ;;  %10318 = vst [vmem:[#allocation78_spill] sm:$0xff] %v8597_v41 }
 0x14a   :  { %10313 = vst [vmem:[#allocation34_spill] sm:$0xff] %v8576_v3  ;;  %10314 = vst [vmem:[#allocation36_spill] sm:$0xff] %v8579_v54  ;;  %v2825_v4 = vcombine.high %v8576_v3, %v8579_v54  ;;  %v8590_v24 = vrot.slane %v2928_v58, %v7357_v55  ;;  %v2558_v22 = vcombine.low %v2519_v9, %v2551_v6 }
 0x14b   :  { %10315 = vst [vmem:[#allocation75_spill] sm:$0xff] %v8583_v57  ;;  %v2694_v28 = vcombine.low %v2655_v19, %v2687_v29  ;;  %v2775_v10 = vrot.slane %v2761_v34, %v7357_v55  ;;  %v2793_v46 = vcombine.high %v2736_v16, %v2752_v26  ;;  %v2897_v36 = vcombine.high %v2840_v45, %v2856_v2  ;;  %v8607_v26 = vpop.f32.mrb[9].mxu0 }
 0x14c   :  { %10316 = vst [vmem:[#allocation76_spill] sm:$0xff] %v8590_v24  ;;  %v2961_v27 = vcombine.high %v8583_v57, %v8590_v24  ;;  %v2929_v11 = vcombine.high %v2872_v38, %v2888_v53  ;;  %v2559_v58 = vcombine.high %v2519_v9, %v2551_v6  ;;  %10319 = vst [vmem:[#allocation79_spill] sm:$0xff] %v8603_v8  ;;  %v8614_v9 = vpop.f32.mrb[10].mxu0 }
 0x14d   :  { %v6791_v12 = vpack.i.bf16 %v2694_v28, %v2558_v22  ;;  %v2807_v54 = vrot.slane %v2793_v46, %v7357_v55  ;;  %v2911_v3 = vrot.slane %v2897_v36, %v7357_v55  ;;  %v2695_v34 = vcombine.high %v2655_v19, %v2687_v29  ;;  %10320 = vst [vmem:[#allocation80_spill] sm:$0xff] %v8607_v26  ;;  %v8619_v29 = vpop.f32.mrb[11].mxu0 }
 0x14e   :  { %v6776_v16 = vpack.i.bf16 %v2961_v27, %v2825_v4  ;;  %v2943_v2 = vrot.slane %v2929_v11, %v7357_v55  ;;  %v2697_v45 = vcombine.high %v8395_v32, %v8416_v43  ;;  %v2713_v38 = vcombine.high %v8401_v7, %v8420_v52  ;;  %10321 = vst [vmem:[#allocation81_spill] sm:$0xff] %v8614_v9  ;;  %v8628_v43 = vpop.f32.mrb[12].mxu0  ;;  %v290_v52 = vpop.permute.xlu0 %289 }
 0x14f   :  { %6792 = vrot.lane.b32.xlu1 %v6791_v12, %s6992_s22  ;;  %v2826_v53 = vcombine.low %v2775_v10, %v2807_v54  ;;  %v6801_v46 = vpack.i.bf16 %v2695_v34, %v2559_v58  ;;  %v2827_v6 = vcombine.high %v2775_v10, %v2807_v54  ;;  %v2729_v19 = vcombine.high %v8429_v31, %v8440_v42  ;;  %v8639_v12 = vpop.f32.mrb[13].mxu0 }
 0x150   :  { %10322 = vst [vmem:[#allocation82_spill] sm:$0xff] %v8619_v29  ;;  %6777 = vrot.lane.b32.xlu0 %v6776_v16, %s6988_s20  ;;  %v2962_v4 = vcombine.low %v2911_v3, %v2943_v2  ;;  %v2963_v22 = vcombine.high %v2911_v3, %v2943_v2  ;;  %v8623_v32 = vrot.slane %v2697_v45, %v7347_v40  ;;  %10323 = vst [vmem:[#allocation83_spill] sm:$0xff] %v8628_v43  ;;  %v8645_v11 = vpop.f32.mrb[14].mxu0  ;;  %v10329_v16 = vld [vmem:[#allocation39_spill] sm:$0xff] }
 0x151   :  { %v8626_v7 = vrot.slane %v2713_v38, %v7347_v40  ;;  %v8631_v54 = vrot.slane %v2729_v19, %v7347_v40  ;;  %v2745_v31 = vcombine.high %v8435_v49, %v8444_v60  ;;  %v2833_v42 = vcombine.high %v8451_v51, %v8461_v30  ;;  %10324 = vst [vmem:[#allocation84_spill] sm:$0xff] %v8639_v12  ;;  %v8659_v51 = vpop.f32.mrb[15].mxu0 }
 0x152   :  { %v2849_v3 = vcombine.high %v8457_v47, %v8469_v35  ;;  %v6786_v28 = vpack.i.bf16 %v2962_v4, %v2826_v53  ;;  %v6796_v10 = vpack.i.bf16 %v2963_v22, %v2827_v6  ;;  %v2865_v27 = vcombine.high %v8477_v37, %v8499_v59  ;;  %10325 = vst [vmem:[#allocation85_spill] sm:$0xff] %v8645_v11  ;;  %v10327_v59 = vld [vmem:[#allocation37_spill] sm:$0xff]  ;;  %v10331_v53 = vld [vmem:[#allocation42_spill] sm:$0xff]  ;;  %v10332_v6 = vld [vmem:[#allocation44_spill] sm:$0xff] }
 0x153   :  { %v2776_v36 = vcombine.low %v8623_v32, %v8626_v7  ;;  %6802 = vrot.lane.b32.xlu1 %v6801_v46, %s6993_s1  ;;  %v8649_v60 = vrot.slane %v2745_v31, %v7347_v40  ;;  %v8652_v30 = vrot.slane %v2833_v42, %v7347_v40  ;;  %v2881_v49 = vcombine.high %v8483_v23, %v8520_v1  ;;  %v10333_v4 = vld [vmem:[#allocation38_spill] sm:$0xff]  ;;  %v10335_v42 = vld [vmem:[#allocation41_spill] sm:$0xff] }
 0x154   :  { %v8655_v47 = vrot.slane %v2849_v3, %v7347_v40  ;;  %10326 = vst [vmem:[#allocation86_spill] sm:$0xff] %v8659_v51  ;;  %6787 = vrot.lane.b32.xlu0 %v6786_v28, %s6987_s2  ;;  %v8664_v37 = vrot.slane %v2865_v27, %v7347_v40  ;;  %v10328_v58 = vrot.slane %v10327_v59, %v7110_v13 }
 0x155   :  { %v2784_v35 = vrot.slane %v2776_v36, %v7357_v55  ;;  %v10330_v2 = vrot.slane %v10329_v16, %v7110_v13  ;;  %v2808_v23 = vcombine.low %v8631_v54, %v8649_v60  ;;  %v8679_v1 = vrot.slane %v2881_v49, %v7347_v40  ;;  %v10337_v36 = vld [vmem:[#allocation45_spill] sm:$0xff]  ;;  %v10338_v16 = vld [vmem:[#allocation48_spill] sm:$0xff] }
 0x156   :  { %v8669_v34 = vmul.f32 %v10328_v58, %v290_v52  ;;  %v2912_v38 = vcombine.low %v8652_v30, %v8655_v47  ;;  %v8684_v46 = vmul.f32 %v10331_v53, %v290_v52  ;;  %v8687_v19 = vmul.f32 %v10332_v6, %v290_v52  ;;  %v10339_v53 = vld [vmem:[#allocation40_spill] sm:$0xff] }
 0x157   :  { %v8674_v45 = vmul.f32 %v10330_v2, %v290_v52  ;;  %v10334_v22 = vrot.slane %v10333_v4, %v7110_v13  ;;  %v10336_v3 = vrot.slane %v10335_v42, %v7110_v13  ;;  %v8700_v27 = vmul.f32 %v10337_v36, %v290_v52  ;;  %v10344_v36 = vld [vmem:[#allocation51_spill] sm:$0xff] }
 0x158   :  { %v2816_v49 = vrot.slane %v2808_v23, %v7357_v55  ;;  %v2920_v59 = vrot.slane %v2912_v38, %v7357_v55  ;;  %v2944_v58 = vcombine.low %v8664_v37, %v8679_v1  ;;  %v8707_v2 = vmul.f32 %v10338_v16, %v290_v52  ;;  %6797 = vrot.lane.b32.xlu0 %v6796_v10, %s6989_s5  ;;  %v10343_v23 = vld [vmem:[#allocation49_spill] sm:$0xff]  ;;  %v10345_v10 = vld [vmem:[#allocation43_spill] sm:$0xff] }
 0x159   :  { %v8692_v31 = vmul.f32 %v10334_v22, %v290_v52  ;;  %v8697_v28 = vmul.f32 %v10336_v3, %v290_v52  ;;  %v10340_v6 = vrot.slane %v10339_v53, %v7110_v13  ;;  %v10341_v22 = vld [vmem:[#allocation46_spill] sm:$0xff]  ;;  %v8721_v38 = vmul.f32 %v10343_v23, %v290_v52  ;;  %v10350_v23 = vld [vmem:[#allocation52_spill] sm:$0xff] }
 0x15a   :  { %v10342_v42 = vrot.slane %v10341_v22, %v7110_v13  ;;  %v8724_v20 = vmul.f32 %v10344_v36, %v290_v52  ;;  %v2828_v16 = vcombine.low %v2784_v35, %v2816_v49  ;;  %v2952_v24 = vrot.slane %v2944_v58, %v7357_v55 }
 0x15b   :  { %v8713_v4 = vmul.f32 %v10340_v6, %v290_v52  ;;  %v10346_v57 = vrot.slane %v10345_v10, %v7110_v13  ;;  %v10347_v6 = vld [vmem:[#allocation47_spill] sm:$0xff]  ;;  %v8741_v43 = vmul.f32 %v10350_v23, %v290_v52  ;;  %v2968_v36 = vcombine.low %v8669_v34, %v8684_v46 }
 0x15c   :  { %v8718_v3 = vmul.f32 %v10342_v42, %v290_v52  ;;  %v10348_v11 = vrot.slane %v10347_v6, %v7110_v13  ;;  %v10349_v42 = vld [vmem:[#allocation50_spill] sm:$0xff]  ;;  %v2984_v58 = vcombine.low %v8674_v45, %v8687_v19  ;;  %v2964_v10 = vcombine.low %v2920_v59, %v2952_v24 }
 0x15d   :  { %v8730_v53 = vmul.f32 %v10346_v57, %v290_v52  ;;  %v8738_v51 = vmul.f32 %v10349_v42, %v290_v52  ;;  %v3000_v57 = vcombine.low %v8692_v31, %v8700_v27  ;;  %v3104_v6 = vcombine.low %v8713_v4, %v8721_v38 }
 0x15e   :  { %v8735_v22 = vmul.f32 %v10348_v11, %v290_v52  ;;  %v3016_v11 = vcombine.low %v8697_v28, %v8707_v2  ;;  %v2976_v42 = vrot.slane %v2968_v36, %v7347_v40  ;;  %v2992_v52 = vrot.slane %v2984_v58, %v7347_v40 }
 0x15f   :  { %v3120_v23 = vcombine.low %v8718_v3, %v8724_v20  ;;  %v3136_v12 = vcombine.low %v8730_v53, %v8738_v51  ;;  %v6806_v9 = vpack.i.bf16 %v2964_v10, %v2828_v16  ;;  %v3008_v29 = vrot.slane %v3000_v57, %v7347_v40 }
 0x160   :  { %v3024_v8 = vrot.slane %v3016_v11, %v7347_v40  ;;  %v3112_v26 = vrot.slane %v3104_v6, %v7347_v40  ;;  %v3032_v61 = vcombine.low %v2976_v42, %v2992_v52  ;;  %v3152_v58 = vcombine.low %v8735_v22, %v8741_v43 }
 0x161   :  { %v3128_v41 = vrot.slane %v3120_v23, %v7347_v40  ;;  %v3144_v36 = vrot.slane %v3136_v12, %v7347_v40  ;;  %6807 = vrot.lane.b32.xlu0 %v6806_v9, %s6990_s21  ;;  %v2829_v63 = vcombine.high %v2784_v35, %v2816_v49  ;;  %v2965_v33 = vcombine.high %v2920_v59, %v2952_v24 }
 0x162   :  { %v3064_v14 = vcombine.low %v3008_v29, %v3024_v8  ;;  %v3033_v16 = vcombine.high %v2976_v42, %v2992_v52  ;;  %v8768_v10 = vrot.slane %v3032_v61, %v7357_v55  ;;  %v3160_v57 = vrot.slane %v3152_v58, %v7347_v40 }
 0x163   :  { %v3168_v11 = vcombine.low %v3112_v26, %v3128_v41  ;;  %v3065_v6 = vcombine.high %v3008_v29, %v3024_v8  ;;  %v6816_v12 = vpack.i.bf16 %v2965_v33, %v2829_v63  ;;  %v3169_v62 = vcombine.high %v3112_v26, %v3128_v41 }
 0x164   :  { %10351 = vst [vmem:[#allocation37_spill] sm:$0xff] %v8768_v10  ;;  %v8772_v23 = vrot.slane %v3064_v14, %v7357_v55  ;;  %v3047_v18 = vrot.slane %v3033_v16, %v7357_v55  ;;  %v3200_v35 = vcombine.low %v3144_v36, %v3160_v57  ;;  %v3201_v49 = vcombine.high %v3144_v36, %v3160_v57 }
 0x165   :  { %v8776_v9 = vrot.slane %v3168_v11, %v7357_v55  ;;  %v3079_v24 = vrot.slane %v3065_v6, %v7357_v55  ;;  %6817 = vrot.lane.b32.xlu0 %v6816_v12, %s6991_s0  ;;  %v3183_v33 = vrot.slane %v3169_v62, %v7357_v55  ;;  %v2777_v63 = vcombine.high %v8623_v32, %v8626_v7 }
 0x166   :  { %10352 = vst [vmem:[#allocation39_spill] sm:$0xff] %v8772_v23  ;;  %v3097_v61 = vcombine.high %v8768_v10, %v8772_v23  ;;  %v8788_v14 = vrot.slane %v3200_v35, %v7357_v55  ;;  %v3215_v26 = vrot.slane %v3201_v49, %v7357_v55  ;;  %v2809_v29 = vcombine.high %v8631_v54, %v8649_v60  ;;  %v297_v35 = vpop.permute.xlu1 %296 }
 0x167   :  { %v3098_v41 = vcombine.low %v3047_v18, %v3079_v24  ;;  %v2791_v59 = vrot.slane %v2777_v63, %v7357_v55  ;;  %v2913_v42 = vcombine.high %v8652_v30, %v8655_v47  ;;  %v2945_v62 = vcombine.high %v8664_v37, %v8679_v1 }
 0x168   :  { %v3099_v52 = vcombine.high %v3047_v18, %v3079_v24  ;;  %v3233_v7 = vcombine.high %v8776_v9, %v8788_v14  ;;  %v3234_v36 = vcombine.low %v3183_v33, %v3215_v26  ;;  %v2823_v58 = vrot.slane %v2809_v29, %v7357_v55 }
 0x169   :  { %v2927_v54 = vrot.slane %v2913_v42, %v7357_v55  ;;  %v2959_v60 = vrot.slane %v2945_v62, %v7357_v55  ;;  %v3235_v16 = vcombine.high %v3183_v33, %v3215_v26  ;;  %v2969_v30 = vcombine.high %v8669_v34, %v8684_v46 }
 0x16a   :  { %v6811_v47 = vpack.i.bf16 %v3233_v7, %v3097_v61  ;;  %v6821_v37 = vpack.i.bf16 %v3234_v36, %v3098_v41  ;;  %v2830_v18 = vcombine.low %v2791_v59, %v2823_v58  ;;  %v2831_v1 = vcombine.high %v2791_v59, %v2823_v58  ;;  %v10357_v7 = vld [vmem:[#allocation2_spill] sm:$0xff] }
 0x16b   :  { %v2966_v57 = vcombine.low %v2927_v54, %v2959_v60  ;;  %v6831_v11 = vpack.i.bf16 %v3235_v16, %v3099_v52  ;;  %v2967_v6 = vcombine.high %v2927_v54, %v2959_v60  ;;  %v8808_v12 = vrot.slane %v2969_v30, %v7347_v40  ;;  %v10358_v58 = vld [vmem:[#allocation6_spill] sm:$0xff] }
 0x16c   :  { %6812 = vrot.lane.b32.xlu1 %v6811_v47, %s6988_s20  ;;  %v2985_v24 = vcombine.high %v8674_v45, %v8687_v19  ;;  %v3001_v49 = vcombine.high %v8692_v31, %v8700_v27  ;;  %v3017_v34 = vcombine.high %v8697_v28, %v8707_v2  ;;  %v3105_v46 = vcombine.high %v8713_v4, %v8721_v38 }
 0x16d   :  { %v6826_v61 = vpack.i.bf16 %v2966_v57, %v2830_v18  ;;  %v6836_v33 = vpack.i.bf16 %v2967_v6, %v2831_v1  ;;  %v3121_v63 = vcombine.high %v8718_v3, %v8724_v20  ;;  %v3137_v41 = vcombine.high %v8730_v53, %v8738_v51 }
 0x16e   :  { %v8824_v26 = vrot.slane %v2985_v24, %v7347_v40  ;;  %v8827_v45 = vrot.slane %v3001_v49, %v7347_v40  ;;  %v8830_v19 = vrot.slane %v3017_v34, %v7347_v40  ;;  %v8833_v31 = vrot.slane %v3105_v46, %v7347_v40 }
 0x16f   :  { %6827 = vrot.lane.b32.xlu0 %v6826_v61, %s6992_s22  ;;  %v8837_v28 = vrot.slane %v3121_v63, %v7347_v40  ;;  %v8840_v20 = vrot.slane %v3137_v41, %v7347_v40  ;;  %v3153_v51 = vcombine.high %v8735_v22, %v8741_v43  ;;  %v10353_v27 = vrot.slane %v8102_v25, %v7110_v13 }
 0x170   :  { %6822 = vrot.lane.b32.xlu1 %v6821_v37, %s6987_s2  ;;  %v3048_v4 = vcombine.low %v8808_v12, %v8824_v26  ;;  %v3080_v3 = vcombine.low %v8827_v45, %v8830_v19  ;;  %v10354_v38 = vrot.slane %v8123_v17, %v7110_v13  ;;  %v8860_v43 = vmul.f32 %v8144_v50, %v297_v35 }
 0x171   :  { %v8847_v2 = vmul.f32 %v10353_v27, %v297_v35  ;;  %v8863_v25 = vrot.slane %v3153_v51, %v7347_v40  ;;  %v3184_v22 = vcombine.low %v8833_v31, %v8837_v28  ;;  %v8868_v29 = vmul.f32 %v8156_v0, %v297_v35 }
 0x172   :  { %v8857_v53 = vmul.f32 %v10354_v38, %v297_v35  ;;  %v10355_v59 = vrot.slane %v8120_v39, %v7110_v13  ;;  %v3056_v17 = vrot.slane %v3048_v4, %v7357_v55  ;;  %v3088_v62 = vrot.slane %v3080_v3, %v7357_v55 }
 0x173   :  { %v10356_v50 = vrot.slane %v8135_v44, %v7110_v13  ;;  %v8883_v36 = vmul.f32 %v10357_v7, %v297_v35  ;;  %6837 = vrot.lane.b32.xlu0 %v6836_v33, %s6993_s1  ;;  %v3192_v0 = vrot.slane %v3184_v22, %v7357_v55  ;;  %v3216_v39 = vcombine.low %v8840_v20, %v8863_v25 }
 0x174   :  { %v8873_v42 = vmul.f32 %v10355_v59, %v297_v35  ;;  %v8890_v54 = vmul.f32 %v10358_v58, %v297_v35  ;;  %v10359_v60 = vrot.slane %v8235_v21, %v7110_v13  ;;  %6832 = vrot.lane.b32.xlu1 %v6831_v11, %s6989_s5  ;;  %v3100_v44 = vcombine.low %v3056_v17, %v3088_v62  ;;  %v10362_v11 = vld [vmem:[#allocation15_spill] sm:$0xff] }
 0x175   :  { %v8880_v52 = vmul.f32 %v10356_v50, %v297_v35  ;;  %v10360_v30 = vrot.slane %v8246_v56, %v7110_v13  ;;  %v8904_v37 = vmul.f32 %v8265_v48, %v297_v35  ;;  %v8907_v18 = vmul.f32 %v8273_v15, %v297_v35  ;;  %v10364_v56 = vld [vmem:[#allocation19_spill] sm:$0xff]  ;;  %v10365_v48 = vld [vmem:[#allocation14_spill] sm:$0xff] }
 0x176   :  { %v8895_v16 = vmul.f32 %v10359_v60, %v297_v35  ;;  %v3224_v1 = vrot.slane %v3216_v39, %v7357_v55  ;;  %v10361_v21 = vrot.slane %v8243_v5, %v7110_v13  ;;  %v10363_v6 = vrot.slane %v10362_v11, %v7110_v13 }
 0x177   :  { %v8901_v47 = vmul.f32 %v10360_v30, %v297_v35  ;;  %v8921_v49 = vmul.f32 %v10364_v56, %v297_v35  ;;  %v8924_v34 = vmul.f32 %v10365_v48, %v297_v35  ;;  %v3240_v15 = vcombine.low %v8847_v2, %v8860_v43 }
 0x178   :  { %v8913_v57 = vmul.f32 %v10361_v21, %v297_v35  ;;  %v8918_v24 = vmul.f32 %v10363_v6, %v297_v35  ;;  %v3256_v46 = vcombine.low %v8857_v53, %v8868_v29  ;;  %v3272_v5 = vcombine.low %v8873_v42, %v8883_v36 }
 0x179   :  { %v3236_v61 = vcombine.low %v3192_v0, %v3224_v1  ;;  %v3288_v33 = vcombine.low %v8880_v52, %v8890_v54  ;;  %v3376_v63 = vcombine.low %v8895_v16, %v8904_v37  ;;  %v3392_v35 = vcombine.low %v8901_v47, %v8907_v18 }
 0x17a   :  { %v3248_v41 = vrot.slane %v3240_v15, %v7347_v40  ;;  %v3264_v51 = vrot.slane %v3256_v46, %v7347_v40  ;;  %v3280_v27 = vrot.slane %v3272_v5, %v7347_v40  ;;  %v3408_v4 = vcombine.low %v8913_v57, %v8921_v49 }
 0x17b   :  { %v6841_v3 = vpack.i.bf16 %v3236_v61, %v3100_v44  ;;  %v3296_v38 = vrot.slane %v3288_v33, %v7347_v40  ;;  %v3384_v22 = vrot.slane %v3376_v63, %v7347_v40  ;;  %v3400_v59 = vrot.slane %v3392_v35, %v7347_v40 }
 0x17c   :  { %v3304_v50 = vcombine.low %v3248_v41, %v3264_v51  ;;  %v3416_v7 = vrot.slane %v3408_v4, %v7347_v40  ;;  %v3424_v39 = vcombine.low %v8918_v24, %v8924_v34  ;;  %v3101_v58 = vcombine.high %v3056_v17, %v3088_v62 }
 0x17d   :  { %6842 = vrot.lane.b32.xlu1 %v6841_v3, %s6990_s21  ;;  %v3336_v60 = vcombine.low %v3280_v27, %v3296_v38  ;;  %v3440_v30 = vcombine.low %v3384_v22, %v3400_v59  ;;  %v3237_v21 = vcombine.high %v3192_v0, %v3224_v1  ;;  %v3305_v11 = vcombine.high %v3248_v41, %v3264_v51 }
 0x17e   :  { %v8951_v44 = vrot.slane %v3304_v50, %v7357_v55  ;;  %v3432_v6 = vrot.slane %v3424_v39, %v7347_v40  ;;  %v3337_v56 = vcombine.high %v3280_v27, %v3296_v38  ;;  %v3441_v48 = vcombine.high %v3384_v22, %v3400_v59 }
 0x17f   :  { %v8955_v15 = vrot.slane %v3336_v60, %v7357_v55  ;;  %v8958_v46 = vrot.slane %v3440_v30, %v7357_v55  ;;  %v6851_v17 = vpack.i.bf16 %v3237_v21, %v3101_v58  ;;  %v3319_v62 = vrot.slane %v3305_v11, %v7357_v55 }
 0x180   :  { %10366 = vst [vmem:[#allocation42_spill] sm:$0xff] %v8951_v44  ;;  %v3472_v5 = vcombine.low %v3416_v7, %v3432_v6  ;;  %v3351_v0 = vrot.slane %v3337_v56, %v7357_v55  ;;  %v3455_v1 = vrot.slane %v3441_v48, %v7357_v55  ;;  %v3473_v61 = vcombine.high %v3416_v7, %v3432_v6  ;;  %v304_v56 = vpop.permute.xlu0 %303 }
 0x181   :  { %10367 = vst [vmem:[#allocation44_spill] sm:$0xff] %v8955_v15  ;;  %10368 = vst [vmem:[#allocation38_spill] sm:$0xff] %v8958_v46  ;;  %v3369_v33 = vcombine.high %v8951_v44, %v8955_v15  ;;  %6852 = vrot.lane.b32.xlu1 %v6851_v17, %s6991_s0  ;;  %v3049_v35 = vcombine.high %v8808_v12, %v8824_v26  ;;  %v3081_v41 = vcombine.high %v8827_v45, %v8830_v19 }
 0x182   :  { %v8973_v51 = vrot.slane %v3472_v5, %v7357_v55  ;;  %v3370_v27 = vcombine.low %v3319_v62, %v3351_v0  ;;  %v3487_v4 = vrot.slane %v3473_v61, %v7357_v55  ;;  %v3185_v3 = vcombine.high %v8833_v31, %v8837_v28 }
 0x183   :  { %v3063_v38 = vrot.slane %v3049_v35, %v7357_v55  ;;  %v3095_v22 = vrot.slane %v3081_v41, %v7357_v55  ;;  %v3217_v59 = vcombine.high %v8840_v20, %v8863_v25  ;;  %v3371_v12 = vcombine.high %v3319_v62, %v3351_v0 }
 0x184   :  { %10369 = vst [vmem:[#allocation41_spill] sm:$0xff] %v8973_v51  ;;  %v3505_v45 = vcombine.high %v8958_v46, %v8973_v51  ;;  %v3506_v19 = vcombine.low %v3455_v1, %v3487_v4  ;;  %v3199_v50 = vrot.slane %v3185_v3, %v7357_v55  ;;  %v3507_v28 = vcombine.high %v3455_v1, %v3487_v4  ;;  %v10372_v1 = vld [vmem:[#allocation59_spill] sm:$0xff] }
 0x185   :  { %v3102_v7 = vcombine.low %v3063_v38, %v3095_v22  ;;  %v3231_v31 = vrot.slane %v3217_v59, %v7357_v55  ;;  %v3103_v39 = vcombine.high %v3063_v38, %v3095_v22  ;;  %v3241_v20 = vcombine.high %v8847_v2, %v8860_v43  ;;  %v10375_v4 = vld [vmem:[#allocation63_spill] sm:$0xff]  ;;  %v10376_v38 = vld [vmem:[#allocation58_spill] sm:$0xff] }
 0x186   :  { %v6846_v58 = vpack.i.bf16 %v3505_v45, %v3369_v33  ;;  %v6856_v60 = vpack.i.bf16 %v3506_v19, %v3370_v27  ;;  %v3257_v25 = vcombine.high %v8857_v53, %v8868_v29  ;;  %v6866_v21 = vpack.i.bf16 %v3507_v28, %v3371_v12  ;;  %v10378_v45 = vld [vmem:[#allocation60_spill] sm:$0xff] }
 0x187   :  { %v3238_v30 = vcombine.low %v3199_v50, %v3231_v31  ;;  %v3239_v11 = vcombine.high %v3199_v50, %v3231_v31  ;;  %v3273_v6 = vcombine.high %v8873_v42, %v8883_v36  ;;  %v8996_v48 = vrot.slane %v3241_v20, %v7347_v40  ;;  %v10381_v28 = vld [vmem:[#allocation64_spill] sm:$0xff]  ;;  %v10382_v20 = vld [vmem:[#allocation65_spill] sm:$0xff] }
 0x188   :  { %6847 = vrot.lane.b32.xlu0 %v6846_v58, %s6988_s20  ;;  %v8999_v17 = vrot.slane %v3257_v25, %v7347_v40  ;;  %v3289_v2 = vcombine.high %v8880_v52, %v8890_v54  ;;  %v3377_v53 = vcombine.high %v8895_v16, %v8904_v37  ;;  %v3393_v42 = vcombine.high %v8901_v47, %v8907_v18  ;;  %v10370_v47 = vld [vmem:[#allocation57_spill] sm:$0xff] }
 0x189   :  { %v6861_v43 = vpack.i.bf16 %v3238_v30, %v3102_v7  ;;  %v6871_v29 = vpack.i.bf16 %v3239_v11, %v3103_v39  ;;  %v9006_v62 = vrot.slane %v3273_v6, %v7347_v40  ;;  %v3409_v52 = vcombine.high %v8913_v57, %v8921_v49  ;;  %v10380_v7 = vld [vmem:[#allocation62_spill] sm:$0xff]  ;;  %v10384_v11 = vld [vmem:[#allocation67_spill] sm:$0xff] }
 0x18a   :  { %v9011_v36 = vrot.slane %v3289_v2, %v7347_v40  ;;  %v3320_v5 = vcombine.low %v8996_v48, %v8999_v17  ;;  %v9016_v0 = vrot.slane %v3377_v53, %v7347_v40  ;;  %v9022_v54 = vrot.slane %v3393_v42, %v7347_v40  ;;  %v10387_v42 = vld [vmem:[#allocation8_spill] sm:$0xff] }
 0x18b   :  { %6862 = vrot.lane.b32.xlu1 %v6861_v43, %s6992_s22  ;;  %v3425_v16 = vcombine.high %v8918_v24, %v8924_v34  ;;  %v10371_v37 = vrot.slane %v10370_v47, %v7110_v13  ;;  %v10373_v61 = vrot.slane %v10372_v1, %v7110_v13  ;;  %v9041_v35 = vrot.slane %v3409_v52, %v7347_v40  ;;  %v10374_v24 = vld [vmem:[#allocation61_spill] sm:$0xff]  ;;  %v10386_v43 = vld [vmem:[#allocation70_spill] sm:$0xff] }
 0x18c   :  { %6857 = vrot.lane.b32.xlu0 %v6856_v60, %s6987_s2  ;;  %v3328_v57 = vrot.slane %v3320_v5, %v7357_v55  ;;  %v3352_v49 = vcombine.low %v9006_v62, %v9011_v36  ;;  %v9044_v34 = vmul.f32 %v10374_v24, %v304_v56  ;;  %v3456_v27 = vcombine.low %v9016_v0, %v9022_v54  ;;  %v10388_v52 = vld [vmem:[#allocation66_spill] sm:$0xff]  ;;  %v10392_v24 = vld [vmem:[#allocation71_spill] sm:$0xff] }
 0x18d   :  { %v9029_v18 = vmul.f32 %v10371_v37, %v304_v56  ;;  %v9034_v33 = vmul.f32 %v10373_v61, %v304_v56  ;;  %v9047_v41 = vrot.slane %v3425_v16, %v7347_v40  ;;  %v9052_v3 = vmul.f32 %v10375_v4, %v304_v56  ;;  %v9097_v37 = vpop.permute.xlu0 %6687  ;;  %v10390_v61 = vld [vmem:[#allocation69_spill] sm:$0xff]  ;;  %v10393_v4 = vld [vmem:[#allocation11_spill] sm:$0xff] }
 0x18e   :  { %v10377_v22 = vrot.slane %v10376_v38, %v7110_v13  ;;  %v3360_v12 = vrot.slane %v3352_v49, %v7357_v55  ;;  %v10379_v19 = vrot.slane %v10378_v45, %v7110_v13  ;;  %v9066_v31 = vmul.f32 %v10380_v7, %v304_v56 }
 0x18f   :  { %v9069_v39 = vmul.f32 %v10381_v28, %v304_v56  ;;  %6872 = vrot.lane.b32.xlu1 %v6871_v29, %s6993_s1  ;;  %v3464_v58 = vrot.slane %v3456_v27, %v7357_v55  ;;  %v3488_v60 = vcombine.low %v9041_v35, %v9047_v41  ;;  %v10383_v25 = vrot.slane %v10382_v20, %v7110_v13 }
 0x190   :  { %v9057_v59 = vmul.f32 %v10377_v22, %v304_v56  ;;  %v9063_v50 = vmul.f32 %v10379_v19, %v304_v56  ;;  %v10385_v6 = vrot.slane %v10384_v11, %v7110_v13  ;;  %6867 = vrot.lane.b32.xlu0 %v6866_v21, %s6989_s5  ;;  %v3372_v53 = vcombine.low %v3328_v57, %v3360_v12 }
 0x191   :  { %v9078_v30 = vmul.f32 %v10383_v25, %v304_v56  ;;  %v9087_v29 = vmul.f32 %v10386_v43, %v304_v56  ;;  %v9090_v5 = vmul.f32 %v10387_v42, %v304_v56  ;;  %v10389_v16 = vrot.slane %v10388_v52, %v7110_v13  ;;  %v9125_v25 = vpop.permute.xlu1 %310 }
 0x192   :  { %v9083_v2 = vmul.f32 %v10385_v6, %v304_v56  ;;  %v3496_v1 = vrot.slane %v3488_v60, %v7357_v55  ;;  %v10391_v49 = vrot.slane %v10390_v61, %v7110_v13  ;;  %v9106_v27 = vmul.f32 %v10392_v24, %v304_v56 }
 0x193   :  { %v9095_v47 = vmul.f32 %v10389_v16, %v304_v56  ;;  %v9109_v38 = vmul.f32 %v10393_v4, %v304_v56  ;;  %v3512_v22 = vcombine.low %v9029_v18, %v9044_v34  ;;  %v3528_v45 = vcombine.low %v9034_v33, %v9052_v3 }
 0x194   :  { %v9103_v21 = vmul.f32 %v10391_v49, %v304_v56  ;;  %v3544_v19 = vcombine.low %v9057_v59, %v9066_v31  ;;  %v3560_v7 = vcombine.low %v9063_v50, %v9069_v39  ;;  %v3508_v28 = vcombine.low %v3464_v58, %v3496_v1 }
 0x195   :  { %v3648_v60 = vcombine.low %v9078_v30, %v9087_v29  ;;  %v3664_v56 = vcombine.low %v9083_v2, %v9090_v5  ;;  %v3680_v20 = vcombine.low %v9095_v47, %v9106_v27  ;;  %v3520_v11 = vrot.slane %v3512_v22, %v7347_v40  ;;  %v9136_v22 = vpop.permute.xlu0 %6697  ;;  %v9146_v8 = vpop.permute.xlu1 %6692 }
 0x196   :  { %v3536_v6 = vrot.slane %v3528_v45, %v7347_v40  ;;  %v3552_v43 = vrot.slane %v3544_v19, %v7347_v40  ;;  %v3568_v42 = vrot.slane %v3560_v7, %v7347_v40  ;;  %v6876_v52 = vpack.i.bf16 %v3508_v28, %v3372_v53 }
 0x197   :  { %v3656_v16 = vrot.slane %v3648_v60, %v7347_v40  ;;  %v3672_v61 = vrot.slane %v3664_v56, %v7347_v40  ;;  %v3688_v49 = vrot.slane %v3680_v20, %v7347_v40  ;;  %v3696_v63 = vcombine.low %v9103_v21, %v9109_v38 }
 0x198   :  { %v3576_v24 = vcombine.low %v3520_v11, %v3536_v6  ;;  %v3608_v4 = vcombine.low %v3552_v43, %v3568_v42  ;;  %v3373_v26 = vcombine.high %v3328_v57, %v3360_v12  ;;  %6877 = vrot.lane.b32.xlu0 %v6876_v52, %s6990_s21  ;;  %v3509_v19 = vcombine.high %v3464_v58, %v3496_v1 }
 0x199   :  { %v3712_v45 = vcombine.low %v3656_v16, %v3672_v61  ;;  %v3577_v7 = vcombine.high %v3520_v11, %v3536_v6  ;;  %v3609_v53 = vcombine.high %v3552_v43, %v3568_v42  ;;  %v3704_v56 = vrot.slane %v3696_v63, %v7347_v40 }
 0x19a   :  { %v9140_v28 = vrot.slane %v3576_v24, %v7357_v55  ;;  %v9143_v60 = vrot.slane %v3608_v4, %v7357_v55  ;;  %v3713_v20 = vcombine.high %v3656_v16, %v3672_v61  ;;  %v6886_v12 = vpack.i.bf16 %v3509_v19, %v3373_v26  ;;  %v9170_v19 = vpop.permute.xlu0 %6707 }
 0x19b   :  { %v9149_v57 = vrot.slane %v3712_v45, %v7357_v55  ;;  %v3591_v52 = vrot.slane %v3577_v7, %v7357_v55  ;;  %v3623_v58 = vrot.slane %v3609_v53, %v7357_v55  ;;  %v3744_v11 = vcombine.low %v3688_v49, %v3704_v56 }
 0x19c   :  { %10394 = vst [vmem:[#allocation45_spill] sm:$0xff] %v9140_v28  ;;  %10395 = vst [vmem:[#allocation48_spill] sm:$0xff] %v9143_v60  ;;  %v3641_v1 = vcombine.high %v9140_v28, %v9143_v60  ;;  %v3727_v63 = vrot.slane %v3713_v20, %v7357_v55  ;;  %6887 = vrot.lane.b32.xlu0 %v6886_v12, %s6991_s0  ;;  %v3745_v42 = vcombine.high %v3688_v49, %v3704_v56 }
 0x19d   :  { %10396 = vst [vmem:[#allocation40_spill] sm:$0xff] %v9149_v57  ;;  %v3642_v43 = vcombine.low %v3591_v52, %v3623_v58  ;;  %v3321_v26 = vcombine.high %v8996_v48, %v8999_v17  ;;  %v3353_v16 = vcombine.high %v9006_v62, %v9011_v36  ;;  %v9164_v61 = vrot.slane %v3744_v11, %v7357_v55 }
 0x19e   :  { %v3457_v24 = vcombine.high %v9016_v0, %v9022_v54  ;;  %v3489_v4 = vcombine.high %v9041_v35, %v9047_v41  ;;  %v3643_v45 = vcombine.high %v3591_v52, %v3623_v58  ;;  %v3759_v49 = vrot.slane %v3745_v42, %v7357_v55  ;;  %v9183_v35 = vpop.permute.xlu1 %6702 }
 0x19f   :  { %10397 = vst [vmem:[#allocation46_spill] sm:$0xff] %v9164_v61  ;;  %v3335_v7 = vrot.slane %v3321_v26, %v7357_v55  ;;  %v3367_v48 = vrot.slane %v3353_v16, %v7357_v55  ;;  %v3513_v17 = vcombine.high %v9029_v18, %v9044_v34  ;;  %v3777_v36 = vcombine.high %v9149_v57, %v9164_v61 }
 0x1a0   :  { %v3471_v0 = vrot.slane %v3457_v24, %v7357_v55  ;;  %v3503_v54 = vrot.slane %v3489_v4, %v7357_v55  ;;  %v3778_v41 = vcombine.low %v3727_v63, %v3759_v49  ;;  %v3779_v56 = vcombine.high %v3727_v63, %v3759_v49  ;;  %v9197_v4 = vpop.permute.xlu0 %6717  ;;  %v10400_v49 = vld [vmem:[#allocation17_spill] sm:$0xff] }
 0x1a1   :  { %v3374_v53 = vcombine.low %v3335_v7, %v3367_v48  ;;  %v3375_v20 = vcombine.high %v3335_v7, %v3367_v48  ;;  %v6881_v12 = vpack.i.bf16 %v3777_v36, %v3641_v1  ;;  %v9186_v18 = vrot.slane %v3513_v17, %v7347_v40  ;;  %v10402_v17 = vld [vmem:[#allocation4_spill] sm:$0xff] }
 0x1a2   :  { %v3510_v52 = vcombine.low %v3471_v0, %v3503_v54  ;;  %v3511_v58 = vcombine.high %v3471_v0, %v3503_v54  ;;  %v6891_v34 = vpack.i.bf16 %v3778_v41, %v3642_v43  ;;  %v6901_v11 = vpack.i.bf16 %v3779_v56, %v3643_v45  ;;  %v10403_v0 = vld [vmem:[#allocation7_spill] sm:$0xff]  ;;  %v10404_v56 = vld [vmem:[#allocation13_spill] sm:$0xff] }
 0x1a3   :  { %v3529_v42 = vcombine.high %v9034_v33, %v9052_v3  ;;  %v3545_v26 = vcombine.high %v9057_v59, %v9066_v31  ;;  %6882 = vrot.lane.b32.xlu1 %v6881_v12, %s6988_s20  ;;  %v3561_v1 = vcombine.high %v9063_v50, %v9069_v39  ;;  %v3649_v63 = vcombine.high %v9078_v30, %v9087_v29  ;;  %v10398_v30 = vld [vmem:[#allocation18_spill] sm:$0xff] }
 0x1a4   :  { %v6896_v16 = vpack.i.bf16 %v3510_v52, %v3374_v53  ;;  %v6906_v24 = vpack.i.bf16 %v3511_v58, %v3375_v20  ;;  %v3665_v3 = vcombine.high %v9083_v2, %v9090_v5  ;;  %v3681_v59 = vcombine.high %v9095_v47, %v9106_v27  ;;  %v9224_v2 = vpop.permute.xlu1 %6712  ;;  %v10406_v52 = vld [vmem:[#allocation3_spill] sm:$0xff] }
 0x1a5   :  { %v9200_v43 = vrot.slane %v3529_v42, %v7347_v40  ;;  %v9203_v33 = vrot.slane %v3545_v26, %v7347_v40  ;;  %v9211_v50 = vrot.slane %v3561_v1, %v7347_v40  ;;  %v9214_v31 = vrot.slane %v3649_v63, %v7347_v40  ;;  %v10409_v63 = vld [vmem:[#allocation74_spill] sm:$0xff] }
 0x1a6   :  { %6897 = vrot.lane.b32.xlu0 %v6896_v16, %s6992_s22  ;;  %v3697_v39 = vcombine.high %v9103_v21, %v9109_v38  ;;  %v10399_v29 = vrot.slane %v10398_v30, %v7110_v13  ;;  %v9229_v47 = vrot.slane %v3665_v3, %v7347_v40  ;;  %v9232_v27 = vrot.slane %v3681_v59, %v7347_v40  ;;  %v10408_v16 = vld [vmem:[#allocation73_spill] sm:$0xff]  ;;  %v9281_v59 = vpop.permute.xlu0 %6727 }
 0x1a7   :  { %v3592_v5 = vcombine.low %v9186_v18, %v9200_v43  ;;  %v10401_v21 = vrot.slane %v10400_v49, %v7110_v13  ;;  %6892 = vrot.lane.b32.xlu1 %v6891_v34, %s6987_s2  ;;  %v3624_v7 = vcombine.low %v9203_v33, %v9211_v50  ;;  %v9248_v36 = vmul.f32 %v10402_v17, %v9125_v25  ;;  %v10410_v30 = vld [vmem:[#allocation5_spill] sm:$0xff] }
 0x1a8   :  { %v9222_v45 = vmul.f32 %v10399_v29, %v9125_v25  ;;  %v9244_v48 = vrot.slane %v3697_v39, %v7347_v40  ;;  %v9252_v54 = vmul.f32 %v10403_v0, %v9125_v25  ;;  %v3728_v53 = vcombine.low %v9214_v31, %v9229_v47 }
 0x1a9   :  { %v9238_v38 = vmul.f32 %v10401_v21, %v9125_v25  ;;  %v3600_v41 = vrot.slane %v3592_v5, %v7357_v55  ;;  %v10405_v20 = vrot.slane %v10404_v56, %v7110_v13  ;;  %v10407_v58 = vrot.slane %v10406_v52, %v7110_v13  ;;  %v10412_v5 = vld [vmem:[#allocation23_spill] sm:$0xff]  ;;  %v10415_v56 = vld [vmem:[#allocation30_spill] sm:$0xff]  ;;  %v10416_v52 = vld [vmem:[#allocation28_spill] sm:$0xff] }
 0x1aa   :  { %6907 = vrot.lane.b32.xlu0 %v6906_v24, %s6993_s1  ;;  %v3632_v42 = vrot.slane %v3624_v7, %v7357_v55  ;;  %v3760_v26 = vcombine.low %v9232_v27, %v9244_v48  ;;  %v9275_v1 = vmul.f32 %v10408_v16, %v9125_v25  ;;  %v9279_v3 = vmul.f32 %v10409_v63, %v9125_v25  ;;  %v10414_v7 = vld [vmem:[#allocation32_spill] sm:$0xff]  ;;  %v9312_v63 = vpop.permute.xlu1 %6722  ;;  %v9346_v28 = vpop.permute.xlu0 %6737 }
 0x1ab   :  { %v9261_v12 = vmul.f32 %v10405_v20, %v9125_v25  ;;  %v9267_v34 = vmul.f32 %v10407_v58, %v9125_v25  ;;  %v3736_v39 = vrot.slane %v3728_v53, %v7357_v55  ;;  %v10411_v24 = vrot.slane %v10410_v30, %v7110_v13  ;;  %6902 = vrot.lane.b32.xlu1 %v6901_v11, %s6989_s5  ;;  %v10418_v30 = vld [vmem:[#allocation25_spill] sm:$0xff] }
 0x1ac   :  { %v10413_v49 = vrot.slane %v10412_v5, %v7110_v13  ;;  %v9298_v17 = vmul.f32 %v10414_v7, %v9125_v25  ;;  %v3644_v0 = vcombine.low %v3600_v41, %v3632_v42  ;;  %v3768_v53 = vrot.slane %v3760_v26, %v7357_v55  ;;  %v10420_v26 = vld [vmem:[#allocation33_spill] sm:$0xff] }
 0x1ad   :  { %v9288_v29 = vmul.f32 %v10411_v24, %v9125_v25  ;;  %v9304_v20 = vmul.f32 %v10415_v56, %v9125_v25  ;;  %v10417_v58 = vrot.slane %v10416_v52, %v7110_v13  ;;  %v10419_v24 = vrot.slane %v10418_v30, %v7110_v13 }
 0x1ae   :  { %v9294_v21 = vmul.f32 %v10413_v49, %v9125_v25  ;;  %v9322_v5 = vmul.f32 %v10420_v26, %v9125_v25  ;;  %v10421_v49 = vld [vmem:[#allocation35_spill] sm:$0xff]  ;;  %v3784_v56 = vcombine.low %v9222_v45, %v9248_v36  ;;  %v3780_v52 = vcombine.low %v3736_v39, %v3768_v53 }
 0x1af   :  { %v9310_v16 = vmul.f32 %v10417_v58, %v9125_v25  ;;  %v9318_v11 = vmul.f32 %v10419_v24, %v9125_v25  ;;  %v9326_v7 = vmul.f32 %v10421_v49, %v9125_v25  ;;  %v3800_v58 = vcombine.low %v9238_v38, %v9252_v54 }
 0x1b0   :  { %v3816_v13 = vcombine.low %v9261_v12, %v9275_v1  ;;  %v3832_v30 = vcombine.low %v9267_v34, %v9279_v3  ;;  %v3792_v24 = vrot.slane %v3784_v56, %v7347_v40  ;;  %v3920_v26 = vcombine.low %v9288_v29, %v9298_v17 }
 0x1b1   :  { %v3936_v25 = vcombine.low %v9294_v21, %v9304_v20  ;;  %v3952_v49 = vcombine.low %v9310_v16, %v9322_v5  ;;  %v6911_v6 = vpack.i.bf16 %v3780_v52, %v3644_v0  ;;  %v3808_v62 = vrot.slane %v3800_v58, %v7347_v40 }
 0x1b2   :  { %v3824_v32 = vrot.slane %v3816_v13, %v7347_v40  ;;  %v3840_v60 = vrot.slane %v3832_v30, %v7347_v40  ;;  %v3928_v56 = vrot.slane %v3920_v26, %v7347_v40  ;;  %v3968_v15 = vcombine.low %v9318_v11, %v9326_v7  ;;  %v9354_v13 = vpop.permute.xlu1 %6732 }
 0x1b3   :  { %v3944_v61 = vrot.slane %v3936_v25, %v7347_v40  ;;  %v3960_v57 = vrot.slane %v3952_v49, %v7347_v40  ;;  %6912 = vrot.lane.b32.xlu1 %v6911_v6, %s6990_s21  ;;  %v3848_v0 = vcombine.low %v3792_v24, %v3808_v62  ;;  %v3645_v58 = vcombine.high %v3600_v41, %v3632_v42 }
 0x1b4   :  { %v3880_v52 = vcombine.low %v3824_v32, %v3840_v60  ;;  %v3781_v44 = vcombine.high %v3736_v39, %v3768_v53  ;;  %v3976_v30 = vrot.slane %v3968_v15, %v7347_v40  ;;  %v3849_v46 = vcombine.high %v3792_v24, %v3808_v62 }
 0x1b5   :  { %v3984_v51 = vcombine.low %v3928_v56, %v3944_v61  ;;  %v3881_v26 = vcombine.high %v3824_v32, %v3840_v60  ;;  %v9358_v25 = vrot.slane %v3848_v0, %v7357_v55  ;;  %v3985_v10 = vcombine.high %v3928_v56, %v3944_v61  ;;  %v9374_v61 = vpop.permute.xlu0 %6747  ;;  %v10424_v56 = vld [vmem:[#allocation22_spill] sm:$0xff]  ;;  %v10425_v32 = vld [vmem:[#allocation24_spill] sm:$0xff] }
 0x1b6   :  { %v9361_v49 = vrot.slane %v3880_v52, %v7357_v55  ;;  %v6921_v23 = vpack.i.bf16 %v3781_v44, %v3645_v58  ;;  %v4016_v41 = vcombine.low %v3960_v57, %v3976_v30  ;;  %v3863_v42 = vrot.slane %v3849_v46, %v7357_v55  ;;  %v9390_v52 = vpop.permute.xlu1 %6742  ;;  %v10426_v58 = vld [vmem:[#allocation29_spill] sm:$0xff] }
 0x1b7   :  { %v9364_v6 = vrot.slane %v3984_v51, %v7357_v55  ;;  %v3895_v39 = vrot.slane %v3881_v26, %v7357_v55  ;;  %v3999_v60 = vrot.slane %v3985_v10, %v7357_v55  ;;  %v4017_v44 = vcombine.high %v3960_v57, %v3976_v30  ;;  %v10423_v57 = vld [vmem:[#allocation26_spill] sm:$0xff] }
 0x1b8   :  { %10422 = vst [vmem:[#allocation49_spill] sm:$0xff] %v9361_v49  ;;  %v3913_v15 = vcombine.high %v9358_v25, %v9361_v49  ;;  %6922 = vrot.lane.b32.xlu1 %v6921_v23, %s6991_s0  ;;  %v9377_v51 = vrot.slane %v4016_v41, %v7357_v55  ;;  %v3593_v46 = vcombine.high %v9186_v18, %v9200_v43 }
 0x1b9   :  { %v3914_v62 = vcombine.low %v3863_v42, %v3895_v39  ;;  %v3625_v53 = vcombine.high %v9203_v33, %v9211_v50  ;;  %v4031_v24 = vrot.slane %v4017_v44, %v7357_v55  ;;  %v3729_v23 = vcombine.high %v9214_v31, %v9229_v47  ;;  %v9402_v49 = vpop.permute.xlu0 %6757 }
 0x1ba   :  { %v3761_v10 = vcombine.high %v9232_v27, %v9244_v48  ;;  %v6538_v0 = vpack.c.bf16 %v10424_v56, %v10423_v57  ;;  %v4049_v18 = vcombine.high %v9364_v6, %v9377_v51  ;;  %v3607_v43 = vrot.slane %v3593_v46, %v7357_v55 }
 0x1bb   :  { %v3639_v33 = vrot.slane %v3625_v53, %v7357_v55  ;;  %v4050_v50 = vcombine.low %v3999_v60, %v4031_v24  ;;  %v3743_v31 = vrot.slane %v3729_v23, %v7357_v55  ;;  %v3915_v27 = vcombine.high %v3863_v42, %v3895_v39  ;;  %v9415_v23 = vpop.permute.xlu1 %6752 }
 0x1bc   :  { %v3775_v47 = vrot.slane %v3761_v10, %v7357_v55  ;;  %6539 = vmatprep.subr.bf16.mxu1 %v6538_v0  ;;  %v6916_v48 = vpack.i.bf16 %v4049_v18, %v3913_v15  ;;  %v4051_v26 = vcombine.high %v3999_v60, %v4031_v24  ;;  %v6542_v46 = vpack.c.bf16 %v10426_v58, %v10425_v32 }
 0x1bd   :  { %v3646_v30 = vcombine.low %v3607_v43, %v3639_v33  ;;  %v3647_v41 = vcombine.high %v3607_v43, %v3639_v33  ;;  %6541 = vmatpush3.bf16.msra.mxu1 %v6538_v0  ;;  %v6926_v44 = vpack.i.bf16 %v4050_v50, %v3914_v62  ;;  %v3785_v42 = vcombine.high %v9222_v45, %v9248_v36  ;;  %v9435_v50 = vpop.permute.xlu0 %6767 }
 0x1be   :  { %v3782_v57 = vcombine.low %v3743_v31, %v3775_v47  ;;  %v3783_v56 = vcombine.high %v3743_v31, %v3775_v47  ;;  %6917 = vrot.lane.b32.xlu0 %v6916_v48, %s6988_s20  ;;  %v6936_v53 = vpack.i.bf16 %v4051_v26, %v3915_v27  ;;  %v3801_v39 = vcombine.high %v9238_v38, %v9252_v54 }
 0x1bf   :  { %v3817_v15 = vcombine.high %v9261_v12, %v9275_v1  ;;  %v3833_v24 = vcombine.high %v9267_v34, %v9279_v3  ;;  %v3921_v32 = vcombine.high %v9288_v29, %v9298_v17  ;;  %6543 = vmatprep.subr.bf16.mxu1 %v6542_v46  ;;  %v3799_v10 = vrot.slane %v3785_v42, %v7347_v40  ;;  %v10427_v17 = vld [vmem:[#allocation31_spill] sm:$0xff] }
 0x1c0   :  { %v6931_v60 = vpack.i.bf16 %v3782_v57, %v3646_v30  ;;  %v6941_v62 = vpack.i.bf16 %v3783_v56, %v3647_v41  ;;  %v3815_v45 = vrot.slane %v3801_v39, %v7347_v40  ;;  %v3937_v36 = vcombine.high %v9294_v21, %v9304_v20  ;;  %v10428_v21 = vld [vmem:[#allocation27_spill] sm:$0xff]  ;;  %v9442_v30 = vpop.permute.xlu1 %6762  ;;  %v10429_v41 = vld [vmem:[#allocation78_spill] sm:$0xff] }
 0x1c1   :  { %v3831_v38 = vrot.slane %v3817_v15, %v7347_v40  ;;  %6545 = vmatpush3.bf16.msra.mxu1 %v6542_v46  ;;  %v3847_v54 = vrot.slane %v3833_v24, %v7347_v40  ;;  %v3935_v12 = vrot.slane %v3921_v32, %v7347_v40  ;;  %v3953_v34 = vcombine.high %v9310_v16, %v9322_v5  ;;  %v10431_v32 = vld [vmem:[#allocation80_spill] sm:$0xff] }
 0x1c2   :  { %6932 = vrot.lane.b32.xlu1 %v6931_v60, %s6992_s22  ;;  %v3969_v1 = vcombine.high %v9318_v11, %v9326_v7  ;;  %6927 = vrot.lane.b32.xlu0 %v6926_v44, %s6987_s2  ;;  %v3864_v3 = vcombine.low %v3799_v10, %v3815_v45  ;;  %v3951_v29 = vrot.slane %v3937_v36, %v7347_v40  ;;  %v10430_v44 = vld [vmem:[#allocation77_spill] sm:$0xff]  ;;  %v6690_v60 = vunpack.i.h.bf16 %v9097_v37 }
 0x1c3   :  { %v6546_v20 = vpack.c.bf16 %v10428_v21, %v10427_v17  ;;  %v3865_v0 = vcombine.high %v3799_v10, %v3815_v45  ;;  %v3896_v58 = vcombine.low %v3831_v38, %v3847_v54  ;;  %v3967_v18 = vrot.slane %v3953_v34, %v7347_v40  ;;  %v10432_v10 = vld [vmem:[#allocation79_spill] sm:$0xff]  ;;  %v10434_v21 = vld [vmem:[#allocation56_spill] sm:$0xff] }
 0x1c4   :  { %v3983_v43 = vrot.slane %v3969_v1, %v7347_v40  ;;  %v3897_v33 = vcombine.high %v3831_v38, %v3847_v54  ;;  %v3872_v16 = vrot.slane %v3864_v3, %v7357_v55  ;;  %v4000_v11 = vcombine.low %v3935_v12, %v3951_v29  ;;  %v9455_v38 = vpop.permute.xlu0 %6777  ;;  %v10433_v17 = vld [vmem:[#allocation55_spill] sm:$0xff] }
 0x1c5   :  { %v3879_v5 = vrot.slane %v3865_v0, %v7357_v55  ;;  %v4001_v7 = vcombine.high %v3935_v12, %v3951_v29  ;;  %6547 = vmatprep.subr.bf16.mxu1 %v6546_v20  ;;  %v3904_v31 = vrot.slane %v3896_v58, %v7357_v55  ;;  %v6550_v57 = vpack.c.bf16 %v10430_v44, %v10429_v41  ;;  %v10436_v58 = vld [vmem:[#allocation53_spill] sm:$0xff] }
 0x1c6   :  { %6942 = vrot.lane.b32.xlu1 %v6941_v62, %s6993_s1  ;;  %v4032_v47 = vcombine.low %v3967_v18, %v3983_v43  ;;  %v3911_v27 = vrot.slane %v3897_v33, %v7357_v55  ;;  %v4033_v48 = vcombine.high %v3967_v18, %v3983_v43  ;;  %6937 = vrot.lane.b32.xlu0 %v6936_v53, %s6989_s5  ;;  %v6689_v24 = vunpack.i.l.bf16 %v9097_v37  ;;  %v10437_v18 = vld [vmem:[#allocation54_spill] sm:$0xff] }
 0x1c7   :  { %v4008_v40 = vrot.slane %v4000_v11, %v7357_v55  ;;  %v4015_v26 = vrot.slane %v4001_v7, %v7357_v55  ;;  %6549 = vmatpush3.bf16.msra.mxu1 %v6546_v20  ;;  %v3916_v56 = vcombine.low %v3872_v16, %v3904_v31  ;;  %v3917_v42 = vcombine.high %v3872_v16, %v3904_v31  ;;  %v10440_v7 = vld [vmem:[#allocation81_spill] sm:$0xff] }
 0x1c8   :  { %v4040_v46 = vrot.slane %v4032_v47, %v7357_v55  ;;  %v3918_v39 = vcombine.low %v3879_v5, %v3911_v27  ;;  %v4047_v15 = vrot.slane %v4033_v48, %v7357_v55  ;;  %6551 = vmatprep.subr.bf16.mxu1 %v6550_v57  ;;  %v6554_v45 = vpack.c.bf16 %v10432_v10, %v10431_v32  ;;  %v9457_v55 = vpop.permute.xlu1 %6772  ;;  %v9474_v47 = vpop.permute.xlu0 %6787  ;;  %v10441_v48 = vld [vmem:[#allocation84_spill] sm:$0xff] }
 0x1c9   :  { %v3919_v54 = vcombine.high %v3879_v5, %v3911_v27  ;;  %v6695_v3 = vunpack.i.h.bf16 %v9146_v8  ;;  %v6694_v29 = vunpack.i.l.bf16 %v9146_v8  ;;  %v10435_v20 = vcombine.low %v10433_v17, %v10434_v21  ;;  %v10439_v5 = vld [vmem:[#allocation82_spill] sm:$0xff] }
 0x1ca   :  { %v4052_v62 = vcombine.low %v4008_v40, %v4040_v46  ;;  %v4053_v53 = vcombine.high %v4008_v40, %v4040_v46  ;;  %v4054_v36 = vcombine.low %v4015_v26, %v4047_v15  ;;  %v4055_v12 = vcombine.high %v4015_v26, %v4047_v15  ;;  %v10442_v40 = vld [vmem:[#allocation83_spill] sm:$0xff]  ;;  %v10443_v46 = vld [vmem:[#allocation86_spill] sm:$0xff] }
 0x1cb   :  { %6553 = vmatpush3.bf16.msra.mxu1 %v6550_v57  ;;  %v4505_v0 = vsel %vm78_vm0, %v10435_v20, %v6690_v60  ;;  %v10438_v43 = vcombine.low %v10436_v58, %v10437_v18  ;;  %v6699_v11 = vunpack.i.l.bf16 %v9136_v22  ;;  %v6558_v31 = vpack.c.bf16 %v10440_v7, %v10439_v5 }
 0x1cc   :  { %v6946_v34 = vpack.i.bf16 %v4052_v62, %v3916_v56  ;;  %v6951_v1 = vpack.i.bf16 %v4053_v53, %v3917_v42  ;;  %6555 = vmatprep.subr.bf16.mxu1 %v6554_v45  ;;  %v6956_v37 = vpack.i.bf16 %v4054_v36, %v3918_v39  ;;  %v6961_v16 = vpack.i.bf16 %v4055_v12, %v3919_v54  ;;  %v9488_v39 = vpop.permute.xlu1 %6782  ;;  %v10448_v36 = vld [vmem:[#allocation68_spill] sm:$0xff] }
 0x1cd   :  { %v4504_v33 = vsel %vm78_vm0, %v10438_v43, %v6689_v24  ;;  %v6700_v8 = vunpack.i.h.bf16 %v9136_v22  ;;  %v6710_v27 = vunpack.i.h.bf16 %v9170_v19  ;;  %v6562_v26 = vpack.c.bf16 %v10442_v40, %v10441_v48  ;;  %v10444_v22 = vld [vmem:[#allocation85_spill] sm:$0xff]  ;;  %v10449_v54 = vld [vmem:[#allocation72_spill] sm:$0xff] }
 0x1ce   :  { %6947 = vrot.lane.b32.xlu0 %v6946_v34, %s6990_s21  ;;  %6952 = vrot.lane.b32.xlu1 %v6951_v1, %s6991_s0  ;;  %v6709_v41 = vunpack.i.l.bf16 %v9170_v19  ;;  %v6705_v44 = vunpack.i.h.bf16 %v9183_v35  ;;  %v6704_v57 = vunpack.i.l.bf16 %v9183_v35  ;;  %v4521_v56 = vsel %vm4520_vm2, %v4504_v33, %v6694_v29  ;;  %v10445_v24 = vld [vmem:[#allocation9_spill] sm:$0xff]  ;;  %v10446_v35 = vld [vmem:[#allocation10_spill] sm:$0xff] }
 0x1cf   :  { %6557 = vmatpush3.bf16.msra.mxu1 %v6554_v45  ;;  %v6566_v42 = vpack.c.bf16 %v10444_v22, %v10443_v46  ;;  %v4522_v15 = vsel %vm4520_vm2, %v4505_v0, %v6695_v3  ;;  %v4538_v19 = vsel %vm4537_vm3, %v4521_v56, %v6699_v11  ;;  %v6715_v60 = vunpack.i.h.bf16 %v9224_v2  ;;  %v10454_v22 = vld [vmem:[#allocation16_spill] sm:$0xff] }
 0x1d0   :  { %6559 = vmatprep.subr.bf16.mxu1 %v6558_v31  ;;  %v6714_v62 = vunpack.i.l.bf16 %v9224_v2  ;;  %v4539_v53 = vsel %vm4537_vm3, %v4522_v15, %v6700_v8  ;;  %v10447_v32 = vcombine.low %v10445_v24, %v10446_v35  ;;  %v6724_v45 = vunpack.i.l.bf16 %v9312_v63 }
 0x1d1   :  { %v10450_v12 = vcombine.low %v10448_v36, %v10449_v54  ;;  %v6725_v1 = vunpack.i.h.bf16 %v9312_v63  ;;  %v6720_v2 = vunpack.i.h.bf16 %v9197_v4  ;;  %v6734_v3 = vunpack.i.l.bf16 %v9354_v13 }
 0x1d2   :  { %6957 = vrot.lane.b32.xlu0 %v6956_v37, %s6992_s22  ;;  %6962 = vrot.lane.b32.xlu1 %v6961_v16, %s6993_s1  ;;  %v4507_v10 = vsel %vm78_vm0, %v10447_v32, %v6710_v27  ;;  %v9507_v37 = vpop.permute.xlu0 %6797  ;;  %v6719_v29 = vunpack.i.l.bf16 %v9197_v4  ;;  %v6735_v17 = vunpack.i.h.bf16 %v9354_v13  ;;  %v4555_v21 = vsel %vm4554_vm4, %v4538_v19, %v6704_v57  ;;  %v9518_v13 = vpop.permute.xlu1 %6792 }
 0x1d3   :  { %6561 = vmatpush3.bf16.msra.mxu1 %v6558_v31  ;;  %v4506_v34 = vsel %vm78_vm0, %v10450_v12, %v6709_v41  ;;  %v6730_v20 = vunpack.i.h.bf16 %v9281_v59  ;;  %v6729_v0 = vunpack.i.l.bf16 %v9281_v59  ;;  %v4572_v63 = vsel %vm4571_vm5, %v4555_v21, %v6714_v62  ;;  %v10451_v41 = vld [vmem:[#allocation21_spill] sm:$0xff] }
 0x1d4   :  { %6563 = vmatprep.subr.bf16.mxu1 %v6562_v26  ;;  %v6745_v58 = vunpack.i.h.bf16 %v9390_v52  ;;  %v4589_v18 = vsel %vm4588_vm6, %v4572_v63, %v6724_v45  ;;  %v4556_v4 = vsel %vm4554_vm4, %v4539_v53, %v6705_v44  ;;  %v6744_v43 = vunpack.i.l.bf16 %v9390_v52 }
 0x1d5   :  { %v6739_v33 = vunpack.i.l.bf16 %v9346_v28  ;;  %v9523_v16 = vsel %vm4605_vm7, %v4589_v18, %v6734_v3  ;;  %v4573_v59 = vsel %vm4571_vm5, %v4556_v4, %v6715_v60  ;;  %v4523_v11 = vsel %vm4520_vm2, %v4506_v34, %v6719_v29 }
 0x1d6   :  { %v4524_v5 = vsel %vm4520_vm2, %v4507_v10, %v6720_v2  ;;  %v6740_v7 = vunpack.i.h.bf16 %v9346_v28  ;;  %6327 = vmatprep.mubr.f32.mxu1 %v9523_v16  ;;  %v4590_v31 = vsel %vm4588_vm6, %v4573_v59, %v6725_v1  ;;  %v4540_v8 = vsel %vm4537_vm3, %v4523_v11, %v6729_v0  ;;  %v9537_v40 = vpop.permute.xlu0 %6807  ;;  %v10452_v28 = vld [vmem:[#allocation12_spill] sm:$0xff]  ;;  %v6803_v32 = vpop.permute.xlu1 %6802  ;;  %v10457_v11 = vld [vmem:[#allocation75_spill] sm:$0xff] }
 0x1d7   :  { %6565 = vmatpush3.bf16.msra.mxu1 %v6562_v26  ;;  %v9533_v52 = vsel %vm4605_vm7, %v4590_v31, %v6735_v17  ;;  %v6750_v27 = vunpack.i.h.bf16 %v9374_v61  ;;  %v6749_v48 = vunpack.i.l.bf16 %v9374_v61  ;;  %v4541_v26 = vsel %vm4537_vm3, %v4524_v5, %v6730_v20 }
 0x1d8   :  { %6567 = vmatprep.subr.bf16.mxu1 %v6566_v42  ;;  %v10453_v44 = vcombine.low %v10451_v41, %v10452_v28  ;;  %v6760_v56 = vunpack.i.h.bf16 %v9402_v49  ;;  %v6759_v46 = vunpack.i.l.bf16 %v9402_v49  ;;  %v4557_v61 = vsel %vm4554_vm4, %v4540_v8, %v6739_v33 }
 0x1d9   :  { %v6770_v60 = vunpack.i.h.bf16 %v9435_v50  ;;  %v6769_v62 = vunpack.i.l.bf16 %v9435_v50  ;;  %v4558_v53 = vsel %vm4554_vm4, %v4541_v26, %v6740_v7  ;;  %v6755_v24 = vunpack.i.h.bf16 %v9415_v23 }
 0x1da   :  { %v4509_v57 = vsel %vm78_vm0, %v10453_v44, %v6745_v58  ;;  %v6754_v35 = vunpack.i.l.bf16 %v9415_v23  ;;  %v6765_v49 = vunpack.i.h.bf16 %v9442_v30  ;;  %v6764_v10 = vunpack.i.l.bf16 %v9442_v30  ;;  %v6818_v29 = vpop.permute.xlu0 %6817 }
 0x1db   :  { %6569 = vmatpush3.bf16.msra.mxu1 %v6566_v42  ;;  %v10455_v42 = vld [vmem:[#allocation20_spill] sm:$0xff]  ;;  %v6775_v45 = vunpack.i.h.bf16 %v9457_v55  ;;  %v4574_v36 = vsel %vm4571_vm5, %v4557_v61, %v6749_v48  ;;  %v4575_v54 = vsel %vm4571_vm5, %v4558_v53, %v6750_v27  ;;  %v6774_v50 = vunpack.i.l.bf16 %v9457_v55 }
 0x1dc   :  { %v10456_v15 = vcombine.low %v10454_v22, %v10455_v42  ;;  %v6785_v12 = vunpack.i.h.bf16 %v9488_v39  ;;  %v4591_v34 = vsel %vm4588_vm6, %v4574_v36, %v6759_v46  ;;  %v4592_v1 = vsel %vm4588_vm6, %v4575_v54, %v6760_v56  ;;  %v10460_v46 = vld [vmem:[#allocation34_spill] sm:$0xff]  ;;  %v10461_v22 = vld [vmem:[#allocation36_spill] sm:$0xff] }
 0x1dd   :  { %v6784_v23 = vunpack.i.l.bf16 %v9488_v39  ;;  %v6780_v2 = vunpack.i.h.bf16 %v9455_v38  ;;  %v9569_v30 = vsel %vm4605_vm7, %v4591_v34, %v6769_v62  ;;  %v9572_v3 = vsel %vm4605_vm7, %v4592_v1, %v6770_v60  ;;  %v4622_v60 = vld [vmem:[%s10061_s4] sm:$0xff] }
 0x1de   :  { %v4508_v19 = vsel %vm78_vm0, %v10456_v15, %v6744_v43  ;;  %6328 = vmatmul.mubr.f32.vlgmr.msra.gmra.mrb[0].mxu1 %v9533_v52  ;;  %v4526_v55 = vsel %vm4520_vm2, %v4509_v57, %v6755_v24  ;;  %v6795_v21 = vunpack.i.h.bf16 %v9518_v13  ;;  %v6794_v20 = vunpack.i.l.bf16 %v9518_v13  ;;  %v9586_v59 = vpop.permute.xlu1 %6812  ;;  %v10458_v13 = vld [vmem:[#allocation76_spill] sm:$0xff] }
 0x1df   :  { %v4525_v17 = vsel %vm4520_vm2, %v4508_v19, %v6754_v35  ;;  %6330 = vmatprep.mubr.f32.mxu1 %v9569_v30  ;;  %v4543_v0 = vsel %vm4537_vm3, %v4526_v55, %v6765_v49  ;;  %v6805_v63 = vunpack.i.h.bf16 %v6803_v32  ;;  %v6804_v58 = vunpack.i.l.bf16 %v6803_v32 }
 0x1e0   :  { %v4542_v39 = vsel %vm4537_vm3, %v4525_v17, %v6764_v10  ;;  %v4560_v4 = vsel %vm4554_vm4, %v4543_v0, %v6775_v45  ;;  %v6779_v43 = vunpack.i.l.bf16 %v9455_v38  ;;  %v6790_v33 = vunpack.i.h.bf16 %v9474_v47  ;;  %v4624_v17 = vld [vmem:[%s10061_s4 + $0x10] sm:$0xff]  ;;  %v4626_v0 = vld [vmem:[%s10061_s4 + $0x20] sm:$0xff] }
 0x1e1   :  { %v4559_v18 = vsel %vm4554_vm4, %v4542_v39, %v6774_v50  ;;  %v10459_v5 = vcombine.low %v10457_v11, %v10458_v13  ;;  %v6789_v31 = vunpack.i.l.bf16 %v9474_v47  ;;  %v4577_v27 = vsel %vm4571_vm5, %v4560_v4, %v6785_v12  ;;  %v6828_v56 = vpop.permute.xlu0 %6827  ;;  %v4627_v39 = vld [vmem:[%s10061_s4 + $0x28] sm:$0xff]  ;;  %v4633_v11 = vld [vmem:[%s10061_s4 + $0x58] sm:$0xff]  ;;  %v4632_v13 = vld [vmem:[%s10061_s4 + $0x50] sm:$0xff] }
 0x1e2   :  { %6331 = vmatmul.mubr.f32.gmra.mrb[2].mxu1 %v9572_v3  ;;  %v4576_v8 = vsel %vm4571_vm5, %v4559_v18, %v6784_v23  ;;  %v6800_v48 = vunpack.i.h.bf16 %v9507_v37  ;;  %v6799_v26 = vunpack.i.l.bf16 %v9507_v37  ;;  %v4594_v41 = vsel %vm4588_vm6, %v4577_v27, %v6795_v21  ;;  %v9621_v53 = vpop.permute.xlu1 %6822  ;;  %v4625_v23 = vld [vmem:[%s10061_s4 + $0x18] sm:$0xff]  ;;  %v4628_v18 = vld [vmem:[%s10061_s4 + $0x30] sm:$0xff]  ;;  %v4631_v4 = vld [vmem:[%s10061_s4 + $0x48] sm:$0xff] }
 0x1e3   :  { %v4511_v7 = vsel %vm78_vm0, %v10459_v5, %v6780_v2  ;;  %v4593_v38 = vsel %vm4588_vm6, %v4576_v8, %v6794_v20  ;;  %v6810_v28 = vunpack.i.h.bf16 %v9537_v40  ;;  %v6809_v44 = vunpack.i.l.bf16 %v9537_v40  ;;  %v4623_v40 = vld [vmem:[%s10061_s4 + $0x8] sm:$0xff] }
 0x1e4   :  { %v9602_v57 = vsel %vm4605_vm7, %v4593_v38, %v6804_v58  ;;  %v9605_v47 = vsel %vm4605_vm7, %v4594_v41, %v6805_v63  ;;  %v10462_v42 = vcombine.low %v10460_v46, %v10461_v22  ;;  %v4528_v15 = vsel %vm4520_vm2, %v4511_v7, %v6790_v33  ;;  %v4629_v63 = vld [vmem:[%s10061_s4 + $0x38] sm:$0xff]  ;;  %v4635_v38 = vld [vmem:[%s10061_s4 + $0x68] sm:$0xff] }
 0x1e5   :  { %6333 = vmatprep.mubr.f32.mxu1 %v9602_v57  ;;  %v6820_v19 = vunpack.i.h.bf16 %v6818_v29  ;;  %v6819_v61 = vunpack.i.l.bf16 %v6818_v29  ;;  %v6830_v24 = vunpack.i.h.bf16 %v6828_v56  ;;  %v6829_v35 = vunpack.i.l.bf16 %v6828_v56  ;;  %v6838_v54 = vpop.permute.xlu0 %6837  ;;  %v10464_v22 = vld [vmem:[#allocation37_spill] sm:$0xff] }
 0x1e6   :  { %v4510_v37 = vsel %vm78_vm0, %v10462_v42, %v6779_v43  ;;  %6334 = vmatmul.mubr.f32.gmra.mrb[4].mxu1 %v9605_v47  ;;  %v4545_v32 = vsel %vm4537_vm3, %v4528_v15, %v6800_v48  ;;  %v6994_v10 = vmov 0   ;;  %v6840_v50 = vunpack.i.h.bf16 %v6838_v54  ;;  %v6833_v20 = vpop.permute.xlu1 %6832  ;;  %v4630_v43 = vld [vmem:[%s10061_s4 + $0x40] sm:$0xff]  ;;  %v10465_v42 = vld [vmem:[#allocation39_spill] sm:$0xff] }
 0x1e7   :  { %v4527_v62 = vsel %vm4520_vm2, %v4510_v37, %v6789_v31  ;;  %6967 = vset.pattern.permute.xlu1 %v6994_v10  ;;  %6966 = vset.pattern.permute.xlu0 %v6994_v10  ;;  %v4562_v36 = vsel %vm4554_vm4, %v4545_v32, %v6810_v28  ;;  %v6839_v12 = vunpack.i.l.bf16 %v6838_v54  ;;  %v6815_v5 = vunpack.i.h.bf16 %v9586_v59 }
 0x1e8   :  { %v4544_v49 = vsel %vm4537_vm3, %v4527_v62, %v6799_v26  ;;  %5008 = vperm.xlu1 %6967, %v4623_v40   ;;  %5003 = vperm.xlu0 %6966, %v4622_v60   ;;  %v4579_v1 = vsel %vm4571_vm5, %v4562_v36, %v6820_v19  ;;  %v6814_v7 = vunpack.i.l.bf16 %v9586_v59  ;;  %v6825_v8 = vunpack.i.h.bf16 %v9621_v53  ;;  %v4634_v59 = vld [vmem:[%s10061_s4 + $0x60] sm:$0xff] }
 0x1e9   :  { %v4561_v45 = vsel %vm4554_vm4, %v4544_v49, %v6809_v44  ;;  %v4596_v29 = vsel %vm4588_vm6, %v4579_v1, %v6830_v24  ;;  %v6824_v27 = vunpack.i.l.bf16 %v9621_v53  ;;  %v6835_v48 = vunpack.i.h.bf16 %v6833_v20 }
 0x1ea   :  { %v4578_v34 = vsel %vm4571_vm5, %v4561_v45, %v6819_v61  ;;  %v9641_v21 = vsel %vm4605_vm7, %v4596_v29, %v6840_v50  ;;  %v6834_v26 = vunpack.i.l.bf16 %v6833_v20  ;;  %v10463_v56 = vcombine.low %v8776_v9, %v8788_v14  ;;  %v4637_v14 = vld [vmem:[%s10061_s4 + $0x78] sm:$0xff]  ;;  %v4636_v45 = vld [vmem:[%s10061_s4 + $0x70] sm:$0xff] }
 0x1eb   :  { %v4595_v2 = vsel %vm4588_vm6, %v4578_v34, %v6829_v35  ;;  %v10466_v37 = vcombine.low %v10464_v22, %v10465_v42 }
 0x1ec   :  { %v9638_v55 = vsel %vm4605_vm7, %v4595_v2, %v6839_v12  ;;  %5018 = vperm.xlu0 %6966, %v4625_v23   ;;  %5013 = vperm.xlu1 %6967, %v4624_v17   ;;  %v4513_v46 = vsel %vm78_vm0, %v10463_v56, %v6815_v5  ;;  %v10467_v5 = vld [vmem:[#allocation38_spill] sm:$0xff] }
 0x1ed   :  { %6336 = vmatprep.mubr.f32.mxu1 %v9638_v55  ;;  %v4512_v15 = vsel %vm78_vm0, %v10466_v37, %v6814_v7  ;;  %v4530_v62 = vsel %vm4520_vm2, %v4513_v46, %v6825_v8  ;;  %v10468_v7 = vld [vmem:[#allocation41_spill] sm:$0xff] }
 0x1ee   :  { %6337 = vmatmul.mubr.f32.gmra.mrb[6].mxu1 %v9641_v21  ;;  %v4529_v60 = vsel %vm4520_vm2, %v4512_v15, %v6824_v27  ;;  %v4547_v9 = vsel %vm4537_vm3, %v4530_v62, %v6835_v48  ;;  %v10469_v8 = vcombine.low %v10467_v5, %v10468_v7  ;;  %v10470_v48 = vld [vmem:[#allocation42_spill] sm:$0xff] }
 0x1ef   :  { %v6843_v58 = vpop.permute.xlu1 %6842  ;;  %v4546_v35 = vsel %vm4537_vm3, %v4529_v60, %v6834_v26  ;;  %v10471_v26 = vld [vmem:[#allocation44_spill] sm:$0xff] }
 0x1f0   :  { %5028 = vperm.xlu0 %6966, %v4627_v39   ;;  %5023 = vperm.xlu1 %6967, %v4626_v0   ;;  %v6845_v41 = vunpack.i.h.bf16 %v6843_v58  ;;  %v6844_v28 = vunpack.i.l.bf16 %v6843_v58 }
 0x1f2   :  { %v4563_v49 = vsel %vm4554_vm4, %v4546_v35, %v6844_v28  ;;  %v4564_v32 = vsel %vm4554_vm4, %v4547_v9, %v6845_v41 }
 0x1f3   :  { %v6853_v33 = vpop.permute.xlu1 %6852 }
 0x1f4   :  { %5038 = vperm.xlu0 %6966, %v4629_v63   ;;  %5033 = vperm.xlu1 %6967, %v4628_v18   ;;  %v6855_v19 = vunpack.i.h.bf16 %v6853_v33  ;;  %v6854_v61 = vunpack.i.l.bf16 %v6853_v33 }
 0x1f6   :  { %v4580_v50 = vsel %vm4571_vm5, %v4563_v49, %v6854_v61  ;;  %v4581_v12 = vsel %vm4571_vm5, %v4564_v32, %v6855_v19 }
 0x1f8   :  { %5048 = vperm.xlu0 %6966, %v4631_v4   ;;  %5043 = vperm.xlu1 %6967, %v4630_v43  }
 0x1fa   :  { %v6848_v31 = vpop.permute.xlu0 %6847 }
 0x1fb   :  { %v6850_v39 = vunpack.i.h.bf16 %v6848_v31  ;;  %v6849_v0 = vunpack.i.l.bf16 %v6848_v31 }
 0x1fc   :  { %5058 = vperm.xlu0 %6966, %v4633_v11   ;;  %5053 = vperm.xlu1 %6967, %v4632_v13  }
 0x1fd   :  { %v6863_v44 = vpop.permute.xlu1 %6862  ;;  %v4515_v27 = vsel %vm78_vm0, %v10469_v8, %v6850_v39 }
 0x1fe   :  { %v6858_v40 = vpop.permute.xlu0 %6857  ;;  %v6865_v53 = vunpack.i.h.bf16 %v6863_v44  ;;  %v6864_v24 = vunpack.i.l.bf16 %v6863_v44 }
 0x1ff   :  { %v6860_v63 = vunpack.i.h.bf16 %v6858_v40  ;;  %v6859_v58 = vunpack.i.l.bf16 %v6858_v40 }
 0x200   :  { %5068 = vperm.xlu0 %6966, %v4635_v38   ;;  %5063 = vperm.xlu1 %6967, %v4634_v59   ;;  %v4597_v34 = vsel %vm4588_vm6, %v4580_v50, %v6864_v24  ;;  %v4598_v1 = vsel %vm4588_vm6, %v4581_v12, %v6865_v53  ;;  %v10472_v38 = vcombine.low %v10470_v48, %v10471_v26 }
 0x201   :  { %v6873_v10 = vpop.permute.xlu1 %6872  ;;  %v4532_v59 = vsel %vm4520_vm2, %v4515_v27, %v6860_v63 }
 0x202   :  { %v6875_v36 = vunpack.i.h.bf16 %v6873_v10  ;;  %v6874_v54 = vunpack.i.l.bf16 %v6873_v10  ;;  %v6868_v23 = vpop.permute.xlu0 %6867  ;;  %v4514_v41 = vsel %vm78_vm0, %v10472_v38, %v6849_v0 }
 0x203   :  { %v6870_v4 = vunpack.i.h.bf16 %v6868_v23  ;;  %v6869_v43 = vunpack.i.l.bf16 %v6868_v23  ;;  %v4531_v44 = vsel %vm4520_vm2, %v4514_v41, %v6859_v58  ;;  %v10473_v23 = vld [vmem:[#allocation40_spill] sm:$0xff] }
 0x204   :  { %5078 = vperm.xlu0 %6966, %v4637_v14   ;;  %v9704_v2 = vsel %vm4605_vm7, %v4597_v34, %v6874_v54  ;;  %v9707_v29 = vsel %vm4605_vm7, %v4598_v1, %v6875_v36  ;;  %5073 = vperm.xlu1 %6967, %v4636_v45  }
 0x205   :  { %6339 = vmatprep.mubr.f32.mxu1 %v9704_v2  ;;  %v4548_v42 = vsel %vm4537_vm3, %v4531_v44, %v6869_v43  ;;  %v4549_v37 = vsel %vm4537_vm3, %v4532_v59, %v6870_v4  ;;  %v5113_v4 = vld [vmem:[%s10062_s7] sm:$0xff]  ;;  %v10476_v43 = vld [vmem:[#allocation45_spill] sm:$0xff]  ;;  %v5115_v44 = vld [vmem:[%s10062_s7 + $0x10] sm:$0xff] }
 0x206   :  { %6340 = vmatmul.mubr.f32.gmra.mrb[8].mxu1 %v9707_v29  ;;  %v5116_v59 = vld [vmem:[%s10062_s7 + $0x18] sm:$0xff] }
 0x20a   :  { %v6878_v17 = vpop.permute.xlu0 %6877 }
 0x20b   :  { %v6880_v33 = vunpack.i.h.bf16 %v6878_v17  ;;  %v6879_v11 = vunpack.i.l.bf16 %v6878_v17  ;;  %v10474_v17 = vld [vmem:[#allocation46_spill] sm:$0xff] }
 0x20d   :  { %v4565_v15 = vsel %vm4554_vm4, %v4548_v42, %v6879_v11  ;;  %v4566_v19 = vsel %vm4554_vm4, %v4549_v37, %v6880_v33  ;;  %v10477_v33 = vld [vmem:[#allocation48_spill] sm:$0xff]  ;;  %v6574_v42 = vpack.c.bf16 %v5116_v59, %v5115_v44 }
 0x20e   :  { %v6888_v20 = vpop.permute.xlu0 %6887  ;;  %v10478_v11 = vcombine.low %v10476_v43, %v10477_v33 }
 0x20f   :  { %v6890_v28 = vunpack.i.h.bf16 %v6888_v20  ;;  %v6889_v31 = vunpack.i.l.bf16 %v6888_v20  ;;  %v10475_v20 = vcombine.low %v10473_v23, %v10474_v17 }
 0x211   :  { %v4582_v62 = vsel %vm4571_vm5, %v4565_v15, %v6889_v31  ;;  %v4583_v53 = vsel %vm4571_vm5, %v4566_v19, %v6890_v28 }
 0x215   :  { %v6883_v18 = vpop.permute.xlu1 %6882 }
 0x216   :  { %v6885_v45 = vunpack.i.h.bf16 %v6883_v18  ;;  %v6884_v36 = vunpack.i.l.bf16 %v6883_v18  ;;  %v5114_v18 = vld [vmem:[%s10062_s7 + $0x8] sm:$0xff] }
 0x217   :  { %v6570_v27 = vpack.c.bf16 %v5114_v18, %v5113_v4 }
 0x218   :  { %v6898_v13 = vpop.permute.xlu0 %6897  ;;  %v4517_v39 = vsel %vm78_vm0, %v10475_v20, %v6885_v45 }
 0x219   :  { %v6893_v56 = vpop.permute.xlu1 %6892  ;;  %v6900_v46 = vunpack.i.h.bf16 %v6898_v13  ;;  %v6899_v22 = vunpack.i.l.bf16 %v6898_v13  ;;  %v4516_v13 = vsel %vm78_vm0, %v10478_v11, %v6884_v36  ;;  %6571 = vmatprep.subr.bf16.mxu0 %v6570_v27 }
 0x21a   :  { %v6895_v50 = vunpack.i.h.bf16 %v6893_v56  ;;  %v6894_v12 = vunpack.i.l.bf16 %v6893_v56  ;;  %6573 = vmatpush3.bf16.msra.mxu0 %v6570_v27 }
 0x21b   :  { %v4599_v24 = vsel %vm4588_vm6, %v4582_v62, %v6899_v22  ;;  %v4600_v35 = vsel %vm4588_vm6, %v4583_v53, %v6900_v46  ;;  %6575 = vmatprep.subr.bf16.mxu0 %v6574_v42 }
 0x21c   :  { %v6908_v61 = vpop.permute.xlu0 %6907  ;;  %v4533_v48 = vsel %vm4520_vm2, %v4516_v13, %v6894_v12  ;;  %v4534_v26 = vsel %vm4520_vm2, %v4517_v39, %v6895_v50  ;;  %v10479_v50 = vcombine.low %v9364_v6, %v9377_v51 }
 0x21d   :  { %v6910_v40 = vunpack.i.h.bf16 %v6908_v61  ;;  %v6909_v60 = vunpack.i.l.bf16 %v6908_v61  ;;  %v6903_v49 = vpop.permute.xlu1 %6902 }
 0x21e   :  { %v6905_v34 = vunpack.i.h.bf16 %v6903_v49  ;;  %v6904_v1 = vunpack.i.l.bf16 %v6903_v49  ;;  %6577 = vmatpush3.bf16.msra.mxu0 %v6574_v42 }
 0x21f   :  { %v9730_v9 = vsel %vm4605_vm7, %v4599_v24, %v6909_v60  ;;  %v9733_v14 = vsel %vm4605_vm7, %v4600_v35, %v6910_v40 }
 0x220   :  { %6342 = vmatprep.mubr.f32.mxu1 %v9730_v9  ;;  %v4550_v28 = vsel %vm4537_vm3, %v4533_v48, %v6904_v1  ;;  %v4551_v31 = vsel %vm4537_vm3, %v4534_v26, %v6905_v34  ;;  %v10480_v34 = vld [vmem:[#allocation49_spill] sm:$0xff] }
 0x221   :  { %6343 = vmatmul.mubr.f32.gmra.mrb[10].mxu1 %v9733_v14  ;;  %v10481_v1 = vcombine.low %v9358_v25, %v10480_v34 }
 0x225   :  { %v6913_v32 = vpop.permute.xlu1 %6912 }
 0x226   :  { %v6915_v0 = vunpack.i.h.bf16 %v6913_v32  ;;  %v6914_v63 = vunpack.i.l.bf16 %v6913_v32 }
 0x228   :  { %v4567_v56 = vsel %vm4554_vm4, %v4550_v28, %v6914_v63  ;;  %v4568_v46 = vsel %vm4554_vm4, %v4551_v31, %v6915_v0  ;;  %v9805_v28 = vld [vmem:[%s10063_s6] ss:$0 sm:$0xff] }
 0x22a   :  { %v6923_v10 = vpop.permute.xlu1 %6922 }
 0x22b   :  { %v6925_v5 = vunpack.i.h.bf16 %v6923_v10  ;;  %v6924_v7 = vunpack.i.l.bf16 %v6923_v10 }
 0x22d   :  { %v4584_v19 = vsel %vm4571_vm5, %v4567_v56, %v6924_v7  ;;  %v4585_v61 = vsel %vm4571_vm5, %v4568_v46, %v6925_v5 }
 0x230   :  { %v6918_v54 = vpop.permute.xlu0 %6917 }
 0x231   :  { %v6920_v35 = vunpack.i.h.bf16 %v6918_v54  ;;  %v6919_v49 = vunpack.i.l.bf16 %v6918_v54 }
 0x233   :  { %v4519_v12 = vsel %vm78_vm0, %v10479_v50, %v6920_v35  ;;  %v4518_v23 = vsel %vm78_vm0, %v10481_v1, %v6919_v49  ;;  %vm6052_vm0 = vcmask 31744  }
 0x234   :  { %v6933_v58 = vpop.permute.xlu1 %6932  ;;  %v6928_v8 = vpop.permute.xlu0 %6927 }
 0x235   :  { %v6935_v38 = vunpack.i.h.bf16 %v6933_v58  ;;  %v6934_v41 = vunpack.i.l.bf16 %v6933_v58  ;;  %v6930_v32 = vunpack.i.h.bf16 %v6928_v8  ;;  %v6929_v10 = vunpack.i.l.bf16 %v6928_v8 }
 0x237   :  { %v4601_v60 = vsel %vm4588_vm6, %v4584_v19, %v6934_v41  ;;  %v4602_v62 = vsel %vm4588_vm6, %v4585_v61, %v6935_v38  ;;  %v4535_v20 = vsel %vm4520_vm2, %v4518_v23, %v6929_v10  ;;  %v4536_v39 = vsel %vm4520_vm2, %v4519_v12, %v6930_v32 }
 0x238   :  { %v6943_v22 = vpop.permute.xlu1 %6942  ;;  %v6938_v40 = vpop.permute.xlu0 %6937 }
 0x239   :  { %v6945_v37 = vunpack.i.h.bf16 %v6943_v22  ;;  %v6944_v15 = vunpack.i.l.bf16 %v6943_v22  ;;  %v6940_v45 = vunpack.i.h.bf16 %v6938_v40  ;;  %v6939_v36 = vunpack.i.l.bf16 %v6938_v40 }
 0x23b   :  { %v9768_v53 = vsel %vm4605_vm7, %v4601_v60, %v6944_v15  ;;  %v9771_v24 = vsel %vm4605_vm7, %v4602_v62, %v6945_v37  ;;  %v4552_v58 = vsel %vm4537_vm3, %v4535_v20, %v6939_v36  ;;  %v4553_v4 = vsel %vm4537_vm3, %v4536_v39, %v6940_v45 }
 0x23c   :  { %6345 = vmatprep.mubr.f32.mxu1 %v9768_v53 }
 0x23d   :  { %6346 = vmatmul.mubr.f32.gmra.mrb[12].mxu1 %v9771_v24 }
 0x240   :  { %v6953_v54 = vpop.permute.xlu1 %6952  ;;  %v6948_v17 = vpop.permute.xlu0 %6947 }
 0x241   :  { %v6950_v0 = vunpack.i.h.bf16 %v6948_v17  ;;  %v6949_v63 = vunpack.i.l.bf16 %v6948_v17  ;;  %v6955_v6 = vunpack.i.h.bf16 %v6953_v54  ;;  %v6954_v51 = vunpack.i.l.bf16 %v6953_v54 }
 0x243   :  { %v4569_v18 = vsel %vm4554_vm4, %v4552_v58, %v6949_v63  ;;  %v4570_v25 = vsel %vm4554_vm4, %v4553_v4, %v6950_v0 }
 0x244   :  { %v6963_v43 = vpop.permute.xlu1 %6962  ;;  %v6958_v33 = vpop.permute.xlu0 %6957  ;;  %v4586_v8 = vsel %vm4571_vm5, %v4569_v18, %v6954_v51  ;;  %v4587_v27 = vsel %vm4571_vm5, %v4570_v25, %v6955_v6 }
 0x245   :  { %v6965_v11 = vunpack.i.h.bf16 %v6963_v43  ;;  %v6964_v13 = vunpack.i.l.bf16 %v6963_v43  ;;  %v6960_v5 = vunpack.i.h.bf16 %v6958_v33  ;;  %v6959_v7 = vunpack.i.l.bf16 %v6958_v33 }
 0x247   :  { %v4603_v48 = vsel %vm4588_vm6, %v4586_v8, %v6959_v7  ;;  %v4604_v26 = vsel %vm4588_vm6, %v4587_v27, %v6960_v5 }
 0x248   :  { %v9794_v38 = vsel %vm4605_vm7, %v4603_v48, %v6964_v13  ;;  %v9797_v41 = vsel %vm4605_vm7, %v4604_v26, %v6965_v11 }
 0x249   :  { %6348 = vmatprep.mubr.f32.mxu1 %v9794_v38 }
 0x24a   :  { %6349 = vmatmul.mubr.f32.gmra.mrb[14].mxu1 %v9797_v41 }
 0x24b   :  { %6415 = vmatprep.mubr.f32.mxu1 %v9523_v16 }
 0x267   :  { %v9807_v44 = vpop.permute.xlu1 %5008  ;;  %v9810_v46 = vpop.permute.xlu0 %5003 }
 0x26b   :  { %v9815_v19 = vpop.permute.xlu0 %5018  ;;  %v9818_v62 = vpop.permute.xlu1 %5013 }
 0x26f   :  { %v9825_v50 = vpop.permute.xlu0 %5028  ;;  %v9828_v23 = vpop.permute.xlu1 %5023 }
 0x273   :  { %v9835_v58 = vpop.permute.xlu0 %5038  ;;  %v9839_v51 = vpop.permute.xlu1 %5033 }
 0x277   :  { %v9848_v8 = vpop.permute.xlu0 %5048  ;;  %v9851_v48 = vpop.permute.xlu1 %5043 }
 0x2b1   :  { %v6329_v31 = vpop.f32.mrb[0].mxu1 }
 0x2b2   :  { %v4928_v59 = vadd.f32 %v6329_v31, %v9805_v28  ;;  %v4922_v56 = vpop.f32.mrb[1].mxu1 }
 0x2b3   :  { %v4923_v22 = vadd.f32 %v9805_v28, %v4922_v56 }
 0x2b4   :  { %v5082_v42 = vmul.f32 %v9807_v44, %v4928_v59 }
 0x2b5   :  { %v5081_v37 = vmul.f32 %v9810_v46, %v4923_v22  ;;  %v6332_v15 = vpop.f32.mrb[2].mxu1 }
 0x2b6   :  { %v4938_v40 = vadd.f32 %v6332_v15, %v9805_v28  ;;  %v4932_v60 = vpop.f32.mrb[3].mxu1  ;;  %v5098_v35 = vmax.f32 %v5082_v42, 0.0  ;;  %v9858_v15 = vpop.permute.xlu0 %5058 }
 0x2b7   :  { %v5097_v61 = vmax.f32 %v5081_v37, 0.0  ;;  %v4933_v49 = vadd.f32 %v9805_v28, %v4932_v60 }
 0x2b8   :  { %v5084_v32 = vmul.f32 %v9815_v19, %v4938_v40  ;;  %v9861_v40 = vpop.permute.xlu1 %5053 }
 0x2b9   :  { %6359 = vmatprep.mubr.msk.f32.mxu0 %vm4520_vm2, %v5097_v61  ;;  %v5083_v10 = vmul.f32 %v9818_v62, %v4933_v49  ;;  %v6335_v36 = vpop.f32.mrb[4].mxu1 }
 0x2ba   :  { %6360 = vmatmul.mubr.msk.f32.vlgmr.msra.gmra.mrb[16].mxu0 %vm4520_vm2, %v5098_v35  ;;  %v5100_v12 = vmax.f32 %v5084_v32, 0.0  ;;  %v4948_v34 = vadd.f32 %v6335_v36, %v9805_v28  ;;  %v4942_v1 = vpop.f32.mrb[5].mxu1 }
 0x2bb   :  { %v5099_v45 = vmax.f32 %v5083_v10, 0.0  ;;  %v4943_v54 = vadd.f32 %v9805_v28, %v4942_v1 }
 0x2bc   :  { %v5086_v17 = vmul.f32 %v9825_v50, %v4948_v34  ;;  %v9871_v1 = vpop.permute.xlu1 %5063 }
 0x2bd   :  { %6362 = vmatprep.mubr.msk.f32.mxu0 %vm4520_vm2, %v5099_v45  ;;  %v5085_v20 = vmul.f32 %v9828_v23, %v4943_v54 }
 0x2be   :  { %6363 = vmatmul.mubr.msk.f32.gmra.mrb[18].mxu0 %vm4520_vm2, %v5100_v12  ;;  %v5102_v0 = vmax.f32 %v5086_v17, 0.0  ;;  %v9868_v12 = vpop.permute.xlu0 %5068 }
 0x2bf   :  { %v5101_v39 = vmax.f32 %v5085_v20, 0.0 }
 0x2c1   :  { %v6338_v63 = vpop.f32.mrb[6].mxu1  ;;  %6365 = vmatprep.mubr.msk.f32.mxu0 %vm4520_vm2, %v5101_v39 }
 0x2c2   :  { %v4958_v4 = vadd.f32 %v6338_v63, %v9805_v28  ;;  %v4952_v6 = vpop.f32.mrb[7].mxu1  ;;  %6366 = vmatmul.mubr.msk.f32.gmra.mrb[20].mxu0 %vm4520_vm2, %v5102_v0 }
 0x2c3   :  { %v4953_v18 = vadd.f32 %v9805_v28, %v4952_v6  ;;  %v9878_v6 = vpop.permute.xlu0 %5078 }
 0x2c4   :  { %v5088_v25 = vmul.f32 %v9835_v58, %v4958_v4 }
 0x2c5   :  { %v5087_v43 = vmul.f32 %v9839_v51, %v4953_v18 }
 0x2c6   :  { %v5104_v11 = vmax.f32 %v5088_v25, 0.0  ;;  %v9881_v25 = vpop.permute.xlu1 %5073 }
 0x2c7   :  { %v5103_v33 = vmax.f32 %v5087_v43, 0.0 }
 0x2c9   :  { %6368 = vmatprep.mubr.msk.f32.mxu0 %vm4520_vm2, %v5103_v33 }
 0x2ca   :  { %6369 = vmatmul.mubr.msk.f32.gmra.mrb[22].mxu0 %vm4520_vm2, %v5104_v11 }
 0x2d9   :  { %v6341_v13 = vpop.f32.mrb[8].mxu1 }
 0x2da   :  { %v4968_v5 = vadd.f32 %v6341_v13, %v9805_v28  ;;  %v4962_v7 = vpop.f32.mrb[9].mxu1 }
 0x2db   :  { %v4963_v27 = vadd.f32 %v9805_v28, %v4962_v7 }
 0x2dc   :  { %v5090_v26 = vmul.f32 %v9848_v8, %v4968_v5 }
 0x2dd   :  { %v5089_v31 = vmul.f32 %v9851_v48, %v4963_v27 }
 0x2de   :  { %v5106_v56 = vmax.f32 %v5090_v26, 0.0 }
 0x2df   :  { %v5105_v59 = vmax.f32 %v5089_v31, 0.0 }
 0x2e1   :  { %6371 = vmatprep.mubr.msk.f32.mxu0 %vm4520_vm2, %v5105_v59 }
 0x2e2   :  { %6372 = vmatmul.mubr.msk.f32.gmra.mrb[24].mxu0 %vm4520_vm2, %v5106_v56 }
 0x2f4   :  { %v6344_v22 = vpop.f32.mrb[10].mxu1 }
 0x2f5   :  { %v4978_v42 = vadd.f32 %v6344_v22, %v9805_v28  ;;  %v4972_v37 = vpop.f32.mrb[11].mxu1 }
 0x2f6   :  { %v4973_v61 = vadd.f32 %v9805_v28, %v4972_v37  ;;  %v5494_v37 = vld [vmem:[%s10064_s9] sm:$0xff] }
 0x2f7   :  { %v5092_v60 = vmul.f32 %v9858_v15, %v4978_v42 }
 0x2f8   :  { %v5091_v35 = vmul.f32 %v9861_v40, %v4973_v61  ;;  %v5495_v61 = vld [vmem:[%s10064_s9 + $0x8] sm:$0xff] }
 0x2f9   :  { %v5108_v32 = vmax.f32 %v5092_v60, 0.0  ;;  %v5496_v60 = vld [vmem:[%s10064_s9 + $0x10] sm:$0xff] }
 0x2fa   :  { %v5107_v49 = vmax.f32 %v5091_v35, 0.0 }
 0x2fc   :  { %6374 = vmatprep.mubr.msk.f32.mxu0 %vm4520_vm2, %v5107_v49  ;;  %v6610_v49 = vpack.c.bf16 %v5495_v61, %v5494_v37 }
 0x2fd   :  { %6375 = vmatmul.mubr.msk.f32.gmra.mrb[26].mxu0 %vm4520_vm2, %v5108_v32  ;;  %v5497_v32 = vld [vmem:[%s10064_s9 + $0x18] sm:$0xff] }
 0x2fe   :  { %6611 = vmatprep.subr.bf16.mxu0 %v6610_v49 }
 0x2ff   :  { %6613 = vmatpush3.bf16.msra.mxu0 %v6610_v49 }
 0x310   :  { %v6347_v10 = vpop.f32.mrb[12].mxu1 }
 0x311   :  { %v4988_v45 = vadd.f32 %v6347_v10, %v9805_v28  ;;  %v4982_v36 = vpop.f32.mrb[13].mxu1 }
 0x312   :  { %v4983_v34 = vadd.f32 %v9805_v28, %v4982_v36 }
 0x313   :  { %v5094_v54 = vmul.f32 %v9868_v12, %v4988_v45  ;;  %v6614_v45 = vpack.c.bf16 %v5497_v32, %v5496_v60 }
 0x314   :  { %v5093_v17 = vmul.f32 %v9871_v1, %v4983_v34 }
 0x315   :  { %v5110_v39 = vmax.f32 %v5094_v54, 0.0  ;;  %6615 = vmatprep.subr.bf16.mxu0 %v6614_v45 }
 0x316   :  { %v5109_v20 = vmax.f32 %v5093_v17, 0.0  ;;  %6617 = vmatpush3.bf16.msra.mxu0 %v6614_v45 }
 0x318   :  { %6377 = vmatprep.mubr.msk.f32.mxu0 %vm4520_vm2, %v5109_v20 }
 0x319   :  { %6378 = vmatmul.mubr.msk.f32.gmra.mrb[28].mxu0 %vm4520_vm2, %v5110_v39 }
 0x31d   :  { %v6350_v0 = vpop.f32.mrb[14].mxu1 }
 0x31e   :  { %v4998_v63 = vadd.f32 %v6350_v0, %v9805_v28  ;;  %v4992_v4 = vpop.f32.mrb[15].mxu1 }
 0x31f   :  { %v4993_v18 = vadd.f32 %v9805_v28, %v4992_v4 }
 0x320   :  { %v5096_v43 = vmul.f32 %v9878_v6, %v4998_v63 }
 0x321   :  { %v5095_v33 = vmul.f32 %v9881_v25, %v4993_v18 }
 0x322   :  { %v5112_v13 = vmax.f32 %v5096_v43, 0.0 }
 0x323   :  { %v5111_v11 = vmax.f32 %v5095_v33, 0.0 }
 0x325   :  { %6380 = vmatprep.mubr.msk.f32.mxu0 %vm4520_vm2, %v5111_v11  ;;  %v9918_v11 = vld [vmem:[%s10065_s8] ss:$0 sm:$0xff] }
 0x326   :  { %6381 = vmatmul.mubr.msk.f32.gmra.mrb[30].mxu0 %vm4520_vm2, %v5112_v13 }
 0x38d   :  { %v6361_v5 = vpop.f32.mrb[16].mxu0 }
 0x38e   :  { %v5231_v7 = vpop.f32.mrb[17].mxu0 }
 0x38f   :  { %v6578_v27 = vpack.c.bf16 %v6361_v5, %v5231_v7 }
 0x391   :  { %6579 = vmatprep.subr.bf16.mxu1 %v6578_v27  ;;  %v6364_v26 = vpop.f32.mrb[18].mxu0 }
 0x392   :  { %6581 = vmatpush3.bf16.msra.mxu1 %v6578_v27  ;;  %v5241_v31 = vpop.f32.mrb[19].mxu0 }
 0x393   :  { %v6582_v28 = vpack.c.bf16 %v6364_v26, %v5241_v31 }
 0x395   :  { %6583 = vmatprep.subr.bf16.mxu1 %v6582_v28  ;;  %v6367_v59 = vpop.f32.mrb[20].mxu0 }
 0x396   :  { %6585 = vmatpush3.bf16.msra.mxu1 %v6582_v28  ;;  %v5251_v56 = vpop.f32.mrb[21].mxu0 }
 0x397   :  { %v6586_v22 = vpack.c.bf16 %v6367_v59, %v5251_v56 }
 0x399   :  { %6587 = vmatprep.subr.bf16.mxu1 %v6586_v22 }
 0x39a   :  { %6589 = vmatpush3.bf16.msra.mxu1 %v6586_v22 }
 0x39d   :  { %v6370_v42 = vpop.f32.mrb[22].mxu0 }
 0x39e   :  { %v5261_v35 = vpop.f32.mrb[23].mxu0 }
 0x39f   :  { %v6590_v10 = vpack.c.bf16 %v6370_v42, %v5261_v35 }
 0x3a1   :  { %6591 = vmatprep.subr.bf16.mxu1 %v6590_v10 }
 0x3a2   :  { %6593 = vmatpush3.bf16.msra.mxu1 %v6590_v10 }
 0x3b5   :  { %v6373_v36 = vpop.f32.mrb[24].mxu0 }
 0x3b6   :  { %v5271_v34 = vpop.f32.mrb[25].mxu0 }
 0x3b7   :  { %v6594_v54 = vpack.c.bf16 %v6373_v36, %v5271_v34 }
 0x3b9   :  { %6595 = vmatprep.subr.bf16.mxu1 %v6594_v54 }
 0x3ba   :  { %6597 = vmatpush3.bf16.msra.mxu1 %v6594_v54 }
 0x3d0   :  { %v6376_v17 = vpop.f32.mrb[26].mxu0 }
 0x3d1   :  { %v5281_v20 = vpop.f32.mrb[27].mxu0 }
 0x3d2   :  { %v6598_v39 = vpack.c.bf16 %v6376_v17, %v5281_v20 }
 0x3d4   :  { %6599 = vmatprep.subr.bf16.mxu1 %v6598_v39 }
 0x3d5   :  { %6601 = vmatpush3.bf16.msra.mxu1 %v6598_v39 }
 0x3ec   :  { %v6379_v0 = vpop.f32.mrb[28].mxu0 }
 0x3ed   :  { %v5291_v63 = vpop.f32.mrb[29].mxu0 }
 0x3ee   :  { %v6602_v4 = vpack.c.bf16 %v6379_v0, %v5291_v63 }
 0x3f0   :  { %6603 = vmatprep.subr.bf16.mxu1 %v6602_v4 }
 0x3f1   :  { %6605 = vmatpush3.bf16.msra.mxu1 %v6602_v4 }
 0x3f9   :  { %v6382_v18 = vpop.f32.mrb[30].mxu0 }
 0x3fa   :  { %v5301_v43 = vpop.f32.mrb[31].mxu0 }
 0x3fb   :  { %v6606_v33 = vpack.c.bf16 %v6382_v18, %v5301_v43 }
 0x3fd   :  { %6607 = vmatprep.subr.bf16.mxu1 %v6606_v33 }
 0x3fe   :  { %6609 = vmatpush3.bf16.msra.mxu1 %v6606_v33 }
 0x401   :  { %6416 = vmatmul.mubr.f32.vlgmr.msra.gmra.mrb[16].mxu1 %v9533_v52 }
 0x402   :  { %6418 = vmatprep.mubr.f32.mxu1 %v9569_v30 }
 0x405   :  { %6419 = vmatmul.mubr.f32.gmra.mrb[18].mxu1 %v9572_v3 }
 0x406   :  { %6421 = vmatprep.mubr.f32.mxu1 %v9602_v57 }
 0x409   :  { %6422 = vmatmul.mubr.f32.gmra.mrb[20].mxu1 %v9605_v47 }
 0x40a   :  { %6424 = vmatprep.mubr.f32.mxu1 %v9638_v55 }
 0x40d   :  { %6425 = vmatmul.mubr.f32.gmra.mrb[22].mxu1 %v9641_v21 }
 0x40e   :  { %6427 = vmatprep.mubr.f32.mxu1 %v9704_v2 }
 0x411   :  { %6428 = vmatmul.mubr.f32.gmra.mrb[24].mxu1 %v9707_v29 }
 0x412   :  { %6430 = vmatprep.mubr.f32.mxu1 %v9730_v9 }
 0x415   :  { %6431 = vmatmul.mubr.f32.gmra.mrb[26].mxu1 %v9733_v14 }
 0x416   :  { %6433 = vmatprep.mubr.f32.mxu1 %v9768_v53 }
 0x419   :  { %6434 = vmatmul.mubr.f32.gmra.mrb[28].mxu1 %v9771_v24 }
 0x41a   :  { %6436 = vmatprep.mubr.f32.mxu1 %v9794_v38 }
 0x41d   :  { %6437 = vmatmul.mubr.f32.gmra.mrb[30].mxu1 %v9797_v41 }
 0x41e   :  { %6512 = vmatprep.mubr.f32.mxu1 %v9638_v55 }
 0x4d4   :  { %v6417_v13 = vpop.f32.mrb[16].mxu1 }
 0x4d5   :  { %v5389_v5 = vadd.f32 %v6417_v13, %v9918_v11  ;;  %v5383_v7 = vpop.f32.mrb[17].mxu1 }
 0x4d6   :  { %v5384_v27 = vadd.f32 %v9918_v11, %v5383_v7 }
 0x4d7   :  { %v5463_v26 = vmul.f32 %v5389_v5, %v9807_v44 }
 0x4d8   :  { %v5462_v31 = vmul.f32 %v5384_v27, %v9810_v46  ;;  %v6420_v28 = vpop.f32.mrb[18].mxu1 }
 0x4d9   :  { %v5399_v59 = vadd.f32 %v6420_v28, %v9918_v11  ;;  %v5393_v56 = vpop.f32.mrb[19].mxu1  ;;  %v5479_v42 = vmax.f32 %v5463_v26, 0.0 }
 0x4da   :  { %v5478_v55 = vmax.f32 %v5462_v31, 0.0  ;;  %v5394_v22 = vadd.f32 %v9918_v11, %v5393_v56 }
 0x4db   :  { %v5465_v37 = vmul.f32 %v5399_v59, %v9815_v19 }
 0x4dc   :  { %v5464_v61 = vmul.f32 %v5394_v22, %v9818_v62  ;;  %v6423_v60 = vpop.f32.mrb[20].mxu1  ;;  %6447 = vmatprep.mubr.msk.f32.mxu0 %vm4520_vm2, %v5478_v55 }
 0x4dd   :  { %v5409_v35 = vadd.f32 %v6423_v60, %v9918_v11  ;;  %v5403_v49 = vpop.f32.mrb[21].mxu1  ;;  %6448 = vmatmul.mubr.msk.f32.vlgmr.msra.gmra.mrb[32].mxu0 %vm4520_vm2, %v5479_v42  ;;  %v5481_v45 = vmax.f32 %v5465_v37, 0.0 }
 0x4de   :  { %v5480_v32 = vmax.f32 %v5464_v61, 0.0  ;;  %v5404_v10 = vadd.f32 %v9918_v11, %v5403_v49 }
 0x4df   :  { %v5467_v36 = vmul.f32 %v5409_v35, %v9825_v50 }
 0x4e0   :  { %v5466_v34 = vmul.f32 %v5404_v10, %v9828_v23  ;;  %v6426_v54 = vpop.f32.mrb[22].mxu1  ;;  %6450 = vmatprep.mubr.msk.f32.mxu0 %vm4520_vm2, %v5480_v32 }
 0x4e1   :  { %v5419_v17 = vadd.f32 %v6426_v54, %v9918_v11  ;;  %v5413_v20 = vpop.f32.mrb[23].mxu1  ;;  %6451 = vmatmul.mubr.msk.f32.gmra.mrb[34].mxu0 %vm4520_vm2, %v5481_v45  ;;  %v5483_v63 = vmax.f32 %v5467_v36, 0.0 }
 0x4e2   :  { %v5482_v39 = vmax.f32 %v5466_v34, 0.0  ;;  %v5414_v0 = vadd.f32 %v9918_v11, %v5413_v20 }
 0x4e3   :  { %v5469_v4 = vmul.f32 %v5419_v17, %v9835_v58 }
 0x4e4   :  { %v5468_v18 = vmul.f32 %v5414_v0, %v9839_v51  ;;  %v6429_v43 = vpop.f32.mrb[24].mxu1  ;;  %6453 = vmatprep.mubr.msk.f32.mxu0 %vm4520_vm2, %v5482_v39 }
 0x4e5   :  { %v5429_v33 = vadd.f32 %v6429_v43, %v9918_v11  ;;  %v5423_v13 = vpop.f32.mrb[25].mxu1  ;;  %6454 = vmatmul.mubr.msk.f32.gmra.mrb[36].mxu0 %vm4520_vm2, %v5483_v63  ;;  %v5485_v27 = vmax.f32 %v5469_v4, 0.0 }
 0x4e6   :  { %v5484_v5 = vmax.f32 %v5468_v18, 0.0  ;;  %v5424_v7 = vadd.f32 %v9918_v11, %v5423_v13 }
 0x4e7   :  { %v5471_v26 = vmul.f32 %v5429_v33, %v9848_v8 }
 0x4e8   :  { %v5470_v31 = vmul.f32 %v5424_v7, %v9851_v48  ;;  %v6432_v28 = vpop.f32.mrb[26].mxu1  ;;  %6456 = vmatprep.mubr.msk.f32.mxu0 %vm4520_vm2, %v5484_v5 }
 0x4e9   :  { %v5439_v59 = vadd.f32 %v6432_v28, %v9918_v11  ;;  %v5433_v56 = vpop.f32.mrb[27].mxu1  ;;  %6457 = vmatmul.mubr.msk.f32.gmra.mrb[38].mxu0 %vm4520_vm2, %v5485_v27  ;;  %v5487_v42 = vmax.f32 %v5471_v26, 0.0 }
 0x4ea   :  { %v5486_v55 = vmax.f32 %v5470_v31, 0.0  ;;  %v5434_v22 = vadd.f32 %v9918_v11, %v5433_v56 }
 0x4eb   :  { %v5473_v37 = vmul.f32 %v5439_v59, %v9858_v15 }
 0x4ec   :  { %v5472_v61 = vmul.f32 %v5434_v22, %v9861_v40  ;;  %v6435_v60 = vpop.f32.mrb[28].mxu1  ;;  %6459 = vmatprep.mubr.msk.f32.mxu0 %vm4520_vm2, %v5486_v55 }
 0x4ed   :  { %v5449_v35 = vadd.f32 %v6435_v60, %v9918_v11  ;;  %v5443_v49 = vpop.f32.mrb[29].mxu1  ;;  %6460 = vmatmul.mubr.msk.f32.gmra.mrb[40].mxu0 %vm4520_vm2, %v5487_v42  ;;  %v5489_v45 = vmax.f32 %v5473_v37, 0.0 }
 0x4ee   :  { %v5488_v32 = vmax.f32 %v5472_v61, 0.0  ;;  %v5444_v10 = vadd.f32 %v9918_v11, %v5443_v49 }
 0x4ef   :  { %v5475_v36 = vmul.f32 %v5449_v35, %v9868_v12 }
 0x4f0   :  { %v5474_v34 = vmul.f32 %v5444_v10, %v9871_v1  ;;  %v6438_v54 = vpop.f32.mrb[30].mxu1  ;;  %6462 = vmatprep.mubr.msk.f32.mxu0 %vm4520_vm2, %v5488_v32 }
 0x4f1   :  { %v5459_v17 = vadd.f32 %v6438_v54, %v9918_v11  ;;  %v5453_v20 = vpop.f32.mrb[31].mxu1  ;;  %6463 = vmatmul.mubr.msk.f32.gmra.mrb[42].mxu0 %vm4520_vm2, %v5489_v45  ;;  %v5491_v63 = vmax.f32 %v5475_v36, 0.0 }
 0x4f2   :  { %v5490_v39 = vmax.f32 %v5474_v34, 0.0  ;;  %v5454_v0 = vadd.f32 %v9918_v11, %v5453_v20 }
 0x4f3   :  { %v5477_v4 = vmul.f32 %v5459_v17, %v9878_v6 }
 0x4f4   :  { %v5476_v18 = vmul.f32 %v5454_v0, %v9881_v25  ;;  %6465 = vmatprep.mubr.msk.f32.mxu0 %vm4520_vm2, %v5490_v39 }
 0x4f5   :  { %6466 = vmatmul.mubr.msk.f32.gmra.mrb[44].mxu0 %vm4520_vm2, %v5491_v63  ;;  %v5493_v33 = vmax.f32 %v5477_v4, 0.0 }
 0x4f6   :  { %v5492_v43 = vmax.f32 %v5476_v18, 0.0 }
 0x4f8   :  { %6468 = vmatprep.mubr.msk.f32.mxu0 %vm4520_vm2, %v5492_v43 }
 0x4f9   :  { %6469 = vmatmul.mubr.msk.f32.gmra.mrb[46].mxu0 %vm4520_vm2, %v5493_v33 }
 0x4fa   :  { %6503 = vmatprep.mubr.f32.mxu0 %v9523_v16 }
 0x5b0   :  { %v6449_v13 = vpop.f32.mrb[32].mxu0 }
 0x5b1   :  { %v5612_v5 = vpop.f32.mrb[33].mxu0 }
 0x5b2   :  { %v6618_v11 = vpack.c.bf16 %v6449_v13, %v5612_v5 }
 0x5b4   :  { %v6452_v7 = vpop.f32.mrb[34].mxu0  ;;  %6619 = vmatprep.subr.bf16.mxu0 %v6618_v11  ;;  %6656 = vmatprep.subr.bf16.mxu1 %v6618_v11 }
 0x5b5   :  { %v5622_v27 = vpop.f32.mrb[35].mxu0  ;;  %6621 = vmatpush3.bf16.msra.mxu0 %v6618_v11  ;;  %6664 = vmatpush3.bf16.msra.mxu1 %v6618_v11 }
 0x5b6   :  { %v6622_v26 = vpack.c.bf16 %v6452_v7, %v5622_v27 }
 0x5b8   :  { %v6455_v31 = vpop.f32.mrb[36].mxu0  ;;  %6623 = vmatprep.subr.bf16.mxu0 %v6622_v26  ;;  %6657 = vmatprep.subr.bf16.mxu1 %v6622_v26 }
 0x5b9   :  { %v5632_v28 = vpop.f32.mrb[37].mxu0  ;;  %6625 = vmatpush3.bf16.msra.mxu0 %v6622_v26  ;;  %6665 = vmatpush3.bf16.msra.mxu1 %v6622_v26 }
 0x5ba   :  { %v6626_v59 = vpack.c.bf16 %v6455_v31, %v5632_v28 }
 0x5bc   :  { %v6458_v56 = vpop.f32.mrb[38].mxu0  ;;  %6627 = vmatprep.subr.bf16.mxu0 %v6626_v59  ;;  %6658 = vmatprep.subr.bf16.mxu1 %v6626_v59 }
 0x5bd   :  { %v5642_v16 = vpop.f32.mrb[39].mxu0  ;;  %6629 = vmatpush3.bf16.msra.mxu0 %v6626_v59  ;;  %6666 = vmatpush3.bf16.msra.mxu1 %v6626_v59 }
 0x5be   :  { %v6630_v55 = vpack.c.bf16 %v6458_v56, %v5642_v16 }
 0x5c0   :  { %v6461_v22 = vpop.f32.mrb[40].mxu0  ;;  %6631 = vmatprep.subr.bf16.mxu0 %v6630_v55  ;;  %6659 = vmatprep.subr.bf16.mxu1 %v6630_v55 }
 0x5c1   :  { %v5652_v42 = vpop.f32.mrb[41].mxu0  ;;  %6633 = vmatpush3.bf16.msra.mxu0 %v6630_v55  ;;  %6667 = vmatpush3.bf16.msra.mxu1 %v6630_v55 }
 0x5c2   :  { %v6634_v37 = vpack.c.bf16 %v6461_v22, %v5652_v42 }
 0x5c4   :  { %v6464_v61 = vpop.f32.mrb[42].mxu0  ;;  %6635 = vmatprep.subr.bf16.mxu0 %v6634_v37  ;;  %6660 = vmatprep.subr.bf16.mxu1 %v6634_v37 }
 0x5c5   :  { %v5662_v60 = vpop.f32.mrb[43].mxu0  ;;  %6637 = vmatpush3.bf16.msra.mxu0 %v6634_v37  ;;  %6668 = vmatpush3.bf16.msra.mxu1 %v6634_v37 }
 0x5c6   :  { %v6638_v35 = vpack.c.bf16 %v6464_v61, %v5662_v60 }
 0x5c8   :  { %v6467_v49 = vpop.f32.mrb[44].mxu0  ;;  %6639 = vmatprep.subr.bf16.mxu0 %v6638_v35  ;;  %6661 = vmatprep.subr.bf16.mxu1 %v6638_v35 }
 0x5c9   :  { %v5672_v32 = vpop.f32.mrb[45].mxu0  ;;  %6641 = vmatpush3.bf16.msra.mxu0 %v6638_v35  ;;  %6669 = vmatpush3.bf16.msra.mxu1 %v6638_v35 }
 0x5ca   :  { %v6642_v10 = vpack.c.bf16 %v6467_v49, %v5672_v32 }
 0x5cc   :  { %v6470_v45 = vpop.f32.mrb[46].mxu0  ;;  %6643 = vmatprep.subr.bf16.mxu0 %v6642_v10  ;;  %6662 = vmatprep.subr.bf16.mxu1 %v6642_v10 }
 0x5cd   :  { %v5682_v36 = vpop.f32.mrb[47].mxu0  ;;  %6645 = vmatpush3.bf16.msra.mxu0 %v6642_v10  ;;  %6670 = vmatpush3.bf16.msra.mxu1 %v6642_v10 }
 0x5ce   :  { %v6646_v34 = vpack.c.bf16 %v6470_v45, %v5682_v36 }
 0x5d0   :  { %6647 = vmatprep.subr.bf16.mxu0 %v6646_v34  ;;  %6663 = vmatprep.subr.bf16.mxu1 %v6646_v34 }
 0x5d1   :  { %6649 = vmatpush3.bf16.msra.mxu0 %v6646_v34  ;;  %6671 = vmatpush3.bf16.msra.mxu1 %v6646_v34 }
 0x5d4   :  { %6504 = vmatmul.mubr.f32.vlgmr.msra.gmra.mrb[48].mxu0 %v9533_v52  ;;  %6513 = vmatmul.mubr.f32.vlgmr.msra.gmra.mrb[32].mxu1 %v9641_v21  ;;  %v6995_v52 = vmov 0.0|0.0  }
 0x5d5   :  { %6506 = vmatprep.mubr.f32.mxu0 %v9569_v30  ;;  %6515 = vmatprep.mubr.f32.mxu1 %v9704_v2  ;;  %v5947_v30 = vld [vmem:[%s10066_s11] sm:$0xff]  ;;  %v5950_v2 = vld [vmem:[%s10066_s11 + $0x18] sm:$0xff] }
 0x5d6   :  { %6650 = vmatprep.subr.bf16.mxu0 %v6995_v52 }
 0x5d8   :  { %6507 = vmatmul.mubr.f32.gmra.mrb[50].mxu0 %v9572_v3  ;;  %6516 = vmatmul.mubr.f32.gmra.mrb[34].mxu1 %v9707_v29  ;;  %v5948_v3 = vld [vmem:[%s10066_s11 + $0x8] sm:$0xff] }
 0x5d9   :  { %6509 = vmatprep.mubr.f32.mxu0 %v9602_v57  ;;  %6518 = vmatprep.mubr.f32.mxu1 %v9730_v9  ;;  %v5949_v57 = vld [vmem:[%s10066_s11 + $0x10] sm:$0xff]  ;;  %v6651_v21 = vpack.c.bf16 %v5948_v3, %v5947_v30  ;;  %v9998_v9 = vld [vmem:[%s10067_s10] ss:$0 sm:$0xff] }
 0x5da   :  { %v6654_v29 = vpack.c.bf16 %v5950_v2, %v5949_v57 }
 0x5db   :  { %6652 = vmatpush3.bf16.msra.mxu0 %v6651_v21 }
 0x5dc   :  { %6510 = vmatmul.mubr.f32.gmra.mrb[52].mxu0 %v9605_v47  ;;  %6519 = vmatmul.mubr.f32.gmra.mrb[36].mxu1 %v9733_v14  ;;  %v6997_v47 = vmov 0.0  }
 0x5dd   :  { %6521 = vmatprep.mubr.f32.mxu1 %v9768_v53  ;;  %6535 = vmatprep.mubr.msk.f32.mxu0 %vm6996_vm8, %v6997_v47 }
 0x5de   :  { %6653 = vmatprep.subr.bf16.mxu0 %v6995_v52 }
 0x5df   :  { %6655 = vmatpush3.bf16.msra.mxu0 %v6654_v29 }
 0x5e0   :  { %6522 = vmatmul.mubr.f32.gmra.mrb[38].mxu1 %v9771_v24 }
 0x5e1   :  { %6524 = vmatprep.mubr.f32.mxu1 %v9794_v38 }
 0x5e4   :  { %6525 = vmatmul.mubr.f32.gmra.mrb[40].mxu1 %v9797_v41 }
 0x6a7   :  { %v6505_v14 = vpop.f32.mrb[48].mxu0  ;;  %v6514_v53 = vpop.f32.mrb[32].mxu1 }
 0x6a8   :  { %v5770_v24 = vadd.f32 %v6505_v14, %v9998_v9  ;;  %v5800_v38 = vadd.f32 %v6514_v53, %v9998_v9  ;;  %v5764_v41 = vpop.f32.mrb[49].mxu0  ;;  %v5794_v54 = vpop.f32.mrb[33].mxu1 }
 0x6a9   :  { %v5765_v17 = vadd.f32 %v9998_v9, %v5764_v41  ;;  %v5795_v20 = vadd.f32 %v9998_v9, %v5794_v54 }
 0x6aa   :  { %v5844_v39 = vmul.f32 %v5770_v24, %v9807_v44  ;;  %v5850_v0 = vmul.f32 %v5800_v38, %v9835_v58 }
 0x6ab   :  { %v5843_v63 = vmul.f32 %v5765_v17, %v9810_v46  ;;  %v5849_v4 = vmul.f32 %v5795_v20, %v9839_v51  ;;  %v6508_v18 = vpop.f32.mrb[50].mxu0  ;;  %v6517_v43 = vpop.f32.mrb[34].mxu1 }
 0x6ac   :  { %v5860_v33 = vmax.f32 %v5844_v39, 0.0  ;;  %v5866_v13 = vmax.f32 %v5850_v0, 0.0  ;;  %v5780_v5 = vadd.f32 %v6508_v18, %v9998_v9  ;;  %v5810_v11 = vadd.f32 %v6517_v43, %v9998_v9  ;;  %v5774_v7 = vpop.f32.mrb[51].mxu0  ;;  %v5804_v27 = vpop.f32.mrb[35].mxu1 }
 0x6ad   :  { %v5859_v26 = vmax.f32 %v5843_v63, 0.0  ;;  %v5865_v31 = vmax.f32 %v5849_v4, 0.0  ;;  %v5775_v44 = vadd.f32 %v9998_v9, %v5774_v7  ;;  %v5805_v58 = vadd.f32 %v9998_v9, %v5804_v27 }
 0x6ae   :  { %v5876_v46 = vsel %vm4520_vm2, %v5860_v33, -inf  ;;  %v5903_v51 = vsel %vm4520_vm2, %v5866_v13, -inf  ;;  %v5846_v28 = vmul.f32 %v5780_v5, %v9815_v19  ;;  %v5852_v59 = vmul.f32 %v5810_v11, %v9848_v8 }
 0x6af   :  { %v5875_v56 = vsel %vm4520_vm2, %v5859_v26, -inf  ;;  %v5902_v16 = vsel %vm4520_vm2, %v5865_v31, -inf  ;;  %v5845_v55 = vmul.f32 %v5775_v44, %v9818_v62  ;;  %v5851_v22 = vmul.f32 %v5805_v58, %v9851_v48  ;;  %v6511_v42 = vpop.f32.mrb[52].mxu0  ;;  %v6520_v37 = vpop.f32.mrb[36].mxu1 }
 0x6b0   :  { %v5877_v61 = vmax.f32 %v5875_v56, %v5876_v46  ;;  %v5904_v60 = vmax.f32 %v5902_v16, %v5903_v51  ;;  %v5862_v35 = vmax.f32 %v5846_v28, 0.0  ;;  %v5868_v49 = vmax.f32 %v5852_v59, 0.0  ;;  %v5784_v32 = vpop.f32.mrb[53].mxu0  ;;  %v5814_v10 = vpop.f32.mrb[37].mxu1 }
 0x6b1   :  { %v5861_v45 = vmax.f32 %v5845_v55, 0.0  ;;  %v5867_v19 = vmax.f32 %v5851_v22, 0.0  ;;  %v5790_v8 = vadd.f32 %v6511_v42, %v9998_v9  ;;  %v5820_v36 = vadd.f32 %v6520_v37, %v9998_v9 }
 0x6b2   :  { %v5878_v34 = vrot.slane %v5877_v61, 4  ;;  %v5885_v52 = vsel %vm4520_vm2, %v5862_v35, -inf  ;;  %v5912_v62 = vsel %vm4520_vm2, %v5868_v49, -inf  ;;  %v5905_v2 = vrot.slane %v5904_v60, 4 }
 0x6b3   :  { %v5884_v48 = vsel %vm4520_vm2, %v5861_v45, -inf  ;;  %v5911_v30 = vsel %vm4520_vm2, %v5867_v19, -inf  ;;  %v5848_v3 = vmul.f32 %v5790_v8, %v9825_v50  ;;  %v5854_v57 = vmul.f32 %v5820_v36, %v9858_v15  ;;  %v6523_v47 = vpop.f32.mrb[38].mxu1 }
 0x6b4   :  { %v5879_v21 = vmax.f32 %v5877_v61, %v5878_v34  ;;  %v5886_v29 = vmax.f32 %v5884_v48, %v5885_v52  ;;  %v5913_v14 = vmax.f32 %v5911_v30, %v5912_v62  ;;  %v5824_v53 = vpop.f32.mrb[39].mxu1  ;;  %v5785_v38 = vadd.f32 %v9998_v9, %v5784_v32 }
 0x6b5   :  { %v5864_v24 = vmax.f32 %v5848_v3, 0.0  ;;  %v5815_v41 = vadd.f32 %v9998_v9, %v5814_v10  ;;  %v5870_v39 = vmax.f32 %v5854_v57, 0.0  ;;  %v5906_v4 = vmax.f32 %v5904_v60, %v5905_v2 }
 0x6b6   :  { %v5880_v54 = vrot.slane %v5879_v21, 2  ;;  %v5887_v17 = vrot.slane %v5886_v29, 4  ;;  %v5914_v20 = vrot.slane %v5913_v14, 4  ;;  %v5847_v0 = vmul.f32 %v5785_v38, %v9828_v23 }
 0x6b7   :  { %v5853_v50 = vmul.f32 %v5815_v41, %v9861_v40  ;;  %v6526_v15 = vpop.f32.mrb[40].mxu1  ;;  %v5830_v5 = vadd.f32 %v6523_v47, %v9998_v9  ;;  %v5825_v11 = vadd.f32 %v9998_v9, %v5824_v53  ;;  %v5894_v26 = vsel %vm4520_vm2, %v5864_v24, -inf }
 0x6b8   :  { %v5881_v63 = vmax.f32 %v5879_v21, %v5880_v54  ;;  %v5888_v18 = vmax.f32 %v5886_v29, %v5887_v17  ;;  %v5834_v43 = vpop.f32.mrb[41].mxu1  ;;  %v5863_v33 = vmax.f32 %v5847_v0, 0.0  ;;  %v5915_v27 = vmax.f32 %v5913_v14, %v5914_v20 }
 0x6b9   :  { %v5869_v13 = vmax.f32 %v5853_v50, 0.0  ;;  %v5921_v31 = vsel %vm4520_vm2, %v5870_v39, -inf  ;;  %v5856_v44 = vmul.f32 %v5830_v5, %v9868_v12  ;;  %v5855_v58 = vmul.f32 %v5825_v11, %v9871_v1 }
 0x6ba   :  { %v5889_v7 = vrot.slane %v5888_v18, 2  ;;  %v5893_v23 = vsel %vm4520_vm2, %v5863_v33, -inf  ;;  %v5882_v46 = vrot.slane %v5881_v63, 1  ;;  %v5907_v51 = vrot.slane %v5906_v4, 2 }
 0x6bb   :  { %v5920_v40 = vsel %vm4520_vm2, %v5869_v13, -inf  ;;  %v5895_v59 = vmax.f32 %v5893_v23, %v5894_v26  ;;  %v5872_v16 = vmax.f32 %v5856_v44, 0.0  ;;  %v5871_v55 = vmax.f32 %v5855_v58, 0.0  ;;  %v6109_v23 = vld [vmem:[%s10068_s12] ss:$0 sm:$0xff] }
 0x6bc   :  { %v5890_v28 = vmax.f32 %v5888_v18, %v5889_v7  ;;  %v5922_v56 = vmax.f32 %v5920_v40, %v5921_v31  ;;  %v5916_v42 = vrot.slane %v5915_v27, 2  ;;  %v5840_v37 = vadd.f32 %v6526_v15, %v9998_v9 }
 0x6bd   :  { %v5835_v61 = vadd.f32 %v9998_v9, %v5834_v43  ;;  %v5896_v60 = vrot.slane %v5895_v59, 4  ;;  %v5930_v12 = vsel %vm4520_vm2, %v5872_v16, -inf  ;;  %v5929_v1 = vsel %vm4520_vm2, %v5871_v55, -inf }
 0x6be   :  { %v5891_v22 = vrot.slane %v5890_v28, 1  ;;  %v5923_v35 = vrot.slane %v5922_v56, 4  ;;  %v5883_v49 = vmax.f32 %v5881_v63, %v5882_v46  ;;  %v5931_v10 = vmax.f32 %v5929_v1, %v5930_v12 }
 0x6bf   :  { %v5858_v45 = vmul.f32 %v5840_v37, %v9878_v6  ;;  %v5897_v19 = vmax.f32 %v5895_v59, %v5896_v60  ;;  %v5857_v36 = vmul.f32 %v5835_v61, %v9881_v25  ;;  %v5908_v34 = vmax.f32 %v5906_v4, %v5907_v51 }
 0x6c0   :  { %v5892_v32 = vmax.f32 %v5890_v28, %v5891_v22  ;;  %v5924_v8 = vmax.f32 %v5922_v56, %v5923_v35  ;;  %v5932_v62 = vrot.slane %v5931_v10, 4  ;;  %v5917_v48 = vmax.f32 %v5915_v27, %v5916_v42 }
 0x6c1   :  { %v5874_v9 = vmax.f32 %v5858_v45, 0.0  ;;  %v5898_v30 = vrot.slane %v5897_v19, 2  ;;  %v5873_v57 = vmax.f32 %v5857_v36, 0.0  ;;  %v5909_v14 = vrot.slane %v5908_v34, 1 }
 0x6c2   :  { %v5967_v52 = vsel %vm5966_vm9, %v5892_v32, %v5883_v49  ;;  %v5925_v3 = vrot.slane %v5924_v8, 2  ;;  %v5933_v47 = vmax.f32 %v5931_v10, %v5932_v62  ;;  %v5918_v25 = vrot.slane %v5917_v48, 1 }
 0x6c3   :  { %v5939_v21 = vsel %vm4520_vm2, %v5874_v9, -inf  ;;  %v5899_v2 = vmax.f32 %v5897_v19, %v5898_v30  ;;  %v5938_v6 = vsel %vm4520_vm2, %v5873_v57, -inf  ;;  %v5910_v39 = vmax.f32 %v5908_v34, %v5909_v14 }
 0x6c4   :  { %v5926_v29 = vmax.f32 %v5924_v8, %v5925_v3  ;;  %v5934_v53 = vrot.slane %v5933_v47, 2  ;;  %v5940_v24 = vmax.f32 %v5938_v6, %v5939_v21  ;;  %v5919_v15 = vmax.f32 %v5917_v48, %v5918_v25 }
 0x6c5   :  { %v5900_v38 = vrot.slane %v5899_v2, 1 }
 0x6c6   :  { %v5927_v41 = vrot.slane %v5926_v29, 1  ;;  %v5935_v54 = vmax.f32 %v5933_v47, %v5934_v53  ;;  %v5941_v17 = vrot.slane %v5940_v24, 4 }
 0x6c7   :  { %v5901_v20 = vmax.f32 %v5899_v2, %v5900_v38 }
 0x6c8   :  { %v5936_v0 = vrot.slane %v5935_v54, 1  ;;  %v5942_v50 = vmax.f32 %v5940_v24, %v5941_v17  ;;  %v5928_v4 = vmax.f32 %v5926_v29, %v5927_v41 }
 0x6c9   :  { %v5969_v63 = vsel %vm5968_vm10, %v5901_v20, %v5967_v52 }
 0x6ca   :  { %v5937_v18 = vmax.f32 %v5935_v54, %v5936_v0  ;;  %v5943_v43 = vrot.slane %v5942_v50, 2  ;;  %v5971_v33 = vsel %vm5970_vm11, %v5910_v39, %v5969_v63 }
 0x6cb   :  { %v5973_v13 = vsel %vm5972_vm12, %v5919_v15, %v5971_v33 }
 0x6cc   :  { %v5944_v5 = vmax.f32 %v5942_v50, %v5943_v43  ;;  %v5975_v11 = vsel %vm5974_vm13, %v5928_v4, %v5973_v13 }
 0x6cd   :  { %v5977_v7 = vsel %vm5976_vm14, %v5937_v18, %v5975_v11 }
 0x6ce   :  { %v5945_v27 = vrot.slane %v5944_v5, 1 }
 0x6d0   :  { %v5946_v26 = vmax.f32 %v5944_v5, %v5945_v27 }
 0x6d2   :  { %v5979_v31 = vsel %vm5978_vm15, %v5946_v26, %v5977_v7 }
 0x6d3   :  { %6536 = vmatmul.mubr.msk.f32.vlgmr.msra.gmra.mrb[54].mxu0 %vm4520_vm2, %v5979_v31 }
 0x7a6   :  { %v6048_v40 = vpop.f32.mrb[54].mxu0 }
 0x7a7   :  { %v6049_v44 = vadd.f32 %v6109_v23, %v6048_v40  ;;  %v6537_v58 = vpop.f32.mrb[55].mxu0 }
 0x7a9   :  { %6053 = vst.msk [vmem:[%s10069_s13] sm:$0xff] %vm6052_vm0, %v6049_v44 }

</bundles_post_ra>
